<compile_context>
chip_gen: v7x
topology: tpu7x:2x2x1
jax: 0.10.0
libtpu: 0.0.40
codegen_flags: <defaults>
</compile_context>

<pallas_src>
import functools

import jax
import jax.numpy as jnp
from jax.experimental import pallas as pl
from jax.experimental.pallas import tpu as pltpu


def _erf_approx(x):
    # Abramowitz & Stegun 7.1.26 erf approximation (max abs error ~1.5e-7).
    # VPU polynomial + one EUP exp + one EUP approx reciprocal.
    a1, a2, a3, a4, a5 = (0.254829592, -0.284496736, 1.421413741,
                          -1.453152027, 1.061405429)
    p = 0.3275911
    ax = jnp.abs(x)
    t = pl.reciprocal(1.0 + p * ax, approx=True)
    poly = ((((a5 * t + a4) * t + a3) * t + a2) * t + a1) * t
    y = 1.0 - poly * jnp.exp(-ax * ax)
    return jnp.where(x >= 0, y, -y)


def _gelu_exact(x):
    # PyTorch nn.GELU default (erf-based, not tanh approximation).
    return 0.5 * x * (1.0 + _erf_approx(x * 0.7071067811865476))


def _attention_layer_kernel(
    x_ref,
    ln1_g_ref, ln1_b_ref, wqkv_ref,
    wproj_ref, bproj_ref,
    ln2_g_ref, ln2_b_ref, w1_ref, b1_ref, w2_ref, b2_ref,
    o_ref,
    x_acc_ref,
    *, bb, n, num_heads, scale, eps, mm_dtype,
):
    d = pl.program_id(1)                      # depth (layer) grid axis
    c = x_ref.shape[-1]
    hd = c // num_heads

    @pl.when(d == 0)
    def _():
        # Load this batch-block once; carry the residual stream in f32 scratch.
        x_acc_ref[...] = x_ref[...].reshape(bb * n, c).astype(jnp.float32)

    x = x_acc_ref[...]                        # (Bb*N, C) f32

    def layer_norm(h, gamma, beta):
        # One-pass stats: var = E[h^2] - E[h]^2 (halves XLU reduction passes).
        mu = jnp.mean(h, axis=-1, keepdims=True)
        ms = jnp.mean(h * h, axis=-1, keepdims=True)
        var = ms - mu * mu
        return (h - mu) * jax.lax.rsqrt(var + eps) * gamma + beta

    # ---- PreNorm + Attention + residual ----
    xn = layer_norm(x, ln1_g_ref[0], ln1_b_ref[0])
    # Fused QKV: single (Bb*N, C) @ (C, 3C) MXU matmul, f32 accumulation.
    qkv = jnp.dot(xn.astype(mm_dtype), wqkv_ref[0],
                  preferred_element_type=jnp.float32)          # (Bb*N, 3C)
    q = qkv[:, 0 * c:1 * c].reshape(bb, n, c)                  # 128-aligned lane slices
    k = qkv[:, 1 * c:2 * c].reshape(bb, n, c)
    v = qkv[:, 2 * c:3 * c].reshape(bb, n, c)

    head_outs = []
    for h in range(num_heads):                # static loop; num_heads=1 in this module
        sl = slice(h * hd, (h + 1) * hd)
        qh = q[..., sl].astype(mm_dtype)
        kh = k[..., sl].astype(mm_dtype)
        vh = v[..., sl].astype(mm_dtype)
        s = jnp.einsum('bqd,bkd->bqk', qh, kh,
                       preferred_element_type=jnp.float32) * scale
        s = s - jnp.max(s, axis=-1, keepdims=True)
        p = jnp.exp(s)
        p = p * pl.reciprocal(jnp.sum(p, axis=-1, keepdims=True), approx=True)
        head_outs.append(
            jnp.einsum('bqk,bkd->bqd', p.astype(mm_dtype), vh,
                       preferred_element_type=jnp.float32))
    attn = head_outs[0] if num_heads == 1 else jnp.concatenate(head_outs, axis=-1)
    attn = attn.reshape(bb * n, c)

    x = x + (jnp.dot(attn.astype(mm_dtype), wproj_ref[0],
                     preferred_element_type=jnp.float32) + bproj_ref[0])

    # ---- PreNorm + FeedForward (Linear -> GELU -> Linear) + residual ----
    xn2 = layer_norm(x, ln2_g_ref[0], ln2_b_ref[0])
    h1 = jnp.dot(xn2.astype(mm_dtype), w1_ref[0],
                 preferred_element_type=jnp.float32) + b1_ref[0]
    h1 = _gelu_exact(h1)                       # GELU in f32 on the VPU/EUP
    x = x + (jnp.dot(h1.astype(mm_dtype), w2_ref[0],
                     preferred_element_type=jnp.float32) + b2_ref[0])

    x_acc_ref[...] = x

    @pl.when(d == pl.num_programs(1) - 1)
    def _():
        o_ref[...] = x.reshape(bb, n, c).astype(o_ref.dtype)


def _choose_block_batch(b, n, c, mlp_dim, act_budget_bytes=8 << 20):
    """Largest divisor of b whose per-step f32 activation footprint fits budget."""
    best = 1
    for bb in range(1, b + 1):
        if b % bb:
            continue
        act = bb * n * (4 * c + 3 * c + mlp_dim + n) * 4   # rough f32 estimate
        if act <= act_budget_bytes:
            best = bb
    return best


def attention_block_forward(x, params, *, num_heads=1, eps=1e-5,
                            matmul_dtype=jnp.bfloat16, block_batch=None):
    """Pallas equivalent of AttentionBlock.forward (dropout p=0.0 -> identity).

    x: (B, N, C) float32.
    params: dict of per-layer weights stacked along a leading `depth` axis,
            with linear weights stored transposed as (in, out).
    """
    b, n, c = x.shape
    depth = params["wq"].shape[0]
    mlp_dim = params["w1"].shape[-1]
    assert c % num_heads == 0
    assert c % 128 == 0 and mlp_dim % 128 == 0, "lane-dense tiles need multiples of 128"
    assert n % 8 == 0, "sublane alignment"
    scale = (c // num_heads) ** -0.5

    # Fused QKV weight (depth, C, 3C): one MXU matmul per layer instead of three.
    wqkv = jnp.concatenate([params["wq"], params["wk"], params["wv"]], axis=-1)

    # MXU operands in matmul_dtype (bf16 by default); LN params / biases stay f32.
    wqkv = wqkv.astype(matmul_dtype)
    wproj = params["wproj"].astype(matmul_dtype)
    w1 = params["w1"].astype(matmul_dtype)
    w2 = params["w2"].astype(matmul_dtype)

    if block_batch is None:
        block_batch = _choose_block_batch(b, n, c, mlp_dim)
    bb = block_batch
    assert b % bb == 0
    nb = b // bb

    kernel = functools.partial(
        _attention_layer_kernel, bb=bb, n=n, num_heads=num_heads,
        scale=scale, eps=eps, mm_dtype=matmul_dtype)

    def x_map(i, d):   # same block across depth -> stays resident per batch-block
        return (i, 0, 0)

    def w_map(i, d):   # stream layer d's weights (pipeline prefetches layer d+1)
        return (d, 0, 0)

    in_specs = [
        pl.BlockSpec((bb, n, c), x_map),          # x
        pl.BlockSpec((1, 1, c), w_map),           # ln1 gamma
        pl.BlockSpec((1, 1, c), w_map),           # ln1 beta
        pl.BlockSpec((1, c, 3 * c), w_map),       # Wqkv
        pl.BlockSpec((1, c, c), w_map),           # Wproj
        pl.BlockSpec((1, 1, c), w_map),           # bproj
        pl.BlockSpec((1, 1, c), w_map),           # ln2 gamma
        pl.BlockSpec((1, 1, c), w_map),           # ln2 beta
        pl.BlockSpec((1, c, mlp_dim), w_map),     # W1
        pl.BlockSpec((1, 1, mlp_dim), w_map),     # b1
        pl.BlockSpec((1, mlp_dim, c), w_map),     # W2
        pl.BlockSpec((1, 1, c), w_map),           # b2
    ]

    # Rough VMEM estimate (double-buffered IO + per-layer weights + temps),
    # raised above the default scoped limit and capped for v7x (64 MiB phys).
    wbytes = jnp.dtype(matmul_dtype).itemsize
    per_layer_w = (c * 3 * c + 2 * c * mlp_dim + c * c) * wbytes + (6 * c + mlp_dim) * 4
    act_io = bb * n * c * 4
    temps = bb * n * (3 * c + mlp_dim + 2 * c) * 4 + bb * n * n * num_heads * 4
    est = 2 * (act_io + per_layer_w) + 2 * act_io + act_io + temps
    vmem_limit = int(min(max(2 * est, 32 << 20), 56 << 20))

    return pl.pallas_call(
        kernel,
        out_shape=jax.ShapeDtypeStruct((b, n, c), x.dtype),
        grid=(nb, depth),
        in_specs=in_specs,
        out_specs=pl.BlockSpec((bb, n, c), x_map),
        scratch_shapes=[pltpu.VMEM((bb * n, c), jnp.float32)],
        compiler_params=pltpu.CompilerParams(
            dimension_semantics=("parallel", "arbitrary"),
            vmem_limit_bytes=vmem_limit),
    )(
        x,
        params["ln1_g"], params["ln1_b"], wqkv,
        wproj, params["bproj"],
        params["ln2_g"], params["ln2_b"],
        w1, params["b1"], w2, params["b2"],
    )


def _reference_forward(x, params, *, num_heads=1, eps=1e-5):
    """Pure-JAX reference mirroring the PyTorch AttentionBlock forward (f32)."""
    bsz, n, c = x.shape
    depth = params["wq"].shape[0]
    hd = c // num_heads
    scale = hd ** -0.5

    def ln(h, g, b):
        mu = jnp.mean(h, axis=-1, keepdims=True)
        var = jnp.mean((h - mu) ** 2, axis=-1, keepdims=True)
        return (h - mu) * jax.lax.rsqrt(var + eps) * g + b

    for d in range(depth):
        xn = ln(x, params["ln1_g"][d], params["ln1_b"][d])
        q = xn @ params["wq"][d]
        k = xn @ params["wk"][d]
        v = xn @ params["wv"][d]
        qh = q.reshape(bsz, n, num_heads, hd).transpose(0, 2, 1, 3)
        kh = k.reshape(bsz, n, num_heads, hd).transpose(0, 2, 1, 3)
        vh = v.reshape(bsz, n, num_heads, hd).transpose(0, 2, 1, 3)
        attn = jax.nn.softmax(qh @ kh.transpose(0, 1, 3, 2) * scale, axis=-1)
        o = (attn @ vh).transpose(0, 2, 1, 3).reshape(bsz, n, c)
        x = x + o @ params["wproj"][d] + params["bproj"][d]

        xn2 = ln(x, params["ln2_g"][d], params["ln2_b"][d])
        h = jax.nn.gelu(xn2 @ params["w1"][d] + params["b1"][d],
                        approximate=False)
        x = x + h @ params["w2"][d] + params["b2"][d]
    return x


if __name__ == "__main__":
    # Small but TPU-aligned shapes consistent with the module
    # (module defaults are dim=1024, depth=2, num_heads=1, mlp_dim=1024).
    B, N, C = 2, 32, 128
    MLP, DEPTH, HEADS = 256, 2, 1

    key = jax.random.PRNGKey(0)
    ks = jax.random.split(key, 16)

    def uni(k, shape, fan_in):
        bound = float(fan_in) ** -0.5
        return jax.random.uniform(k, shape, jnp.float32, -bound, bound)

    params = {
        "ln1_g": 1.0 + 0.1 * jax.random.normal(ks[0], (DEPTH, 1, C), jnp.float32),
        "ln1_b": 0.1 * jax.random.normal(ks[1], (DEPTH, 1, C), jnp.float32),
        "wq": uni(ks[2], (DEPTH, C, C), C),
        "wk": uni(ks[3], (DEPTH, C, C), C),
        "wv": uni(ks[4], (DEPTH, C, C), C),          # qkv_bias=False in module
        "wproj": uni(ks[5], (DEPTH, C, C), C),
        "bproj": uni(ks[6], (DEPTH, 1, C), C),
        "ln2_g": 1.0 + 0.1 * jax.random.normal(ks[7], (DEPTH, 1, C), jnp.float32),
        "ln2_b": 0.1 * jax.random.normal(ks[8], (DEPTH, 1, C), jnp.float32),
        "w1": uni(ks[9], (DEPTH, C, MLP), C),
        "b1": uni(ks[10], (DEPTH, 1, MLP), C),
        "w2": uni(ks[11], (DEPTH, MLP, C), MLP),
        "b2": uni(ks[12], (DEPTH, 1, C), MLP),
    }
    x = jax.random.normal(ks[13], (B, N, C), dtype=jnp.float32)

    ref = _reference_forward(x, params, num_heads=HEADS)

    # f32-MXU path: tight parity check against the pure-JAX reference.
    out_f32 = attention_block_forward(x, params, num_heads=HEADS,
                                      matmul_dtype=jnp.float32)
    jax.block_until_ready(out_f32)
    assert out_f32.shape == (B, N, C)
    err_f32 = float(jnp.max(jnp.abs(out_f32 - ref)))
    assert jnp.allclose(out_f32, ref, atol=3e-3, rtol=3e-3), err_f32

    # bf16-MXU path (default / fast): f32 accumulation, loose tolerance.
    out_bf16 = attention_block_forward(x, params, num_heads=HEADS)
    jax.block_until_ready(out_bf16)
    assert out_bf16.shape == (B, N, C)
    err_bf16 = float(jnp.max(jnp.abs(out_bf16 - ref)))
    assert jnp.allclose(out_bf16, ref, atol=2e-1, rtol=5e-2), err_bf16

    print("KERNEL_OK")
</pallas_src>

<mosaic_0001>
module attributes {stable_mosaic.version = 11 : i64} {
  func.func @_attention_layer_kernel(%arg0: i32, %arg1: i32, %arg2: memref<2x32x128xf32, #tpu.memory_space<vmem>>, %arg3: memref<1x1x128xf32, #tpu.memory_space<vmem>>, %arg4: memref<1x1x128xf32, #tpu.memory_space<vmem>>, %arg5: memref<1x128x384xf32, #tpu.memory_space<vmem>>, %arg6: memref<1x128x128xf32, #tpu.memory_space<vmem>>, %arg7: memref<1x1x128xf32, #tpu.memory_space<vmem>>, %arg8: memref<1x1x128xf32, #tpu.memory_space<vmem>>, %arg9: memref<1x1x128xf32, #tpu.memory_space<vmem>>, %arg10: memref<1x128x256xf32, #tpu.memory_space<vmem>>, %arg11: memref<1x1x256xf32, #tpu.memory_space<vmem>>, %arg12: memref<1x256x128xf32, #tpu.memory_space<vmem>>, %arg13: memref<1x1x128xf32, #tpu.memory_space<vmem>>, %arg14: memref<2x32x128xf32, #tpu.memory_space<vmem>>, %arg15: memref<64x128xf32, #tpu.memory_space<vmem>>) attributes {dimension_semantics = [#tpu.dimension_semantics<parallel>, #tpu.dimension_semantics<arbitrary>], iteration_bounds = array<i64: 1, 2>, scalar_prefetch = 0 : i64, scratch_operands = 1 : i64, tpu.core_type = #tpu.core_type<tc>, window_params = [{transform_indices = @transform_0, window_bounds = array<i64: 2, 32, 128>}, {transform_indices = @transform_1, window_bounds = array<i64: 1, 1, 128>}, {transform_indices = @transform_2, window_bounds = array<i64: 1, 1, 128>}, {transform_indices = @transform_3, window_bounds = array<i64: 1, 128, 384>}, {transform_indices = @transform_4, window_bounds = array<i64: 1, 128, 128>}, {transform_indices = @transform_5, window_bounds = array<i64: 1, 1, 128>}, {transform_indices = @transform_6, window_bounds = array<i64: 1, 1, 128>}, {transform_indices = @transform_7, window_bounds = array<i64: 1, 1, 128>}, {transform_indices = @transform_8, window_bounds = array<i64: 1, 128, 256>}, {transform_indices = @transform_9, window_bounds = array<i64: 1, 1, 256>}, {transform_indices = @transform_10, window_bounds = array<i64: 1, 256, 128>}, {transform_indices = @transform_11, window_bounds = array<i64: 1, 1, 128>}, {transform_indices = @transform_12, window_bounds = array<i64: 2, 32, 128>}]} {
    %c0_i32 = arith.constant 0 : i32
    %0 = arith.cmpi eq, %arg1, %c0_i32 : i32
    %1 = arith.extui %0 : i1 to i32
    %c0_i32_0 = arith.constant 0 : i32
    %2 = arith.cmpi ne, %1, %c0_i32_0 : i32
    scf.if %2 {
      %c0_70 = arith.constant 0 : index
      %c0_71 = arith.constant 0 : index
      %c0_72 = arith.constant 0 : index
      %146 = vector.load %arg2[%c0_70, %c0_71, %c0_72] : memref<2x32x128xf32, #tpu.memory_space<vmem>>, vector<2x32x128xf32>
      %147 = vector.shape_cast %146 : vector<2x32x128xf32> to vector<64x128xf32>
      %c0_73 = arith.constant 0 : index
      %c0_74 = arith.constant 0 : index
      %148 = vector.load %arg15[%c0_73, %c0_74] : memref<64x128xf32, #tpu.memory_space<vmem>>, vector<64x128xf32>
      tpu.vector_store %arg15[%c0_73, %c0_74], %147 {strides = array<i32>} : memref<64x128xf32, #tpu.memory_space<vmem>>, vector<64x128xf32>,
    } else {
    }
    %c0 = arith.constant 0 : index
    %c0_1 = arith.constant 0 : index
    %3 = vector.load %arg15[%c0, %c0_1] : memref<64x128xf32, #tpu.memory_space<vmem>>, vector<64x128xf32>
    %c0_2 = arith.constant 0 : index
    %c0_3 = arith.constant 0 : index
    %c0_4 = arith.constant 0 : index
    %4 = vector.load %arg3[%c0_2, %c0_3, %c0_4] : memref<1x1x128xf32, #tpu.memory_space<vmem>>, vector<1x1x128xf32>
    %5 = vector.shape_cast %4 : vector<1x1x128xf32> to vector<1x128xf32>
    %c0_5 = arith.constant 0 : index
    %c0_6 = arith.constant 0 : index
    %c0_7 = arith.constant 0 : index
    %6 = vector.load %arg4[%c0_5, %c0_6, %c0_7] : memref<1x1x128xf32, #tpu.memory_space<vmem>>, vector<1x1x128xf32>
    %7 = vector.shape_cast %6 : vector<1x1x128xf32> to vector<1x128xf32>
    %cst = arith.constant dense<0.000000e+00> : vector<64xf32>
    %8 = vector.multi_reduction <add>, %3, %cst [1] : vector<64x128xf32> to vector<64xf32>
    %9 = vector.shape_cast %8 : vector<64xf32> to vector<64x1xf32>
    %cst_8 = arith.constant 1.280000e+02 : f32
    %10 = vector.broadcast %cst_8 : f32 to vector<64x1xf32>
    %11 = arith.divf %9, %10 : vector<64x1xf32>
    %12 = arith.mulf %3, %3 : vector<64x128xf32>
    %cst_9 = arith.constant dense<0.000000e+00> : vector<64xf32>
    %13 = vector.multi_reduction <add>, %12, %cst_9 [1] : vector<64x128xf32> to vector<64xf32>
    %14 = vector.shape_cast %13 : vector<64xf32> to vector<64x1xf32>
    %cst_10 = arith.constant 1.280000e+02 : f32
    %15 = vector.broadcast %cst_10 : f32 to vector<64x1xf32>
    %16 = arith.divf %14, %15 : vector<64x1xf32>
    %17 = arith.mulf %11, %11 : vector<64x1xf32>
    %18 = arith.subf %16, %17 : vector<64x1xf32>
    %19 = vector.broadcast %11 : vector<64x1xf32> to vector<64x128xf32>
    %20 = arith.subf %3, %19 : vector<64x128xf32>
    %cst_11 = arith.constant 9.99999974E-6 : f32
    %21 = vector.broadcast %cst_11 : f32 to vector<64x1xf32>
    %22 = arith.addf %18, %21 : vector<64x1xf32>
    %23 = math.rsqrt %22 : vector<64x1xf32>
    %24 = vector.broadcast %23 : vector<64x1xf32> to vector<64x128xf32>
    %25 = arith.mulf %20, %24 : vector<64x128xf32>
    %26 = vector.broadcast %5 : vector<1x128xf32> to vector<64x128xf32>
    %27 = arith.mulf %25, %26 : vector<64x128xf32>
    %28 = vector.broadcast %7 : vector<1x128xf32> to vector<64x128xf32>
    %29 = arith.addf %27, %28 : vector<64x128xf32>
    %c0_12 = arith.constant 0 : index
    %c0_13 = arith.constant 0 : index
    %c0_14 = arith.constant 0 : index
    %30 = vector.load %arg5[%c0_12, %c0_13, %c0_14] : memref<1x128x384xf32, #tpu.memory_space<vmem>>, vector<1x128x384xf32>
    %31 = vector.shape_cast %30 : vector<1x128x384xf32> to vector<128x384xf32>
    %cst_15 = arith.constant dense<0.000000e+00> : vector<64x384xf32>
    %32 = tpu.matmul %29, %31, %cst_15 {dimension_numbers = #tpu.dot_dimension_numbers<[1], [0], [0], [1], [0, 0, 1, 1], [], []>} : vector<64x128xf32>, vector<128x384xf32>, vector<64x384xf32> -> vector<64x384xf32>
    %33 = vector.extract_strided_slice %32 {offsets = [0, 0], sizes = [64, 128], strides = [1, 1]} : vector<64x384xf32> to vector<64x128xf32>
    %34 = vector.shape_cast %33 : vector<64x128xf32> to vector<2x32x128xf32>
    %35 = vector.extract_strided_slice %32 {offsets = [0, 128], sizes = [64, 128], strides = [1, 1]} : vector<64x384xf32> to vector<64x128xf32>
    %36 = vector.shape_cast %35 : vector<64x128xf32> to vector<2x32x128xf32>
    %37 = vector.extract_strided_slice %32 {offsets = [0, 256], sizes = [64, 128], strides = [1, 1]} : vector<64x384xf32> to vector<64x128xf32>
    %38 = vector.shape_cast %37 : vector<64x128xf32> to vector<2x32x128xf32>
    "tpu.trace_start"() <{level = 10 : i32, message = "bqd,bkd->bqk"}> : () -> ()
    %cst_16 = arith.constant dense<0.000000e+00> : vector<2x32x32xf32>
    %39 = tpu.matmul %34, %36, %cst_16 {dimension_numbers = #tpu.dot_dimension_numbers<[2], [2], [1], [1], [0, 0, 0, 1, 1, 1], [0], [0]>} : vector<2x32x128xf32>, vector<2x32x128xf32>, vector<2x32x32xf32> -> vector<2x32x32xf32>
    "tpu.trace_stop"() : () -> ()
    %cst_17 = arith.constant 0.0883883461 : f32
    %40 = vector.broadcast %cst_17 : f32 to vector<2x32x32xf32>
    %41 = arith.mulf %39, %40 : vector<2x32x32xf32>
    %cst_18 = arith.constant dense<0xFF800000> : vector<2x32xf32>
    %42 = vector.multi_reduction <maximumf>, %41, %cst_18 [2] : vector<2x32x32xf32> to vector<2x32xf32>
    %43 = vector.shape_cast %42 : vector<2x32xf32> to vector<2x32x1xf32>
    %44 = vector.broadcast %43 : vector<2x32x1xf32> to vector<2x32x32xf32>
    %45 = arith.subf %41, %44 : vector<2x32x32xf32>
    %46 = math.exp %45 : vector<2x32x32xf32>
    %cst_19 = arith.constant dense<0.000000e+00> : vector<2x32xf32>
    %47 = vector.multi_reduction <add>, %46, %cst_19 [2] : vector<2x32x32xf32> to vector<2x32xf32>
    %48 = vector.shape_cast %47 : vector<2x32xf32> to vector<2x32x1xf32>
    %49 = tpu.reciprocal %48 {approx = true} : vector<2x32x1xf32> -> vector<2x32x1xf32>
    %50 = vector.broadcast %49 : vector<2x32x1xf32> to vector<2x32x32xf32>
    %51 = arith.mulf %46, %50 : vector<2x32x32xf32>
    "tpu.trace_start"() <{level = 10 : i32, message = "bqk,bkd->bqd"}> : () -> ()
    %cst_20 = arith.constant dense<0.000000e+00> : vector<2x32x128xf32>
    %52 = tpu.matmul %51, %38, %cst_20 {dimension_numbers = #tpu.dot_dimension_numbers<[2], [1], [1], [2], [0, 0, 0, 1, 1, 2], [0], [0]>} : vector<2x32x32xf32>, vector<2x32x128xf32>, vector<2x32x128xf32> -> vector<2x32x128xf32>
    "tpu.trace_stop"() : () -> ()
    %53 = vector.shape_cast %52 : vector<2x32x128xf32> to vector<64x128xf32>
    %c0_21 = arith.constant 0 : index
    %c0_22 = arith.constant 0 : index
    %c0_23 = arith.constant 0 : index
    %54 = vector.load %arg6[%c0_21, %c0_22, %c0_23] : memref<1x128x128xf32, #tpu.memory_space<vmem>>, vector<1x128x128xf32>
    %55 = vector.shape_cast %54 : vector<1x128x128xf32> to vector<128x128xf32>
    %cst_24 = arith.constant dense<0.000000e+00> : vector<64x128xf32>
    %56 = tpu.matmul %53, %55, %cst_24 {dimension_numbers = #tpu.dot_dimension_numbers<[1], [0], [0], [1], [0, 0, 1, 1], [], []>} : vector<64x128xf32>, vector<128x128xf32>, vector<64x128xf32> -> vector<64x128xf32>
    %c0_25 = arith.constant 0 : index
    %c0_26 = arith.constant 0 : index
    %c0_27 = arith.constant 0 : index
    %57 = vector.load %arg7[%c0_25, %c0_26, %c0_27] : memref<1x1x128xf32, #tpu.memory_space<vmem>>, vector<1x1x128xf32>
    %58 = vector.shape_cast %57 : vector<1x1x128xf32> to vector<1x128xf32>
    %59 = vector.broadcast %58 : vector<1x128xf32> to vector<64x128xf32>
    %60 = arith.addf %56, %59 : vector<64x128xf32>
    %61 = arith.addf %3, %60 : vector<64x128xf32>
    %c0_28 = arith.constant 0 : index
    %c0_29 = arith.constant 0 : index
    %c0_30 = arith.constant 0 : index
    %62 = vector.load %arg8[%c0_28, %c0_29, %c0_30] : memref<1x1x128xf32, #tpu.memory_space<vmem>>, vector<1x1x128xf32>
    %63 = vector.shape_cast %62 : vector<1x1x128xf32> to vector<1x128xf32>
    %c0_31 = arith.constant 0 : index
    %c0_32 = arith.constant 0 : index
    %c0_33 = arith.constant 0 : index
    %64 = vector.load %arg9[%c0_31, %c0_32, %c0_33] : memref<1x1x128xf32, #tpu.memory_space<vmem>>, vector<1x1x128xf32>
    %65 = vector.shape_cast %64 : vector<1x1x128xf32> to vector<1x128xf32>
    %cst_34 = arith.constant dense<0.000000e+00> : vector<64xf32>
    %66 = vector.multi_reduction <add>, %61, %cst_34 [1] : vector<64x128xf32> to vector<64xf32>
    %67 = vector.shape_cast %66 : vector<64xf32> to vector<64x1xf32>
    %cst_35 = arith.constant 1.280000e+02 : f32
    %68 = vector.broadcast %cst_35 : f32 to vector<64x1xf32>
    %69 = arith.divf %67, %68 : vector<64x1xf32>
    %70 = arith.mulf %61, %61 : vector<64x128xf32>
    %cst_36 = arith.constant dense<0.000000e+00> : vector<64xf32>
    %71 = vector.multi_reduction <add>, %70, %cst_36 [1] : vector<64x128xf32> to vector<64xf32>
    %72 = vector.shape_cast %71 : vector<64xf32> to vector<64x1xf32>
    %cst_37 = arith.constant 1.280000e+02 : f32
    %73 = vector.broadcast %cst_37 : f32 to vector<64x1xf32>
    %74 = arith.divf %72, %73 : vector<64x1xf32>
    %75 = arith.mulf %69, %69 : vector<64x1xf32>
    %76 = arith.subf %74, %75 : vector<64x1xf32>
    %77 = vector.broadcast %69 : vector<64x1xf32> to vector<64x128xf32>
    %78 = arith.subf %61, %77 : vector<64x128xf32>
    %cst_38 = arith.constant 9.99999974E-6 : f32
    %79 = vector.broadcast %cst_38 : f32 to vector<64x1xf32>
    %80 = arith.addf %76, %79 : vector<64x1xf32>
    %81 = math.rsqrt %80 : vector<64x1xf32>
    %82 = vector.broadcast %81 : vector<64x1xf32> to vector<64x128xf32>
    %83 = arith.mulf %78, %82 : vector<64x128xf32>
    %84 = vector.broadcast %63 : vector<1x128xf32> to vector<64x128xf32>
    %85 = arith.mulf %83, %84 : vector<64x128xf32>
    %86 = vector.broadcast %65 : vector<1x128xf32> to vector<64x128xf32>
    %87 = arith.addf %85, %86 : vector<64x128xf32>
    %c0_39 = arith.constant 0 : index
    %c0_40 = arith.constant 0 : index
    %c0_41 = arith.constant 0 : index
    %88 = vector.load %arg10[%c0_39, %c0_40, %c0_41] : memref<1x128x256xf32, #tpu.memory_space<vmem>>, vector<1x128x256xf32>
    %89 = vector.shape_cast %88 : vector<1x128x256xf32> to vector<128x256xf32>
    %cst_42 = arith.constant dense<0.000000e+00> : vector<64x256xf32>
    %90 = tpu.matmul %87, %89, %cst_42 {dimension_numbers = #tpu.dot_dimension_numbers<[1], [0], [0], [1], [0, 0, 1, 1], [], []>} : vector<64x128xf32>, vector<128x256xf32>, vector<64x256xf32> -> vector<64x256xf32>
    %c0_43 = arith.constant 0 : index
    %c0_44 = arith.constant 0 : index
    %c0_45 = arith.constant 0 : index
    %91 = vector.load %arg11[%c0_43, %c0_44, %c0_45] : memref<1x1x256xf32, #tpu.memory_space<vmem>>, vector<1x1x256xf32>
    %92 = vector.shape_cast %91 : vector<1x1x256xf32> to vector<1x256xf32>
    %93 = vector.broadcast %92 : vector<1x256xf32> to vector<64x256xf32>
    %94 = arith.addf %90, %93 : vector<64x256xf32>
    %cst_46 = arith.constant 5.000000e-01 : f32
    %95 = vector.broadcast %cst_46 : f32 to vector<64x256xf32>
    %96 = arith.mulf %95, %94 : vector<64x256xf32>
    %cst_47 = arith.constant 0.707106769 : f32
    %97 = vector.broadcast %cst_47 : f32 to vector<64x256xf32>
    %98 = arith.mulf %94, %97 : vector<64x256xf32>
    %99 = math.absf %98 : vector<64x256xf32>
    %cst_48 = arith.constant 0.327591091 : f32
    %100 = vector.broadcast %cst_48 : f32 to vector<64x256xf32>
    %101 = arith.mulf %100, %99 : vector<64x256xf32>
    %cst_49 = arith.constant 1.000000e+00 : f32
    %102 = vector.broadcast %cst_49 : f32 to vector<64x256xf32>
    %103 = arith.addf %102, %101 : vector<64x256xf32>
    %104 = tpu.reciprocal %103 {approx = true} : vector<64x256xf32> -> vector<64x256xf32>
    %cst_50 = arith.constant 1.06140542 : f32
    %105 = vector.broadcast %cst_50 : f32 to vector<64x256xf32>
    %106 = arith.mulf %105, %104 : vector<64x256xf32>
    %cst_51 = arith.constant -1.45315206 : f32
    %107 = vector.broadcast %cst_51 : f32 to vector<64x256xf32>
    %108 = arith.addf %106, %107 : vector<64x256xf32>
    %109 = arith.mulf %108, %104 : vector<64x256xf32>
    %cst_52 = arith.constant 1.42141378 : f32
    %110 = vector.broadcast %cst_52 : f32 to vector<64x256xf32>
    %111 = arith.addf %109, %110 : vector<64x256xf32>
    %112 = arith.mulf %111, %104 : vector<64x256xf32>
    %cst_53 = arith.constant -0.284496725 : f32
    %113 = vector.broadcast %cst_53 : f32 to vector<64x256xf32>
    %114 = arith.addf %112, %113 : vector<64x256xf32>
    %115 = arith.mulf %114, %104 : vector<64x256xf32>
    %cst_54 = arith.constant 0.254829586 : f32
    %116 = vector.broadcast %cst_54 : f32 to vector<64x256xf32>
    %117 = arith.addf %115, %116 : vector<64x256xf32>
    %118 = arith.mulf %117, %104 : vector<64x256xf32>
    %cst_55 = arith.constant 0.000000e+00 : f32
    %119 = vector.broadcast %cst_55 : f32 to vector<64x256xf32>
    %120 = arith.subf %119, %99 : vector<64x256xf32>
    %121 = arith.mulf %120, %99 : vector<64x256xf32>
    %122 = math.exp %121 : vector<64x256xf32>
    %123 = arith.mulf %118, %122 : vector<64x256xf32>
    %cst_56 = arith.constant 1.000000e+00 : f32
    %124 = vector.broadcast %cst_56 : f32 to vector<64x256xf32>
    %125 = arith.subf %124, %123 : vector<64x256xf32>
    %cst_57 = arith.constant 0.000000e+00 : f32
    %126 = vector.broadcast %cst_57 : f32 to vector<64x256xf32>
    %127 = arith.cmpf oge, %98, %126 : vector<64x256xf32>
    %cst_58 = arith.constant 0.000000e+00 : f32
    %128 = vector.broadcast %cst_58 : f32 to vector<64x256xf32>
    %129 = arith.subf %128, %125 : vector<64x256xf32>
    %130 = arith.select %127, %125, %129 : vector<64x256xi1>, vector<64x256xf32>
    %cst_59 = arith.constant 1.000000e+00 : f32
    %131 = vector.broadcast %cst_59 : f32 to vector<64x256xf32>
    %132 = arith.addf %131, %130 : vector<64x256xf32>
    %133 = arith.mulf %96, %132 : vector<64x256xf32>
    %c0_60 = arith.constant 0 : index
    %c0_61 = arith.constant 0 : index
    %c0_62 = arith.constant 0 : index
    %134 = vector.load %arg12[%c0_60, %c0_61, %c0_62] : memref<1x256x128xf32, #tpu.memory_space<vmem>>, vector<1x256x128xf32>
    %135 = vector.shape_cast %134 : vector<1x256x128xf32> to vector<256x128xf32>
    %cst_63 = arith.constant dense<0.000000e+00> : vector<64x128xf32>
    %136 = tpu.matmul %133, %135, %cst_63 {dimension_numbers = #tpu.dot_dimension_numbers<[1], [0], [0], [1], [0, 0, 1, 1], [], []>} : vector<64x256xf32>, vector<256x128xf32>, vector<64x128xf32> -> vector<64x128xf32>
    %c0_64 = arith.constant 0 : index
    %c0_65 = arith.constant 0 : index
    %c0_66 = arith.constant 0 : index
    %137 = vector.load %arg13[%c0_64, %c0_65, %c0_66] : memref<1x1x128xf32, #tpu.memory_space<vmem>>, vector<1x1x128xf32>
    %138 = vector.shape_cast %137 : vector<1x1x128xf32> to vector<1x128xf32>
    %139 = vector.broadcast %138 : vector<1x128xf32> to vector<64x128xf32>
    %140 = arith.addf %136, %139 : vector<64x128xf32>
    %141 = arith.addf %61, %140 : vector<64x128xf32>
    %c0_67 = arith.constant 0 : index
    %c0_68 = arith.constant 0 : index
    %142 = vector.load %arg15[%c0_67, %c0_68] : memref<64x128xf32, #tpu.memory_space<vmem>>, vector<64x128xf32>
    tpu.vector_store %arg15[%c0_67, %c0_68], %141 {strides = array<i32>} : memref<64x128xf32, #tpu.memory_space<vmem>>, vector<64x128xf32>,
    %c1_i32 = arith.constant 1 : i32
    %143 = arith.cmpi eq, %arg1, %c1_i32 : i32
    %144 = arith.extui %143 : i1 to i32
    %c0_i32_69 = arith.constant 0 : i32
    %145 = arith.cmpi ne, %144, %c0_i32_69 : i32
    scf.if %145 {
      %146 = vector.shape_cast %141 : vector<64x128xf32> to vector<2x32x128xf32>
      %c0_70 = arith.constant 0 : index
      %c0_71 = arith.constant 0 : index
      %c0_72 = arith.constant 0 : index
      %147 = vector.load %arg14[%c0_70, %c0_71, %c0_72] : memref<2x32x128xf32, #tpu.memory_space<vmem>>, vector<2x32x128xf32>
      tpu.vector_store %arg14[%c0_70, %c0_71, %c0_72], %146 {strides = array<i32>} : memref<2x32x128xf32, #tpu.memory_space<vmem>>, vector<2x32x128xf32>,
    } else {
    }
    return
  }
  func.func @transform_0(%arg0: i32, %arg1: i32) -> (i32, i32, i32) {
    %c0_i32 = arith.constant 0 : i32
    %c0_i32_0 = arith.constant 0 : i32
    %c0_i32_1 = arith.constant 0 : i32
    return %arg0, %c0_i32, %c0_i32_0 : i32, i32, i32
  }
  func.func @transform_1(%arg0: i32, %arg1: i32) -> (i32, i32, i32) {
    %c0_i32 = arith.constant 0 : i32
    %c0_i32_0 = arith.constant 0 : i32
    %c0_i32_1 = arith.constant 0 : i32
    return %arg1, %c0_i32, %c0_i32_0 : i32, i32, i32
  }
  func.func @transform_2(%arg0: i32, %arg1: i32) -> (i32, i32, i32) {
    %c0_i32 = arith.constant 0 : i32
    %c0_i32_0 = arith.constant 0 : i32
    %c0_i32_1 = arith.constant 0 : i32
    return %arg1, %c0_i32, %c0_i32_0 : i32, i32, i32
  }
  func.func @transform_3(%arg0: i32, %arg1: i32) -> (i32, i32, i32) {
    %c0_i32 = arith.constant 0 : i32
    %c0_i32_0 = arith.constant 0 : i32
    %c0_i32_1 = arith.constant 0 : i32
    return %arg1, %c0_i32, %c0_i32_0 : i32, i32, i32
  }
  func.func @transform_4(%arg0: i32, %arg1: i32) -> (i32, i32, i32) {
    %c0_i32 = arith.constant 0 : i32
    %c0_i32_0 = arith.constant 0 : i32
    %c0_i32_1 = arith.constant 0 : i32
    return %arg1, %c0_i32, %c0_i32_0 : i32, i32, i32
  }
  func.func @transform_5(%arg0: i32, %arg1: i32) -> (i32, i32, i32) {
    %c0_i32 = arith.constant 0 : i32
    %c0_i32_0 = arith.constant 0 : i32
    %c0_i32_1 = arith.constant 0 : i32
    return %arg1, %c0_i32, %c0_i32_0 : i32, i32, i32
  }
  func.func @transform_6(%arg0: i32, %arg1: i32) -> (i32, i32, i32) {
    %c0_i32 = arith.constant 0 : i32
    %c0_i32_0 = arith.constant 0 : i32
    %c0_i32_1 = arith.constant 0 : i32
    return %arg1, %c0_i32, %c0_i32_0 : i32, i32, i32
  }
  func.func @transform_7(%arg0: i32, %arg1: i32) -> (i32, i32, i32) {
    %c0_i32 = arith.constant 0 : i32
    %c0_i32_0 = arith.constant 0 : i32
    %c0_i32_1 = arith.constant 0 : i32
    return %arg1, %c0_i32, %c0_i32_0 : i32, i32, i32
  }
  func.func @transform_8(%arg0: i32, %arg1: i32) -> (i32, i32, i32) {
    %c0_i32 = arith.constant 0 : i32
    %c0_i32_0 = arith.constant 0 : i32
    %c0_i32_1 = arith.constant 0 : i32
    return %arg1, %c0_i32, %c0_i32_0 : i32, i32, i32
  }
  func.func @transform_9(%arg0: i32, %arg1: i32) -> (i32, i32, i32) {
    %c0_i32 = arith.constant 0 : i32
    %c0_i32_0 = arith.constant 0 : i32
    %c0_i32_1 = arith.constant 0 : i32
    return %arg1, %c0_i32, %c0_i32_0 : i32, i32, i32
  }
  func.func @transform_10(%arg0: i32, %arg1: i32) -> (i32, i32, i32) {
    %c0_i32 = arith.constant 0 : i32
    %c0_i32_0 = arith.constant 0 : i32
    %c0_i32_1 = arith.constant 0 : i32
    return %arg1, %c0_i32, %c0_i32_0 : i32, i32, i32
  }
  func.func @transform_11(%arg0: i32, %arg1: i32) -> (i32, i32, i32) {
    %c0_i32 = arith.constant 0 : i32
    %c0_i32_0 = arith.constant 0 : i32
    %c0_i32_1 = arith.constant 0 : i32
    return %arg1, %c0_i32, %c0_i32_0 : i32, i32, i32
  }
  func.func @transform_12(%arg0: i32, %arg1: i32) -> (i32, i32, i32) {
    %c0_i32 = arith.constant 0 : i32
    %c0_i32_0 = arith.constant 0 : i32
    %c0_i32_1 = arith.constant 0 : i32
    return %arg0, %c0_i32, %c0_i32_0 : i32, i32, i32
  }
}

</mosaic_0001>

<bundles_post_ra>
// kernel: tpu_custom_call.1
= control target key start
LH: loop header
LB: loop body
LE: loop exit
PB: predicated region body
PF: predicated region fallthrough
CT: control target
= control target key end

     0   :  { %s5072_s0 = inlined_call_operand.hbm [shape: f32[2,32,128], index: 0, kind: input, shape index: {}]   ;;  %s5073_s1 = inlined_call_operand.vmem [shape: f32[2,1,128], index: 1, kind: input, shape index: {}]   ;;  %s5074_s2 = inlined_call_operand.hbm [shape: f32[2,1,128], index: 2, kind: input, shape index: {}]   ;;  %s5075_s3 = inlined_call_operand.hbm [shape: f32[2,128,384], index: 3, kind: input, shape index: {}]   ;;  %s5076_s4 = inlined_call_operand.hbm [shape: f32[2,128,128], index: 4, kind: input, shape index: {}]   ;;  %s5077_s5 = inlined_call_operand.vmem [shape: f32[2,1,128], index: 5, kind: input, shape index: {}]   ;;  %s5078_s6 = inlined_call_operand.vmem [shape: f32[2,1,128], index: 6, kind: input, shape index: {}]   ;;  %s5079_s7 = inlined_call_operand.vmem [shape: f32[2,1,128], index: 7, kind: input, shape index: {}]   ;;  %s5080_s8 = inlined_call_operand.hbm [shape: f32[2,128,256], index: 8, kind: input, shape index: {}]   ;;  %s5081_s9 = inlined_call_operand.vmem [shape: f32[2,1,256], index: 9, kind: input, shape index: {}]   ;;  %s5082_s10 = inlined_call_operand.hbm [shape: f32[2,256,128], index: 10, kind: input, shape index: {}]   ;;  %s5083_s11 = inlined_call_operand.vmem [shape: f32[2,1,128], index: 11, kind: input, shape index: {}]   ;;  %s5084_s12 = inlined_call_operand.hbm [shape: f32[2,32,128], index: 12, kind: output, shape index: {}]  }
   0x1   :  { %5121 = sst [smem:[#allocation49_spill]] %s5072_s0 }
   0x2   :  { %5122 = sst [smem:[#allocation50_spill]] %s5074_s2 }
   0x3   :  { %5123 = sst [smem:[#allocation51_spill]] %s5075_s3 }
   0x4   :  { %5124 = sst [smem:[#allocation52_spill]] %s5076_s4 }
   0x5   :  { %5125 = sst [smem:[#allocation53_spill]] %s5078_s6 }
   0x6   :  { %5126 = sst [smem:[#allocation54_spill]] %s5079_s7 }
   0x7   :  { %5127 = sst [smem:[#allocation55_spill]] %s5080_s8 }
   0x8   :  { %5128 = sst [smem:[#allocation56_spill]] %s5081_s9 }
   0x9   :  { %5129 = sst [smem:[#allocation57_spill]] %s5082_s10 }
   0xa   :  { %5130 = sst [smem:[#allocation58_spill]] %s5083_s11 }
   0xb   :  { %5131 = sst [smem:[#allocation59_spill]] %s5084_s12 }
   0xc   :  { %17 = vsyncpa [#allocation4], 0 }
   0xd   :  { %18 = vsyncpa [#allocation7], 0 }
   0xe   :  { %20 = vsyncpa [#allocation7 + $0x1], 0 }
   0xf   :  { %21 = vsyncpa [#allocation10], 0 }
  0x10   :  { %23 = vsyncpa [#allocation10 + $0x1], 0 }
  0x11   :  { %24 = vsyncpa [#allocation13], 0 }
  0x12   :  { %26 = vsyncpa [#allocation13 + $0x1], 0 }
  0x13   :  { %27 = vsyncpa [#allocation5], 0  ;;  %s3941_s21 = smov 0   ;;  %s3943_s22 = smov 0  }
  0x14   :  { %s3945_s23 = smov 0   ;;  %s3947_s24 = smov 0  }
  0x15   :  { %s3949_s25 = smov 0   ;;  %s3951_s26 = smov 0  }
  0x16 LB: > { %5132 = sst [smem:[#allocation20_spill]] %s3846_s23  ;;  %s42_s27 = sadd.s32 1, %s3854_s25  ;;  %s3858_s26 = sphi %s3951_s26, %s33_s26   ;;  %s3854_s25 = sphi %s3949_s25, %s5220_s25   ;;  %s3850_s24 = sphi %s3947_s24, %s5219_s24   ;;  %s3846_s23 = sphi %s3945_s23, %s5218_s23   ;;  %s3842_s22 = sphi %s3943_s22, %s5222_s22   ;;  %s3838_s21 = sphi %s3941_s21, %s5221_s21  }
  0x17   : > { %5133 = sst [smem:[#allocation21_spill]] %s3854_s25  ;;  %s104_s28 = sadd.s32 1, %s3846_s23 }
  0x18   : > { %5134 = sst [smem:[#allocation22_spill]] %s3858_s26  ;;  %p43_p0 = scmp.ge.s32.totalorder %s42_s27, 2 }
  0x19   : > { %p111_p1 = scmp.ne.s32.totalorder %s3846_s23, %s3842_s22  ;;  %p112_p2 = scmp.eq.s32.totalorder %s3858_s26, 0 }
  0x1a   : > { %s5224_s27 = smov (%p43_p0, %s42_s27), 0  ;;  %p3389_p4 = scmp.lt.s32.totalorder %s3858_s26, 2 }
  0x1b   : > { %5135 = sst [smem:[#allocation23_spill]] %s5224_s27  ;;  %p113_p3 = por %p112_p2, %p111_p1 }
  0x1c   : > { %s101_s29 = ssub.s32 %s3854_s25, %s5224_s27  ;;  %s3983_s13 = sand.u32 1, %s3846_s23  }
  0x1d   : > { %p102_p5 = scmp.eq.s32.totalorder %s101_s29, 0  ;;  %s2835_s14 = sshll.u32 %s3854_s25, 4 }
  0x1e   : > { %s5137_s2 = sld [smem:[#allocation50_spill]]  ;;  %s427_s19 = scalar_lea.vmem [#allocation6], %s3983_s13 }
  0x1f   : > { %s3987_s15 = scalar_select %p102_p5, %s3846_s23, %s104_s28  }
  0x20   : > { %s434_s20 = sshll.u32 %s427_s19, 4  ;;  %p3995_p6 = pnand %p3389_p4, %p113_p3  ;;  %s3999_s20 = int_to_ptr.vmem [resolvable:$true] %s434_s20 }
  0x21   : > { %5136 = sst [smem:[#allocation24_spill]] %s3987_s15  ;;  %s5139_s28 = sand.u32 1, %s3858_s26  }
  0x22   : > { %s5138_s30 = scalar_select %p3995_p6, 1, 0 }
  0x23   : > { %s4003_s29 = scalar_lea.sflag [#allocation7], %s5139_s28  ;;  %p4009_p8 = pneg %p3995_p6 }
  0x24   : > { %s3992_s18 = scalar_lea.hbm %s5137_s2, %s2835_s14  ;;  %s3593_s19 = scalar_lea.hbm %s5137_s2, 32 }
  0x25   : > { %s3588_s27 = scalar_lea.hbm %s3992_s18, 16  ;;  %p3594_p11 = scmp.lt.u32.totalorder %s3992_s18, %s5137_s2 }
  0x26   : > { %p3589_p7 = scmp.ne.s32.totalorder %s3992_s18, %s3588_s27  ;;  %p3595_p12 = scmp.lt.u32.totalorder %s3593_s19, %s3588_s27 }
  0x27   : > { %s5140_s14 = scalar_select %p4009_p8, 1, 0 }
  0x28   : > { %p3591_p9 = pnand %p4009_p8, %p3589_p7  ;;  %p3596_p13 = por %p3595_p12, %p3594_p11 }
  0x29   : > { %p3597_p0 = scmp.lt.u32.totalorder %s3588_s27, %s3992_s18 }
  0x2a   : > { %p3592_p10 = pneg %p3591_p9 }
  0x2b   : > { %p3598_p1 = por %p3597_p0, %p3596_p13 }
  0x2d   : > { %p3599_p2 = pnand %p3598_p1, %p3592_p10 }
  0x2f   : > { %3602 = shalt.err (!%p3599_p2)
}
  0x30   : > { %s3603_s28 = scalar_lea.vmem %s3999_s20, 16  ;;  %s3860_s16 = smov [#allocation6]  }
  0x31   : > { %p3604_p3 = scmp.ne.s32.totalorder %s3999_s20, %s3603_s28  ;;  %s3608_s17 = sshll.u32 %s3860_s16, 4  ;;  %s3609_s17 = int_to_ptr.vmem [resolvable:$false] %s3608_s17 }
  0x32   : > { %s3610_s23 = scalar_lea.vmem %s3609_s17, 32  ;;  %p3611_p7 = scmp.lt.s32.totalorder %s3999_s20, %s3609_s17 }
  0x33   : > { %p3606_p4 = pnand %p3604_p3, %p4009_p8  ;;  %p3612_p9 = scmp.lt.s32.totalorder %s3610_s23, %s3603_s28 }
  0x35   : > { %p3607_p5 = pneg %p3606_p4  ;;  %p3613_p11 = por %p3612_p9, %p3611_p7 }
  0x37   : > { %p3614_p12 = pnand %p3613_p11, %p3607_p5 }
  0x39   : > { %3617 = shalt.err (!%p3614_p12)
}
  0x3a   : > { %3375 = dma.hbm_to_vmem [thread:$0]  (!%p3995_p6), %s3992_s18, 16, %s3999_s20, %s4003_s29  }
  0x3b   : > { %s2837_s27 = sshll.u32 %s3983_s13, 7  ;;  %s2872_s15 = sshll.u32 %s3854_s25, 11 }
  0x3c   : > { %s5141_s4 = sld [smem:[#allocation52_spill]]  ;;  %s466_s28 = scalar_lea.vmem [#allocation9], %s2837_s27 }
  0x3d   : > { %s473_s23 = sshll.u32 %s466_s28, 4  ;;  %s5142_s2 = sand.u32 1, %s3858_s26   ;;  %s4040_s23 = int_to_ptr.vmem [resolvable:$true] %s473_s23 }
  0x3e   : > { %s4044_s12 = scalar_lea.sflag [#allocation10], %s5142_s2 }
  0x42   : > { %s4038_s17 = scalar_lea.hbm %s5141_s4, %s2872_s15  ;;  %s3623_s15 = scalar_lea.hbm %s5141_s4, 4096 }
  0x43   : > { %s3618_s9 = scalar_lea.hbm %s4038_s17, 2048  ;;  %p3624_p1 = scmp.lt.u32.totalorder %s4038_s17, %s5141_s4 }
  0x44   : > { %p3619_p10 = scmp.ne.s32.totalorder %s4038_s17, %s3618_s9  ;;  %p3625_p2 = scmp.lt.u32.totalorder %s3623_s15, %s3618_s9 }
  0x45   : > { %p3627_p4 = scmp.lt.u32.totalorder %s3618_s9, %s4038_s17 }
  0x46   : > { %p3621_p13 = pnand %p3619_p10, %p4009_p8  ;;  %p3626_p3 = por %p3625_p2, %p3624_p1 }
  0x48   : > { %p3622_p0 = pneg %p3621_p13  ;;  %p3628_p5 = por %p3627_p4, %p3626_p3 }
  0x4a   : > { %p3629_p7 = pnand %p3628_p5, %p3622_p0 }
  0x4c   : > { %3632 = shalt.err (!%p3629_p7)
}
  0x4d   : > { %s3633_s2 = scalar_lea.vmem %s4040_s23, 2048  ;;  %s3861_s27 = smov [#allocation9]  }
  0x4e   : > { %p3634_p9 = scmp.ne.s32.totalorder %s4040_s23, %s3633_s2  ;;  %s3638_s28 = sshll.u32 %s3861_s27, 4  ;;  %s3639_s28 = int_to_ptr.vmem [resolvable:$false] %s3638_s28 }
  0x4f   : > { %s3640_s18 = scalar_lea.vmem %s3639_s28, 4096  ;;  %p3641_p10 = scmp.lt.s32.totalorder %s4040_s23, %s3639_s28 }
  0x50   : > { %p3636_p11 = pnand %p3634_p9, %p4009_p8  ;;  %p3642_p13 = scmp.lt.s32.totalorder %s3640_s18, %s3633_s2 }
  0x52   : > { %p3637_p12 = pneg %p3636_p11  ;;  %p3643_p1 = por %p3642_p13, %p3641_p10 }
  0x54   : > { %p3644_p2 = pnand %p3643_p1, %p3637_p12 }
  0x56   : > { %3647 = shalt.err (!%p3644_p2)
}
  0x57   : > { %s5088_s9 = smov 128   ;;  %s5090_s20 = smov 8  }
  0x58   : > { %3381 = dma.hbm_to_vmem [thread:$0]  (!%p3995_p6), %s4038_s17, 2048, %s4040_s23, %s4044_s12, %s5088_s9, %s5088_s9, %s5090_s20  }
  0x59   : > { %s4072_s15 = sadd.s32 4294967295, %s3858_s26   ;;  %p117_p0 = scmp.ne.s32.totalorder %s3842_s22, %s3838_s21 }
  0x5a   : > { %p5093_p3 = scmp.eq.s32.totalorder %s4072_s15, 0  ;;  %p2832_p4 = scmp.ge.s32.totalorder %s3858_s26, 1 }
  0x5b   : > { %p388_p5 = scmp.lt.s32.totalorder %s3858_s26, 3  ;;  %s3864_s17 = smov [#allocation3]  }
  0x5c   : > { %p4081_p7 = por %p5093_p3, %p117_p0  ;;  %s404_s23 = sshll.u32 %s3864_s17, 4  ;;  %s405_s23 = int_to_ptr.vmem [resolvable:$true] %s404_s23 }
  0x5d   : > { %p4085_p9 = pnand %p2832_p4, %p388_p5  ;;  %s3347_s2 = smul.u32 384, %s3983_s13 }
  0x5e   : > { %s5143_s19 = scalar_select %p4081_p7, 1, 0 }
  0x5f   : > { %s5144_s16 = scalar_select %p4085_p9, 1, 0 }
  0x60   : > { %p3368_p11 = pneg %p4085_p9  ;;  %s3348_s21 = smul.u32 6144, %s3854_s25 }
  0x61   : > { %s445_s28 = scalar_lea.vmem [#allocation8], %s3347_s2  ;;  %s5146_s3 = sld [smem:[#allocation51_spill]] }
  0x62   : > { %p4095_p12 = pnand %p3368_p11, %p5093_p3  ;;  %s452_s18 = sshll.u32 %s445_s28, 4  ;;  %s4104_s18 = int_to_ptr.vmem [resolvable:$true] %s452_s18 }
  0x63   : > { %s5147_s0 = sld [smem:[#allocation49_spill]] }
  0x64   : > { %p3650_p13 = pneg %p4095_p12 }
  0x67   : > { %s4102_s4 = scalar_lea.hbm %s5146_s3, %s3348_s21 }
  0x69   : > { %s3648_s11 = scalar_lea.hbm %s5147_s0, 1024 }
  0x6a   : > { %p3649_p10 = scmp.ne.s32.totalorder %s5147_s0, %s3648_s11  ;;  %p3655_p0 = scmp.lt.u32.totalorder %s3648_s11, %s5147_s0 }
  0x6c   : > { %p3651_p1 = pnand %p3650_p13, %p3649_p10 }
  0x6e   : > { %p3652_p2 = pneg %p3651_p1 }
  0x70   : > { %p3657_p4 = pnand %p3655_p0, %p3652_p2 }
  0x72   : > { %3660 = shalt.err (!%p3657_p4)
}
  0x73   : > { %s3661_s9 = scalar_lea.vmem %s405_s23, 1024  ;;  %p3669_p7 = scmp.lt.s32.totalorder %s405_s23, %s405_s23 }
  0x74   : > { %p3662_p5 = scmp.ne.s32.totalorder %s405_s23, %s3661_s9  ;;  %p3670_p9 = scmp.lt.s32.totalorder %s3661_s9, %s3661_s9 }
  0x76   : > { %p3664_p11 = pnand %p3662_p5, %p3650_p13  ;;  %p3671_p6 = por %p3670_p9, %p3669_p7 }
  0x78   : > { %p3665_p3 = pneg %p3664_p11 }
  0x7a   : > { %p3672_p8 = pnand %p3671_p6, %p3665_p3 }
  0x7c   : > { %3675 = shalt.err (!%p3672_p8)
}
  0x7d   : > { %s5148_s6 = smov 8   ;;  %s5149_s7 = smov 128  }
  0x7e   : > { %3371 = dma.hbm_to_vmem [thread:$0]  (!%p4095_p12), %s5147_s0, 1024, %s405_s23, [#allocation4], %s5149_s7, %s5149_s7, %s5148_s6  }
  0x7f   : > { %s2840_s11 = sshll.u32 %s3983_s13, 8  ;;  %s3676_s21 = scalar_lea.hbm %s4102_s4, 6144 }
  0x80   : > { %p3677_p7 = scmp.ne.s32.totalorder %s4102_s4, %s3676_s21  ;;  %p5150_p6 = scmp.ne.s32.totalorder %s5140_s14, 0 }
  0x81   : > { %s3681_s2 = scalar_lea.hbm %s5146_s3, 12288  ;;  %p3682_p9 = scmp.lt.u32.totalorder %s4102_s4, %s5146_s3 }
  0x82   : > { %p3679_p8 = pnand %p3677_p7, %p5150_p6  ;;  %p3683_p10 = scmp.lt.u32.totalorder %s3681_s2, %s3676_s21 }
  0x83   : > { %p3685_p1 = scmp.lt.u32.totalorder %s3676_s21, %s4102_s4 }
  0x84   : > { %p3680_p3 = pneg %p3679_p8  ;;  %p3684_p13 = por %p3683_p10, %p3682_p9 }
  0x86   : > { %p3686_p2 = por %p3685_p1, %p3684_p13 }
  0x88   : > { %p3687_p0 = pnand %p3686_p2, %p3680_p3 }
  0x8a   : > { %3690 = shalt.err (!%p3687_p0)
}
  0x8b   : > { %s3691_s23 = scalar_lea.vmem %s4104_s18, 6144  ;;  %s3865_s26 = smov [#allocation8]  }
  0x8c   : > { %p3692_p12 = scmp.ne.s32.totalorder %s4104_s18, %s3691_s23  ;;  %s3696_s20 = sshll.u32 %s3865_s26, 4  ;;  %s3697_s20 = int_to_ptr.vmem [resolvable:$false] %s3696_s20 }
  0x8d   : > { %s3698_s27 = scalar_lea.vmem %s3697_s20, 12288  ;;  %p3699_p11 = scmp.lt.s32.totalorder %s4104_s18, %s3697_s20 }
  0x8e   : > { %p3694_p4 = pnand %p3692_p12, %p5150_p6  ;;  %p3700_p7 = scmp.lt.s32.totalorder %s3698_s27, %s3691_s23 }
  0x90   : > { %p3695_p5 = pneg %p3694_p4  ;;  %p3701_p8 = por %p3700_p7, %p3699_p11 }
  0x92   : > { %p3702_p9 = pnand %p3701_p8, %p3695_p5 }
  0x94   : > { %3705 = shalt.err (!%p3702_p9)
}
  0x95   : > { %s3866_s21 = smov 384   ;;  %s3867_s17 = smov 24  }
  0x96   : > { %p5151_p3 = scmp.ne.s32.totalorder %s5138_s30, 0  ;;  %s2873_s2 = sshll.u32 %s3854_s25, 12 }
  0x97   : > { %s5152_s8 = sld [smem:[#allocation55_spill]]  ;;  %s505_s26 = scalar_lea.vmem [#allocation11], %s2840_s11 }
  0x98   : > { %3378 = dma.hbm_to_vmem [thread:$0]  (!%p5151_p3), %s4102_s4, 6144, %s4104_s18, %s4003_s29, %s3866_s21, %s3866_s21, %s3867_s17  }
  0x99   : > { %s512_s20 = sshll.u32 %s505_s26, 4  ;;  %s4158_s20 = int_to_ptr.vmem [resolvable:$true] %s512_s20 }
  0x9d   : > { %s4154_s23 = scalar_lea.hbm %s5152_s8, %s2873_s2  ;;  %s3711_s18 = scalar_lea.hbm %s5152_s8, 8192 }
  0x9e   : > { %s3706_s27 = scalar_lea.hbm %s4154_s23, 4096  ;;  %p3712_p2 = scmp.lt.u32.totalorder %s4154_s23, %s5152_s8 }
  0x9f   : > { %p3707_p10 = scmp.ne.s32.totalorder %s4154_s23, %s3706_s27  ;;  %p3713_p0 = scmp.lt.u32.totalorder %s3711_s18, %s3706_s27 }
  0xa0   : > { %p3715_p4 = scmp.lt.u32.totalorder %s3706_s27, %s4154_s23 }
  0xa1   : > { %p3709_p13 = pnand %p3707_p10, %p5150_p6  ;;  %p3714_p12 = por %p3713_p0, %p3712_p2 }
  0xa3   : > { %p3710_p1 = pneg %p3709_p13  ;;  %p3716_p5 = por %p3715_p4, %p3714_p12 }
  0xa5   : > { %p3717_p11 = pnand %p3716_p5, %p3710_p1 }
  0xa7   : > { %3720 = shalt.err (!%p3717_p11)
}
  0xa8   : > { %s3721_s28 = scalar_lea.vmem %s4158_s20, 4096  ;;  %s3868_s9 = smov [#allocation11]  }
  0xa9   : > { %p3722_p7 = scmp.ne.s32.totalorder %s4158_s20, %s3721_s28  ;;  %s3726_s26 = sshll.u32 %s3868_s9, 4  ;;  %s3727_s26 = int_to_ptr.vmem [resolvable:$false] %s3726_s26 }
  0xaa   : > { %s3728_s4 = scalar_lea.vmem %s3727_s26, 8192  ;;  %p3729_p10 = scmp.lt.s32.totalorder %s4158_s20, %s3727_s26 }
  0xab   : > { %p3724_p8 = pnand %p3722_p7, %p5150_p6  ;;  %p3730_p13 = scmp.lt.s32.totalorder %s3728_s4, %s3721_s28 }
  0xad   : > { %p3725_p9 = pneg %p3724_p8  ;;  %p3731_p2 = por %p3730_p13, %p3729_p10 }
  0xaf   : > { %p3732_p0 = pnand %p3731_p2, %p3725_p9 }
  0xb1   : > { %3735 = shalt.err (!%p3732_p0)
}
  0xb2   : > { %s3869_s27 = smov 256   ;;  %s3870_s29 = smov 16  }
  0xb3   : > { %3384 = dma.hbm_to_vmem [thread:$0]  (!%p5151_p3), %s4154_s23, 4096, %s4158_s20, %s4044_s12, %s3869_s27, %s3869_s27, %s3870_s29  }
  0xb4   : > { %s5153_s10 = sld [smem:[#allocation57_spill]]  ;;  %s533_s28 = scalar_lea.vmem [#allocation12], %s2840_s11 }
  0xb5   : > { %s540_s9 = sshll.u32 %s533_s28, 4  ;;  %s530_s26 = scalar_lea.sflag [#allocation13], %s3983_s13  ;;  %s4191_s9 = int_to_ptr.vmem [resolvable:$true] %s540_s9 }
  0xba   : > { %s4187_s17 = scalar_lea.hbm %s5153_s10, %s2873_s2  ;;  %s3741_s2 = scalar_lea.hbm %s5153_s10, 8192 }
  0xbb   : > { %s3736_s4 = scalar_lea.hbm %s4187_s17, 4096  ;;  %p3742_p5 = scmp.lt.u32.totalorder %s4187_s17, %s5153_s10 }
  0xbc   : > { %p3737_p1 = scmp.ne.s32.totalorder %s4187_s17, %s3736_s4  ;;  %p3743_p11 = scmp.lt.u32.totalorder %s3741_s2, %s3736_s4 }
  0xbd   : > { %p3745_p8 = scmp.lt.u32.totalorder %s3736_s4, %s4187_s17 }
  0xbe   : > { %p3739_p12 = pnand %p3737_p1, %p5150_p6  ;;  %p3744_p7 = por %p3743_p11, %p3742_p5 }
  0xc0   : > { %p3740_p4 = pneg %p3739_p12  ;;  %p3746_p9 = por %p3745_p8, %p3744_p7 }
  0xc2   : > { %p3747_p10 = pnand %p3746_p9, %p3740_p4 }
  0xc4   : > { %3750 = shalt.err (!%p3747_p10)
}
  0xc5   : > { %s3751_s11 = scalar_lea.vmem %s4191_s9, 4096  ;;  %s3871_s29 = smov [#allocation12]  }
  0xc6   : > { %p3752_p13 = scmp.ne.s32.totalorder %s4191_s9, %s3751_s11  ;;  %s3756_s18 = sshll.u32 %s3871_s29, 4  ;;  %s3757_s18 = int_to_ptr.vmem [resolvable:$false] %s3756_s18 }
  0xc7   : > { %s3758_s21 = scalar_lea.vmem %s3757_s18, 8192  ;;  %p3759_p1 = scmp.lt.s32.totalorder %s4191_s9, %s3757_s18 }
  0xc8   : > { %p3754_p2 = pnand %p3752_p13, %p5150_p6  ;;  %p3760_p12 = scmp.lt.s32.totalorder %s3758_s21, %s3751_s11 }
  0xca   : > { %p3755_p0 = pneg %p3754_p2  ;;  %p3761_p5 = por %p3760_p12, %p3759_p1 }
  0xcc   : > { %p3762_p11 = pnand %p3761_p5, %p3755_p0 }
  0xce   : > { %3765 = shalt.err (!%p3762_p11)
}
  0xcf   : > { %3387 = dma.hbm_to_vmem [thread:$0]  (!%p5151_p3), %s4187_s17, 4096, %s4191_s9, %s530_s26, %s5149_s7, %s5149_s7, %s5148_s6  }
  0xd0   : > { %p5154_p6 = scmp.ne.s32.totalorder %s5144_s16, 0 }
  0xd2   : > { %558 = sbr.rel (%p5154_p6) target bundleno = 2360 (0x938), region = 68 }
  0xd9   : > { %p5155_p4 = scmp.eq.s32.totalorder %s4072_s15, 0 }
  0xdb   : > { %3817 = dma.done.wait (%p5155_p4), [#allocation4], 1024   ;;  %p5156_p7 = pmov %p5155_p4 }
  0xdc   : > { %s564_s30 = sand.u32 1, %s4072_s15   ;;  %s4228_s14 = sand.u32 1, %s3842_s22  }
  0xdd   : > { %3819 = vsyncadd (%p5156_p7), [#allocation4], 4294966272  ;;  %s565_s13 = scalar_lea.sflag [#allocation7], %s564_s30  ;;  %p5157_p8 = scmp.ne.s32.totalorder %s5143_s19, 0 }
  0xdf   : > { %3821 = dma.done.wait (%p5157_p8), %s565_s13, 6160  }
  0xe0   : > { %3823 = vsyncadd (%p5157_p8), %s565_s13, 4294961136  ;;  %s3349_s16 = smul.u32 384, %s4228_s14  ;;  %s2848_s6 = sshll.u32 %s4228_s14, 7 }
  0xe1   : > { %s582_s17 = scalar_lea.sflag [#allocation10], %s564_s30  ;;  %s4239_s9 = scalar_lea.vmem [#allocation9], %s2848_s6 }
  0xe2   : > { %s4237_s7 = scalar_lea.vmem [#allocation8], %s3349_s16 }
  0xe3   : > { %3825 = dma.done.wait (%p5157_p8), %s582_s17, 6144  }
  0xe4   : > { %3827 = vsyncadd (%p5157_p8), %s582_s17, 4294961152  ;;  %s2849_s26 = sshll.u32 %s4228_s14, 8  ;;  %s600_s12 = scalar_lea.sflag [#allocation13], %s4228_s14 }
  0xe5   : > { %s4246_s4 = scalar_lea.vmem [#allocation11], %s2849_s26  ;;  %s4249_s23 = scalar_lea.vmem [#allocation12], %s2849_s26 }
  0xe6   : > { %3829 = dma.done.wait (%p5157_p8), %s600_s12, 4096  }
  0xe7   : > { %3831 = vsyncadd (%p5157_p8), %s600_s12, 4294963200  ;;  %p678_p3 = scmp.lt.s32.totalorder %s3850_s24, 1  ;;  %s5158_s13 = sld [smem:[#allocation53_spill]] }
  0xe8   : > { %s5159_s26 = sld [smem:[#allocation54_spill]]  ;;  %s5160_s0 = sld [smem:[#allocation58_spill]] }
  0xe9   : > { %s4257_s2 = scalar_select %p678_p3, %s3850_s24, 1 }
  0xea   : > { %s5161_s11 = sld [smem:[#allocation56_spill]]  ;;  %p2852_p9 = scmp.ne.s32.totalorder %s3850_s24, 0 }
  0xeb   : > { %s683_s19 = scalar_lea.vmem %s5077_s5, %s4257_s2  ;;  %s2851_s28 = sshll.u32 %s4257_s2, 1  ;;  %v702_v0 = vld [vmem:[#allocation3] sm:$0xff] (!%p2852_p9)  ;;  %v703_v1 = vld [vmem:[#allocation3 + $0x8] sm:$0xff] (!%p2852_p9)  ;;  %v704_v2 = vld [vmem:[#allocation3 + $0x10] sm:$0xff] (!%p2852_p9) }
  0xec   : > { %701 = sbr.rel (%p2852_p9) target bundleno = 243 (0xf3), region = 96  ;;  %710 = vst [vmem:[#allocation2] sm:$0xff] (!%p2852_p9), %v702_v0  ;;  %711 = vst [vmem:[#allocation2 + $0x8] sm:$0xff] (!%p2852_p9), %v703_v1  ;;  %v705_v3 = vld [vmem:[#allocation3 + $0x18] sm:$0xff] (!%p2852_p9)  ;;  %v706_v4 = vld [vmem:[#allocation3 + $0x20] sm:$0xff] (!%p2852_p9) }
  0xed   : > { %s686_s16 = scalar_lea.vmem %s5158_s13, %s4257_s2  ;;  %712 = vst [vmem:[#allocation2 + $0x10] sm:$0xff] (!%p2852_p9), %v704_v2  ;;  %v707_v5 = vld [vmem:[#allocation3 + $0x28] sm:$0xff] (!%p2852_p9)  ;;  %713 = vst [vmem:[#allocation2 + $0x18] sm:$0xff] (!%p2852_p9), %v705_v3  ;;  %v708_v6 = vld [vmem:[#allocation3 + $0x30] sm:$0xff] (!%p2852_p9) }
  0xee   : > { %s689_s12 = scalar_lea.vmem %s5159_s26, %s4257_s2  ;;  %s696_s3 = scalar_lea.vmem %s5160_s0, %s4257_s2  ;;  %714 = vst [vmem:[#allocation2 + $0x20] sm:$0xff] (!%p2852_p9), %v706_v4  ;;  %715 = vst [vmem:[#allocation2 + $0x28] sm:$0xff] (!%p2852_p9), %v707_v5  ;;  %v709_v7 = vld [vmem:[#allocation3 + $0x38] sm:$0xff] (!%p2852_p9) }
  0xef   : > { %716 = vst [vmem:[#allocation2 + $0x30] sm:$0xff] (!%p2852_p9), %v708_v6  ;;  %717 = vst [vmem:[#allocation2 + $0x38] sm:$0xff] (!%p2852_p9), %v709_v7 }
  0xf0   : > { %s4283_s25 = scalar_lea.vmem %s5161_s11, %s2851_s28 }
  0xf3 PF: > { %v4286_v8 = vld [vmem:[#allocation2 + $0x8] sm:$0xff]  ;;  %v4288_v9 = vld [vmem:[#allocation2] sm:$0xff]  ;;  %v863_v19 = vld [vmem:[%s4237_s7 + $0x10] sm:$0xff]  ;;  %s5162_s10 = scalar_lea.vmem %s5073_s1, %s4257_s2  ;;  %s5163_s28 = scalar_lea.vmem [#allocation6], %s4228_s14  ;;  %vm1305_vm0 = vcmask 261120  }
  0xf4   : > { %730 = vadd.xlane.f32.xlu1 %v4286_v8  ;;  %728 = vadd.xlane.f32.xlu0 %v4288_v9  ;;  %v754_v10 = vmul.f32 %v4286_v8, %v4286_v8  ;;  %v753_v11 = vmul.f32 %v4288_v9, %v4288_v9  ;;  %v4296_v12 = vld [vmem:[#allocation2 + $0x10] sm:$0xff]  ;;  %v865_v14 = vld [vmem:[%s4237_s7 + $0x20] sm:$0xff]  ;;  %v864_v16 = vld [vmem:[%s4237_s7 + $0x18] sm:$0xff]  ;;  %p2867_p10 = scmp.ne.s32.totalorder %s3850_s24, 1 }
  0xf5   : > { %v862_v13 = vld [vmem:[%s4237_s7 + $0x8] sm:$0xff]  ;;  %v861_v15 = vld [vmem:[%s4237_s7] sm:$0xff]  ;;  %v868_v21 = vld [vmem:[%s4237_s7 + $0x38] sm:$0xff]  ;;  %v755_v22 = vmul.f32 %v4296_v12, %v4296_v12 }
  0xf6   : > { %v3155_v17 = vpack.c.bf16 %v865_v14, %v862_v13  ;;  %v3157_v18 = vpack.c.bf16 %v864_v16, %v861_v15  ;;  %v866_v20 = vld [vmem:[%s4237_s7 + $0x28] sm:$0xff]  ;;  %v871_v24 = vld [vmem:[%s4237_s7 + $0x50] sm:$0xff]  ;;  %v4313_v28 = vld [vmem:[#allocation2 + $0x20] sm:$0xff] }
  0xf7   : > { %v3187_v23 = vpack.c.bf16 %v866_v20, %v863_v19  ;;  %v4308_v25 = vld [vmem:[#allocation2 + $0x18] sm:$0xff]  ;;  %v3159_v26 = vpack.c.bf16 %v871_v24, %v868_v21  ;;  %v870_v30 = vld [vmem:[%s4237_s7 + $0x48] sm:$0xff]  ;;  %v869_v31 = vld [vmem:[%s4237_s7 + $0x40] sm:$0xff]  ;;  %v757_v32 = vmul.f32 %v4313_v28, %v4313_v28 }
  0xf8   : > { %763 = vadd.xlane.f32.xlu1 %v754_v10  ;;  %761 = vadd.xlane.f32.xlu0 %v753_v11  ;;  %v756_v27 = vmul.f32 %v4308_v25, %v4308_v25  ;;  %v867_v29 = vld [vmem:[%s4237_s7 + $0x30] sm:$0xff]  ;;  %v872_v34 = vld [vmem:[%s4237_s7 + $0x58] sm:$0xff]  ;;  %v4322_v35 = vld [vmem:[#allocation2 + $0x28] sm:$0xff] }
  0xf9   : > { %3156 = vmatprep.subr.bf16.mxu0 %v3155_v17  ;;  %3188 = vmatprep.subr.bf16.mxu1 %v3187_v23  ;;  %v3161_v33 = vpack.c.bf16 %v870_v30, %v867_v29  ;;  %v3191_v36 = vpack.c.bf16 %v872_v34, %v869_v31  ;;  %v874_v37 = vld [vmem:[%s4237_s7 + $0x68] sm:$0xff]  ;;  %v877_v38 = vld [vmem:[%s4237_s7 + $0x80] sm:$0xff]  ;;  %v758_v40 = vmul.f32 %v4322_v35, %v4322_v35  ;;  %v876_v42 = vld [vmem:[%s4237_s7 + $0x78] sm:$0xff] }
  0xfa   : > { %3158 = vmatpush1.bf16.msra.mxu0 %v3157_v18  ;;  %3190 = vmatpush3.bf16.msra.mxu1 %v3187_v23  ;;  %v3163_v39 = vpack.c.bf16 %v877_v38, %v874_v37  ;;  %v873_v41 = vld [vmem:[%s4237_s7 + $0x60] sm:$0xff]  ;;  %v875_v43 = vld [vmem:[%s4237_s7 + $0x70] sm:$0xff]  ;;  %v878_v46 = vld [vmem:[%s4237_s7 + $0x88] sm:$0xff]  ;;  %v3872_v38 = vmov 0.0  }
  0xfb   : > { %3160 = vmatprep.subr.bf16.mxu0 %v3159_v26  ;;  %3192 = vmatprep.subr.bf16.mxu1 %v3191_v36  ;;  %v4332_v44 = vld [vmem:[#allocation2 + $0x30] sm:$0xff]  ;;  %v3165_v45 = vpack.c.bf16 %v876_v42, %v873_v41  ;;  %v3195_v47 = vpack.c.bf16 %v878_v46, %v875_v43  ;;  %v880_v48 = vld [vmem:[%s4237_s7 + $0x98] sm:$0xff]  ;;  %v881_v54 = vld [vmem:[%s4237_s7 + $0xa0] sm:$0xff] }
  0xfc   : > { %732 = vadd.xlane.f32.xlu0 %v4296_v12  ;;  %765 = vadd.xlane.f32.xlu1 %v755_v22  ;;  %v883_v49 = vld [vmem:[%s4237_s7 + $0xb0] sm:$0xff]  ;;  %v759_v50 = vmul.f32 %v4332_v44, %v4332_v44  ;;  %v882_v53 = vld [vmem:[%s4237_s7 + $0xa8] sm:$0xff]  ;;  %v884_v57 = vld [vmem:[%s4237_s7 + $0xb8] sm:$0xff] }
  0xfd   : > { %v3167_v51 = vpack.c.bf16 %v883_v49, %v880_v48  ;;  %v879_v52 = vld [vmem:[%s4237_s7 + $0x90] sm:$0xff]  ;;  %v3199_v58 = vpack.c.bf16 %v884_v57, %v881_v54  ;;  %v886_v59 = vld [vmem:[%s4237_s7 + $0xc8] sm:$0xff]  ;;  %v889_v60 = vld [vmem:[%s4237_s7 + $0xe0] sm:$0xff]  ;;  %973 = vmatprep.mubr.f32.mxu0 %v3872_v38 }
  0xfe   : > { %3162 = vmatpush1.bf16.msra.mxu0 %v3161_v33  ;;  %3194 = vmatpush3.bf16.msra.mxu1 %v3191_v36  ;;  %v4343_v55 = vld [vmem:[#allocation2 + $0x38] sm:$0xff]  ;;  %v3169_v56 = vpack.c.bf16 %v882_v53, %v879_v52  ;;  %v3171_v62 = vpack.c.bf16 %v889_v60, %v886_v59  ;;  %v885_v63 = vld [vmem:[%s4237_s7 + $0xc0] sm:$0xff]  ;;  %v890_v3 = vld [vmem:[%s4237_s7 + $0xe8] sm:$0xff] }
  0xff   : > { %3164 = vmatprep.subr.bf16.mxu0 %v3163_v39  ;;  %3196 = vmatprep.subr.bf16.mxu1 %v3195_v47  ;;  %v760_v61 = vmul.f32 %v4343_v55, %v4343_v55  ;;  %v888_v0 = vld [vmem:[%s4237_s7 + $0xd8] sm:$0xff]  ;;  %v887_v1 = vld [vmem:[%s4237_s7 + $0xd0] sm:$0xff]  ;;  %v894_v11 = vld [vmem:[%s4237_s7 + $0x108] sm:$0xff] }
 0x100   : > { %734 = vadd.xlane.f32.xlu0 %v4308_v25  ;;  %767 = vadd.xlane.f32.xlu1 %v756_v27  ;;  %v3173_v2 = vpack.c.bf16 %v888_v0, %v885_v63  ;;  %v3203_v4 = vpack.c.bf16 %v890_v3, %v887_v1  ;;  %v892_v5 = vld [vmem:[%s4237_s7 + $0xf8] sm:$0xff]  ;;  %v895_v6 = vld [vmem:[%s4237_s7 + $0x110] sm:$0xff]  ;;  %v893_v13 = vld [vmem:[%s4237_s7 + $0x100] sm:$0xff] }
 0x101   : > { %v3175_v7 = vpack.c.bf16 %v895_v6, %v892_v5  ;;  %v891_v10 = vld [vmem:[%s4237_s7 + $0xf0] sm:$0xff]  ;;  %v896_v15 = vld [vmem:[%s4237_s7 + $0x118] sm:$0xff]  ;;  %v898_v17 = vld [vmem:[%s4237_s7 + $0x128] sm:$0xff] }
 0x102   : > { %3166 = vmatpush1.bf16.msra.mxu0 %v3165_v45  ;;  %3198 = vmatpush3.bf16.msra.mxu1 %v3195_v47  ;;  %v3177_v14 = vpack.c.bf16 %v894_v11, %v891_v10  ;;  %v3207_v16 = vpack.c.bf16 %v896_v15, %v893_v13  ;;  %v901_v18 = vld [vmem:[%s4237_s7 + $0x140] sm:$0xff]  ;;  %v900_v21 = vld [vmem:[%s4237_s7 + $0x138] sm:$0xff]  ;;  %v899_v22 = vld [vmem:[%s4237_s7 + $0x130] sm:$0xff] }
 0x103   : > { %3168 = vmatprep.subr.bf16.mxu0 %v3167_v51  ;;  %3200 = vmatprep.subr.bf16.mxu1 %v3199_v58  ;;  %v3179_v19 = vpack.c.bf16 %v901_v18, %v898_v17  ;;  %v897_v20 = vld [vmem:[%s4237_s7 + $0x120] sm:$0xff]  ;;  %v902_v24 = vld [vmem:[%s4237_s7 + $0x148] sm:$0xff]  ;;  %v904_v27 = vld [vmem:[%s4237_s7 + $0x158] sm:$0xff] }
 0x104   : > { %736 = vadd.xlane.f32.xlu0 %v4313_v28  ;;  %769 = vadd.xlane.f32.xlu1 %v757_v32  ;;  %v3181_v23 = vpack.c.bf16 %v900_v21, %v897_v20  ;;  %v3211_v26 = vpack.c.bf16 %v902_v24, %v899_v22  ;;  %v907_v29 = vld [vmem:[%s4237_s7 + $0x170] sm:$0xff]  ;;  %v906_v32 = vld [vmem:[%s4237_s7 + $0x168] sm:$0xff]  ;;  %v905_v33 = vld [vmem:[%s4237_s7 + $0x160] sm:$0xff] }
 0x105   : > { %v3183_v30 = vpack.c.bf16 %v907_v29, %v904_v27  ;;  %v903_v31 = vld [vmem:[%s4237_s7 + $0x150] sm:$0xff]  ;;  %v908_v36 = vld [vmem:[%s4237_s7 + $0x178] sm:$0xff] }
 0x106   : > { %3170 = vmatpush1.bf16.msra.mxu0 %v3169_v56  ;;  %3202 = vmatpush3.bf16.msra.mxu1 %v3199_v58  ;;  %v3185_v34 = vpack.c.bf16 %v906_v32, %v903_v31  ;;  %v3215_v37 = vpack.c.bf16 %v908_v36, %v905_v33  ;;  %v4386_v21 = vld [vmem:[%s5162_s10] ss:$0 sm:$0xff] }
 0x107   : > { %3172 = vmatprep.subr.bf16.mxu0 %v3171_v62  ;;  %3204 = vmatprep.subr.bf16.mxu1 %v3203_v4  ;;  %v4390_v29 = vld [vmem:[%s5163_s28] ss:$0 sm:$0xff] }
 0x108   : > { %738 = vadd.xlane.f32.xlu0 %v4322_v35  ;;  %771 = vadd.xlane.f32.xlu1 %v758_v40 }
 0x10a   : > { %3174 = vmatpush1.bf16.msra.mxu0 %v3173_v2  ;;  %3206 = vmatpush3.bf16.msra.mxu1 %v3203_v4 }
 0x10b   : > { %3176 = vmatprep.subr.bf16.mxu0 %v3175_v7  ;;  %3208 = vmatprep.subr.bf16.mxu1 %v3207_v16 }
 0x10c   : > { %740 = vadd.xlane.f32.xlu0 %v4332_v44  ;;  %773 = vadd.xlane.f32.xlu1 %v759_v50 }
 0x10e   : > { %3178 = vmatpush1.bf16.msra.mxu0 %v3177_v14  ;;  %3210 = vmatpush3.bf16.msra.mxu1 %v3207_v16 }
 0x10f   : > { %3180 = vmatprep.subr.bf16.mxu0 %v3179_v19  ;;  %3212 = vmatprep.subr.bf16.mxu1 %v3211_v26 }
 0x110   : > { %742 = vadd.xlane.f32.xlu0 %v4343_v55  ;;  %775 = vadd.xlane.f32.xlu1 %v760_v61 }
 0x112   : > { %3182 = vmatpush1.bf16.msra.mxu0 %v3181_v23  ;;  %3214 = vmatpush3.bf16.msra.mxu1 %v3211_v26 }
 0x113   : > { %3184 = vmatprep.subr.bf16.mxu0 %v3183_v30  ;;  %3216 = vmatprep.subr.bf16.mxu1 %v3215_v37 }
 0x116   : > { %3186 = vmatpush1.bf16.msra.mxu0 %v3185_v34  ;;  %3218 = vmatpush3.bf16.msra.mxu1 %v3215_v37 }
 0x181   : > { %v731_v39 = vpop.xlane.xlu1 %730  ;;  %v729_v40 = vpop.xlane.xlu0 %728 }
 0x182   : > { %v746_v41 = vmul.f32 0.0078125, %v731_v39  ;;  %v745_v42 = vmul.f32 0.0078125, %v729_v40 }
 0x184   : > { %v786_v43 = vmul.f32 %v746_v41, %v746_v41  ;;  %v785_v47 = vmul.f32 %v745_v42, %v745_v42  ;;  %v802_v13 = vsub.f32 %v4286_v8, %v746_v41  ;;  %v801_v14 = vsub.f32 %v4288_v9, %v745_v42 }
 0x185   : > { %v764_v45 = vpop.xlane.xlu1 %763  ;;  %v762_v46 = vpop.xlane.xlu0 %761 }
 0x186   : > { %v778_v48 = vmul.f32 0.0078125, %v764_v45  ;;  %v777_v49 = vmul.f32 0.0078125, %v762_v46 }
 0x188   : > { %v794_v50 = vsub.f32 %v778_v48, %v786_v43  ;;  %v793_v51 = vsub.f32 %v777_v49, %v785_v47 }
 0x189   : > { %v733_v52 = vpop.xlane.xlu0 %732  ;;  %v766_v53 = vpop.xlane.xlu1 %765 }
 0x18a   : > { %v810_v54 = vadd.f32 1e-05, %v794_v50  ;;  %v809_v56 = vadd.f32 1e-05, %v793_v51  ;;  %v747_v57 = vmul.f32 0.0078125, %v733_v52  ;;  %v779_v58 = vmul.f32 0.0078125, %v766_v53 }
 0x18c   : > { %3452 = vrsqrt.f32 %v810_v54  ;;  %v787_v59 = vmul.f32 %v747_v57, %v747_v57  ;;  %v803_v34 = vsub.f32 %v4296_v12, %v747_v57 }
 0x18d   : > { %3454 = vrsqrt.f32 %v809_v56  ;;  %v735_v60 = vpop.xlane.xlu0 %734  ;;  %v768_v61 = vpop.xlane.xlu1 %767 }
 0x18e   : > { %v795_v62 = vsub.f32 %v779_v58, %v787_v59  ;;  %v748_v63 = vmul.f32 0.0078125, %v735_v60  ;;  %v780_v0 = vmul.f32 0.0078125, %v768_v61 }
 0x190   : > { %v811_v1 = vadd.f32 1e-05, %v795_v62  ;;  %v788_v2 = vmul.f32 %v748_v63, %v748_v63  ;;  %v804_v50 = vsub.f32 %v4308_v25, %v748_v63 }
 0x191   : > { %v737_v3 = vpop.xlane.xlu0 %736  ;;  %v770_v4 = vpop.xlane.xlu1 %769 }
 0x192   : > { %3456 = vrsqrt.f32 %v811_v1  ;;  %v796_v5 = vsub.f32 %v780_v0, %v788_v2  ;;  %v4375_v6 = vmul.f32 0.0078125, %v737_v3  ;;  %v781_v7 = vmul.f32 0.0078125, %v770_v4 }
 0x194   : > { %v812_v10 = vadd.f32 1e-05, %v796_v5  ;;  %v789_v11 = vmul.f32 %v4375_v6, %v4375_v6  ;;  %v805_v58 = vsub.f32 %v4313_v28, %v4375_v6 }
 0x195   : > { %v739_v15 = vpop.xlane.xlu0 %738  ;;  %v772_v16 = vpop.xlane.xlu1 %771 }
 0x196   : > { %v3453_v17 = vpop.eup %3452  ;;  %3458 = vrsqrt.f32 %v812_v10  ;;  %v797_v18 = vsub.f32 %v781_v7, %v789_v11  ;;  %v750_v19 = vmul.f32 0.0078125, %v739_v15  ;;  %v782_v20 = vmul.f32 0.0078125, %v772_v16 }
 0x197   : > { %v3455_v22 = vpop.eup %3454  ;;  %v826_v23 = vmul.f32 %v3453_v17, %v802_v13 }
 0x198   : > { %v813_v24 = vadd.f32 1e-05, %v797_v18  ;;  %v790_v8 = vmul.f32 %v750_v19, %v750_v19  ;;  %v825_v26 = vmul.f32 %v3455_v22, %v801_v14  ;;  %v806_v63 = vsub.f32 %v4322_v35, %v750_v19 }
 0x199   : > { %v741_v9 = vpop.xlane.xlu0 %740  ;;  %v774_v27 = vpop.xlane.xlu1 %773  ;;  %v840_v30 = vmul.f32 %v4386_v21, %v826_v23 }
 0x19a   : > { %3460 = vrsqrt.f32 %v813_v24  ;;  %v798_v31 = vsub.f32 %v782_v20, %v790_v8  ;;  %v751_v32 = vmul.f32 0.0078125, %v741_v9  ;;  %v783_v33 = vmul.f32 0.0078125, %v774_v27 }
 0x19b   : > { %v839_v36 = vmul.f32 %v4386_v21, %v825_v26  ;;  %v854_v41 = vadd.f32 %v4390_v29, %v840_v30 }
 0x19c   : > { %v3457_v37 = vpop.eup %3456  ;;  %v814_v39 = vadd.f32 1e-05, %v798_v31  ;;  %v791_v40 = vmul.f32 %v751_v32, %v751_v32  ;;  %v807_v3 = vsub.f32 %v4332_v44, %v751_v32 }
 0x19d   : > { %v853_v42 = vadd.f32 %v4390_v29, %v839_v36  ;;  %v743_v43 = vpop.xlane.xlu0 %742  ;;  %v776_v45 = vpop.xlane.xlu1 %775  ;;  %v827_v46 = vmul.f32 %v3457_v37, %v803_v34 }
 0x19e   : > { %3462 = vrsqrt.f32 %v814_v39  ;;  %v799_v47 = vsub.f32 %v783_v33, %v791_v40  ;;  %v752_v48 = vmul.f32 0.0078125, %v743_v43  ;;  %v784_v49 = vmul.f32 0.0078125, %v776_v45 }
 0x19f   : > { %974 = vmatmul.mubr.f32.vlgmr.msra.gmra.mrb[0].mxu0 %v853_v42  ;;  %3043 = vmatprep.mubr.f32.mxu1 %v853_v42  ;;  %v841_v12 = vmul.f32 %v4386_v21, %v827_v46 }
 0x1a0   : > { %v3459_v51 = vpop.eup %3458  ;;  %v815_v52 = vadd.f32 1e-05, %v799_v47  ;;  %v792_v53 = vmul.f32 %v752_v48, %v752_v48  ;;  %3044 = vmatmul.mubr.f32.vlgmr.msra.gmra.mrb[0].mxu1 %v854_v41  ;;  %979 = vmatprep.mubr.f32.mxu0 %v3872_v38  ;;  %v808_v7 = vsub.f32 %v4343_v55, %v752_v48 }
 0x1a1   : > { %v855_v54 = vadd.f32 %v4390_v29, %v841_v12  ;;  %v828_v56 = vmul.f32 %v3459_v51, %v804_v50 }
 0x1a2   : > { %3464 = vrsqrt.f32 %v815_v52  ;;  %v800_v57 = vsub.f32 %v784_v49, %v792_v53 }
 0x1a3   : > { %980 = vmatmul.mubr.f32.gmra.mrb[2].mxu0 %v854_v41  ;;  %3046 = vmatprep.mubr.f32.mxu1 %v855_v54  ;;  %v842_v25 = vmul.f32 %v4386_v21, %v828_v56 }
 0x1a4   : > { %v3461_v59 = vpop.eup %3460  ;;  %v816_v60 = vadd.f32 1e-05, %v800_v57  ;;  %985 = vmatprep.mubr.f32.mxu0 %v3872_v38 }
 0x1a5   : > { %v856_v61 = vadd.f32 %v4390_v29, %v842_v25  ;;  %v829_v62 = vmul.f32 %v3461_v59, %v805_v58 }
 0x1a6   : > { %3466 = vrsqrt.f32 %v816_v60 }
 0x1a7   : > { %986 = vmatmul.mubr.f32.gmra.mrb[4].mxu0 %v855_v54  ;;  %3047 = vmatmul.mubr.f32.gmra.mrb[2].mxu1 %v856_v61  ;;  %v843_v0 = vmul.f32 %v4386_v21, %v829_v62 }
 0x1a8   : > { %v3463_v1 = vpop.eup %3462  ;;  %991 = vmatprep.mubr.f32.mxu0 %v3872_v38 }
 0x1a9   : > { %v857_v28 = vadd.f32 %v4390_v29, %v843_v0  ;;  %v830_v2 = vmul.f32 %v3463_v1, %v806_v63 }
 0x1ab   : > { %992 = vmatmul.mubr.f32.gmra.mrb[6].mxu0 %v856_v61  ;;  %3049 = vmatprep.mubr.f32.mxu1 %v857_v28  ;;  %v844_v4 = vmul.f32 %v4386_v21, %v830_v2 }
 0x1ac   : > { %v3465_v5 = vpop.eup %3464  ;;  %997 = vmatprep.mubr.f32.mxu0 %v3872_v38 }
 0x1ad   : > { %v858_v35 = vadd.f32 %v4390_v29, %v844_v4  ;;  %v831_v6 = vmul.f32 %v3465_v5, %v807_v3 }
 0x1af   : > { %998 = vmatmul.mubr.f32.gmra.mrb[8].mxu0 %v857_v28  ;;  %3050 = vmatmul.mubr.f32.gmra.mrb[4].mxu1 %v858_v35  ;;  %v845_v10 = vmul.f32 %v4386_v21, %v831_v6 }
 0x1b0   : > { %v3467_v11 = vpop.eup %3466  ;;  %1003 = vmatprep.mubr.f32.mxu0 %v3872_v38 }
 0x1b1   : > { %v859_v44 = vadd.f32 %v4390_v29, %v845_v10  ;;  %v832_v13 = vmul.f32 %v3467_v11, %v808_v7 }
 0x1b3   : > { %1004 = vmatmul.mubr.f32.gmra.mrb[10].mxu0 %v858_v35  ;;  %3052 = vmatprep.mubr.f32.mxu1 %v859_v44  ;;  %v846_v14 = vmul.f32 %v4386_v21, %v832_v13 }
 0x1b4   : > { %1009 = vmatprep.mubr.f32.mxu0 %v3872_v38 }
 0x1b5   : > { %v860_v15 = vadd.f32 %v4390_v29, %v846_v14 }
 0x1b7   : > { %1010 = vmatmul.mubr.f32.gmra.mrb[12].mxu0 %v859_v44  ;;  %3053 = vmatmul.mubr.f32.gmra.mrb[6].mxu1 %v860_v15 }
 0x1b8   : > { %1015 = vmatprep.mubr.f32.mxu0 %v3872_v38 }
 0x1bb   : > { %1016 = vmatmul.mubr.f32.gmra.mrb[14].mxu0 %v860_v15 }
 0x272   : > { %v975_v55 = vpop.f32.mrb[0].mxu0 }
 0x273   : > { %v977_v16 = vpop.f32.mrb[1].mxu0  ;;  %v3045_v17 = vpop.f32.mrb[0].mxu1  ;;  %3063 = vmatprep.mubr.f32.mxu1 %v975_v55 }
 0x274   : > { %v1088_v18 = vpop.f32.mrb[1].mxu1 }
 0x275   : > { %v3235_v19 = vpack.c.bf16 %v3045_v17, %v1088_v18 }
 0x276   : > { %v981_v20 = vpop.f32.mrb[2].mxu0 }
 0x277   : > { %v983_v22 = vpop.f32.mrb[3].mxu0 }
 0x278   : > { %v3219_v23 = vpack.c.bf16 %v983_v22, %v977_v16 }
 0x27a   : > { %v987_v24 = vpop.f32.mrb[4].mxu0  ;;  %3220 = vmatprep.subr.bf16.mxu1 %v3219_v23  ;;  %v3048_v21 = vpop.f32.mrb[2].mxu1 }
 0x27b   : > { %v989_v8 = vpop.f32.mrb[5].mxu0  ;;  %3222 = vmatpush3.bf16.xpose.msra.mxu1 %v3219_v23  ;;  %v1098_v26 = vpop.f32.mrb[3].mxu1 }
 0x27c   : > { %v3239_v9 = vpack.c.bf16 %v3048_v21, %v1098_v26 }
 0x27e   : > { %v993_v27 = vpop.f32.mrb[6].mxu0 }
 0x27f   : > { %v995_v29 = vpop.f32.mrb[7].mxu0 }
 0x280   : > { %v3223_v30 = vpack.c.bf16 %v995_v29, %v989_v8 }
 0x282   : > { %v999_v31 = vpop.f32.mrb[8].mxu0  ;;  %3224 = vmatprep.subr.bf16.mxu1 %v3223_v30  ;;  %v3051_v32 = vpop.f32.mrb[4].mxu1 }
 0x283   : > { %v1001_v33 = vpop.f32.mrb[9].mxu0  ;;  %3226 = vmatpush3.bf16.xpose.msra.mxu1 %v3223_v30  ;;  %v1108_v34 = vpop.f32.mrb[5].mxu1 }
 0x284   : > { %v4422_v36 = vpack.c.bf16 %v3051_v32, %v1108_v34 }
 0x286   : > { %v1005_v37 = vpop.f32.mrb[10].mxu0 }
 0x287   : > { %v1007_v39 = vpop.f32.mrb[11].mxu0 }
 0x288   : > { %v3227_v40 = vpack.c.bf16 %v1007_v39, %v1001_v33 }
 0x28a   : > { %v1011_v41 = vpop.f32.mrb[12].mxu0  ;;  %3064 = vmatmul.mubr.f32.vlgmr.msra.gmra.mrb[8].mxu1 %v981_v20  ;;  %3228 = vmatprep.subr.bf16.mxu1 %v3227_v40  ;;  %v3054_v42 = vpop.f32.mrb[6].mxu1 }
 0x28b   : > { %v1013_v43 = vpop.f32.mrb[13].mxu0  ;;  %3066 = vmatprep.mubr.f32.mxu1 %v987_v24  ;;  %3230 = vmatpush3.bf16.xpose.msra.mxu1 %v3227_v40  ;;  %v1118_v45 = vpop.f32.mrb[7].mxu1 }
 0x28c   : > { %v4424_v46 = vpack.c.bf16 %v3054_v42, %v1118_v45 }
 0x28e   : > { %v1017_v47 = vpop.f32.mrb[14].mxu0  ;;  %3067 = vmatmul.mubr.f32.gmra.mrb[10].mxu1 %v993_v27 }
 0x28f   : > { %v1019_v48 = vpop.f32.mrb[15].mxu0  ;;  %3077 = vmatprep.mubr.f32.mxu1 %v999_v31 }
 0x290   : > { %v3231_v49 = vpack.c.bf16 %v1019_v48, %v1013_v43 }
 0x292   : > { %3232 = vmatprep.subr.bf16.mxu1 %v3231_v49 }
 0x293   : > { %3234 = vmatpush3.bf16.xpose.msra.mxu1 %v3231_v49 }
 0x294   : > { %3236 = vmatprep.subr.bf16.mxu1 %v3235_v19 }
 0x29a   : > { %3078 = vmatmul.mubr.f32.vlgmr.msra.gmra.mrb[12].mxu1 %v1005_v37 }
 0x29b   : > { %3080 = vmatprep.mubr.f32.mxu1 %v1011_v41  ;;  %3238 = vmatpush3.bf16.msra.mxu1 %v3235_v19 }
 0x29c   : > { %3240 = vmatprep.subr.bf16.mxu1 %v3239_v9 }
 0x29e   : > { %3081 = vmatmul.mubr.f32.gmra.mrb[14].mxu1 %v1017_v47 }
 0x29f   : > { %3242 = vmatpush3.bf16.msra.mxu1 %v3239_v9 }
 0x2a0   : > { %3244 = vmatprep.subr.bf16.mxu1 %v4422_v36 }
 0x35d   : > { %v3065_v50 = vpop.f32.mrb[8].mxu1 }
 0x35e   : > { %v1298_v12 = vmul.f32 0.088388346, %v3065_v50  ;;  %v1193_v51 = vpop.f32.mrb[9].mxu1 }
 0x35f   : > { %v1297_v52 = vmul.f32 0.088388346, %v1193_v51 }
 0x360   : > { %v1309_v53 = vsel %vm1305_vm0, %v1298_v12, -inf }
 0x361   : > { %1310 = vmax.xlane.f32.xlu1 %v1309_v53  ;;  %v3068_v54 = vpop.f32.mrb[10].mxu1  ;;  %v1306_v56 = vsel %vm1305_vm0, %v1297_v52, -inf  ;;  %v1589_v53 = vld [vmem:[%s4239_s9 + $0x8] sm:$0xff] }
 0x362   : > { %v1300_v57 = vmul.f32 0.088388346, %v3068_v54  ;;  %1307 = vmax.xlane.f32.xlu0 %v1306_v56  ;;  %v1203_v58 = vpop.f32.mrb[11].mxu1  ;;  %v1590_v54 = vld [vmem:[%s4239_s9 + $0x10] sm:$0xff] }
 0x363   : > { %v1299_v25 = vmul.f32 0.088388346, %v1203_v58 }
 0x364   : > { %v1315_v59 = vsel %vm1305_vm0, %v1300_v57, -inf }
 0x365   : > { %1316 = vmax.xlane.f32.xlu1 %v1315_v59  ;;  %v1312_v60 = vsel %vm1305_vm0, %v1299_v25, -inf  ;;  %v1593_v59 = vld [vmem:[%s4239_s9 + $0x28] sm:$0xff] }
 0x366   : > { %1313 = vmax.xlane.f32.xlu0 %v1312_v60 }
 0x36d   : > { %v3079_v61 = vpop.f32.mrb[12].mxu1 }
 0x36e   : > { %v1302_v62 = vmul.f32 0.088388346, %v3079_v61  ;;  %v1278_v63 = vpop.f32.mrb[13].mxu1  ;;  %v1594_v61 = vld [vmem:[%s4239_s9 + $0x30] sm:$0xff] }
 0x36f   : > { %v1301_v0 = vmul.f32 0.088388346, %v1278_v63 }
 0x370   : > { %v1321_v1 = vsel %vm1305_vm0, %v1302_v62, -inf }
 0x371   : > { %1322 = vmax.xlane.f32.xlu1 %v1321_v1  ;;  %v3082_v28 = vpop.f32.mrb[14].mxu1  ;;  %v1318_v2 = vsel %vm1305_vm0, %v1301_v0, -inf  ;;  %v1597_v1 = vld [vmem:[%s4239_s9 + $0x48] sm:$0xff] }
 0x372   : > { %v1304_v3 = vmul.f32 0.088388346, %v3082_v28  ;;  %1319 = vmax.xlane.f32.xlu0 %v1318_v2  ;;  %v1288_v4 = vpop.f32.mrb[15].mxu1  ;;  %v1598_v2 = vld [vmem:[%s4239_s9 + $0x50] sm:$0xff] }
 0x373   : > { %v1303_v5 = vmul.f32 0.088388346, %v1288_v4 }
 0x374   : > { %v1327_v35 = vsel %vm1305_vm0, %v1304_v3, -inf }
 0x375   : > { %1328 = vmax.xlane.f32.xlu1 %v1327_v35  ;;  %v1324_v6 = vsel %vm1305_vm0, %v1303_v5, -inf  ;;  %v1601_v35 = vld [vmem:[%s4239_s9 + $0x68] sm:$0xff] }
 0x376   : > { %1325 = vmax.xlane.f32.xlu0 %v1324_v6 }
 0x3ee   : > { %v1311_v7 = vpop.xlane.xlu1 %1310 }
 0x3ef   : > { %v1331_v10 = vsub.f32 %v1298_v12, %v1311_v7  ;;  %v1308_v11 = vpop.xlane.xlu0 %1307  ;;  %v1602_v7 = vld [vmem:[%s4239_s9 + $0x70] sm:$0xff] }
 0x3f0   : > { %v1330_v44 = vsub.f32 %v1297_v52, %v1308_v11  ;;  %v1588_v52 = vld [vmem:[%s4239_s9] sm:$0xff] }
 0x3f1   : > { %v1340_v13 = vmul.f32 1.442695, %v1331_v10  ;;  %v3251_v56 = vpack.c.bf16 %v1589_v53, %v1588_v52  ;;  %v1603_v10 = vld [vmem:[%s4239_s9 + $0x78] sm:$0xff] }
 0x3f2   : > { %v1338_v14 = vmul.f32 1.442695, %v1330_v44  ;;  %v1317_v15 = vpop.xlane.xlu1 %1316  ;;  %v3279_v11 = vpack.c.bf16 %v1603_v10, %v1602_v7  ;;  %v3583_v10 = vld [vmem:[#allocation2 + $0x18] sm:$0xff] }
 0x3f3   : > { %3468 = vpow2.f32 %v1340_v13  ;;  %v1333_v55 = vsub.f32 %v1300_v57, %v1317_v15  ;;  %v1314_v16 = vpop.xlane.xlu0 %1313  ;;  %v1591_v57 = vld [vmem:[%s4239_s9 + $0x18] sm:$0xff]  ;;  %3252 = vmatprep.subr.bf16.mxu0 %v3251_v56 }
 0x3f4   : > { %3470 = vpow2.f32 %v1338_v14  ;;  %v1332_v17 = vsub.f32 %v1299_v25, %v1314_v16  ;;  %v3255_v58 = vpack.c.bf16 %v1591_v57, %v1590_v54  ;;  %v1592_v25 = vld [vmem:[%s4239_s9 + $0x20] sm:$0xff]  ;;  %3254 = vmatpush3.bf16.msra.mxu0 %v3251_v56  ;;  %v1864_v56 = vld [vmem:[%s4246_s4 + $0x30] sm:$0xff] }
 0x3f5   : > { %v1344_v18 = vmul.f32 1.442695, %v1333_v55  ;;  %v3259_v60 = vpack.c.bf16 %v1593_v59, %v1592_v25  ;;  %v1862_v54 = vld [vmem:[%s4246_s4 + $0x20] sm:$0xff] }
 0x3f6   : > { %v1342_v19 = vmul.f32 1.442695, %v1332_v17  ;;  %3256 = vmatprep.subr.bf16.mxu0 %v3255_v58  ;;  %v3289_v57 = vpack.c.bf16 %v1864_v56, %v1862_v54  ;;  %v1878_v56 = vld [vmem:[%s4246_s4 + $0xa0] sm:$0xff] }
 0x3f7   : > { %3472 = vpow2.f32 %v1344_v18 }
 0x3f8   : > { %3474 = vpow2.f32 %v1342_v19  ;;  %3258 = vmatpush3.bf16.msra.mxu0 %v3255_v58  ;;  %v2863_v58 = vld [vmem:[%s683_s19] ss:$0 sm:$0xff] }
 0x3f9   : > { %3260 = vmatprep.subr.bf16.mxu0 %v3259_v60 }
 0x3fc   : > { %3262 = vmatpush3.bf16.msra.mxu0 %v3259_v60 }
 0x3fd   : > { %v4435_v20 = vpop.eup %3468 }
 0x3fe   : > { %v4437_v22 = vpop.eup %3470  ;;  %v1323_v23 = vpop.xlane.xlu1 %1322  ;;  %v1357_v24 = vsel %vm1305_vm0, %v4435_v20, 0.0 }
 0x3ff   : > { %v1335_v21 = vsub.f32 %v1302_v62, %v1323_v23  ;;  %v1320_v8 = vpop.xlane.xlu0 %1319  ;;  %1358 = vadd.xlane.f32.xlu1 %v1357_v24  ;;  %v1354_v26 = vsel %vm1305_vm0, %v4437_v22, 0.0  ;;  %v1595_v62 = vld [vmem:[%s4239_s9 + $0x38] sm:$0xff] }
 0x400   : > { %v1334_v9 = vsub.f32 %v1301_v0, %v1320_v8  ;;  %1355 = vadd.xlane.f32.xlu0 %v1354_v26  ;;  %v3263_v63 = vpack.c.bf16 %v1595_v62, %v1594_v61  ;;  %v1596_v0 = vld [vmem:[%s4239_s9 + $0x40] sm:$0xff] }
 0x401   : > { %v4443_v27 = vpop.eup %3472  ;;  %v1348_v29 = vmul.f32 1.442695, %v1335_v21  ;;  %v3267_v28 = vpack.c.bf16 %v1597_v1, %v1596_v0  ;;  %v3580_v62 = vld [vmem:[#allocation2] sm:$0xff] }
 0x402   : > { %v4445_v30 = vpop.eup %3474  ;;  %v1346_v31 = vmul.f32 1.442695, %v1334_v9  ;;  %v1329_v32 = vpop.xlane.xlu1 %1328  ;;  %v1363_v33 = vsel %vm1305_vm0, %v4443_v27, 0.0  ;;  %3264 = vmatprep.subr.bf16.mxu0 %v3263_v63 }
 0x403   : > { %3476 = vpow2.f32 %v1348_v29  ;;  %v1337_v34 = vsub.f32 %v1304_v3, %v1329_v32  ;;  %1364 = vadd.xlane.f32.xlu1 %v1363_v33  ;;  %v1326_v37 = vpop.xlane.xlu0 %1325  ;;  %v1360_v39 = vsel %vm1305_vm0, %v4445_v30, 0.0  ;;  %v1599_v3 = vld [vmem:[%s4239_s9 + $0x58] sm:$0xff]  ;;  %3266 = vmatpush3.bf16.msra.mxu0 %v3263_v63 }
 0x404   : > { %3478 = vpow2.f32 %v1346_v31  ;;  %v1336_v40 = vsub.f32 %v1303_v5, %v1326_v37  ;;  %1361 = vadd.xlane.f32.xlu0 %v1360_v39  ;;  %3268 = vmatprep.subr.bf16.mxu0 %v3267_v28  ;;  %v3271_v4 = vpack.c.bf16 %v1599_v3, %v1598_v2  ;;  %v1600_v5 = vld [vmem:[%s4239_s9 + $0x60] sm:$0xff] }
 0x405   : > { %v1352_v41 = vmul.f32 1.442695, %v1337_v34  ;;  %v3275_v6 = vpack.c.bf16 %v1601_v35, %v1600_v5  ;;  %v3582_v35 = vld [vmem:[#allocation2 + $0x10] sm:$0xff] }
 0x406   : > { %v1350_v42 = vmul.f32 1.442695, %v1336_v40 }
 0x407   : > { %3480 = vpow2.f32 %v1352_v41  ;;  %3270 = vmatpush3.bf16.msra.mxu0 %v3267_v28  ;;  %v3581_v28 = vld [vmem:[#allocation2 + $0x8] sm:$0xff] }
 0x408   : > { %3482 = vpow2.f32 %v1350_v42  ;;  %3272 = vmatprep.subr.bf16.mxu0 %v3271_v4 }
 0x40b   : > { %3274 = vmatpush3.bf16.msra.mxu0 %v3271_v4 }
 0x40c   : > { %3276 = vmatprep.subr.bf16.mxu0 %v3275_v6 }
 0x40d   : > { %v4451_v43 = vpop.eup %3476 }
 0x40e   : > { %v4453_v45 = vpop.eup %3478  ;;  %v1369_v47 = vsel %vm1305_vm0, %v4451_v43, 0.0 }
 0x40f   : > { %1370 = vadd.xlane.f32.xlu1 %v1369_v47  ;;  %v1366_v48 = vsel %vm1305_vm0, %v4453_v45, 0.0  ;;  %3278 = vmatpush3.bf16.msra.mxu0 %v3275_v6  ;;  %v1861_v47 = vld [vmem:[%s4246_s4 + $0x18] sm:$0xff] }
 0x410   : > { %1367 = vadd.xlane.f32.xlu0 %v1366_v48  ;;  %3280 = vmatprep.subr.bf16.mxu0 %v3279_v11  ;;  %v1858_v48 = vld [vmem:[%s4246_s4] sm:$0xff] }
 0x411   : > { %v4459_v49 = vpop.eup %3480 }
 0x412   : > { %v4461_v50 = vpop.eup %3482  ;;  %v1375_v12 = vsel %vm1305_vm0, %v4459_v49, 0.0 }
 0x413   : > { %1376 = vadd.xlane.f32.xlu1 %v1375_v12  ;;  %v1372_v51 = vsel %vm1305_vm0, %v4461_v50, 0.0  ;;  %3282 = vmatpush3.bf16.msra.mxu0 %v3279_v11  ;;  %v1863_v12 = vld [vmem:[%s4246_s4 + $0x28] sm:$0xff] }
 0x414   : > { %1373 = vadd.xlane.f32.xlu0 %v1372_v51  ;;  %v1865_v51 = vld [vmem:[%s4246_s4 + $0x38] sm:$0xff] }
 0x415   : > { %v3287_v53 = vpack.c.bf16 %v1865_v51, %v1863_v12 }
 0x48c   : > { %v1359_v44 = vpop.xlane.xlu1 %1358 }
 0x48d   : > { %3484 = vrcp.f32 %v1359_v44  ;;  %v1356_v13 = vpop.xlane.xlu0 %1355 }
 0x48e   : > { %3486 = vrcp.f32 %v1356_v13 }
 0x490   : > { %v1365_v14 = vpop.xlane.xlu1 %1364 }
 0x491   : > { %3488 = vrcp.f32 %v1365_v14  ;;  %v1362_v15 = vpop.xlane.xlu0 %1361 }
 0x492   : > { %3490 = vrcp.f32 %v1362_v15 }
 0x497   : > { %v3485_v55 = vpop.eup %3484 }
 0x498   : > { %v3487_v16 = vpop.eup %3486  ;;  %v1387_v18 = vmul.f32 %v3485_v55, %v4435_v20 }
 0x499   : > { %v1386_v17 = vmul.f32 %v3487_v16, %v4437_v22 }
 0x49b   : > { %v3489_v19 = vpop.eup %3488  ;;  %3091 = vmatprep.mubr.msk.f32.mxu1 %vm1305_vm0, %v1386_v17  ;;  %v1867_v17 = vld [vmem:[%s4246_s4 + $0x48] sm:$0xff] }
 0x49c   : > { %v3491_v23 = vpop.eup %3490  ;;  %v1371_v24 = vpop.xlane.xlu1 %1370  ;;  %3092 = vmatmul.mubr.msk.f32.vlgmr.msra.gmra.mrb[16].mxu1 %vm1305_vm0, %v1387_v18  ;;  %v1389_v22 = vmul.f32 %v3489_v19, %v4443_v27  ;;  %v1869_v18 = vld [vmem:[%s4246_s4 + $0x58] sm:$0xff] }
 0x49d   : > { %3492 = vrcp.f32 %v1371_v24  ;;  %3246 = vmatpush3.bf16.msra.mxu1 %v4422_v36  ;;  %v1368_v21 = vpop.xlane.xlu0 %1367  ;;  %v1388_v8 = vmul.f32 %v3491_v23, %v4445_v30  ;;  %v3584_v19 = vld [vmem:[#allocation2 + $0x20] sm:$0xff] }
 0x49e   : > { %3248 = vmatprep.subr.bf16.mxu1 %v4424_v46  ;;  %3494 = vrcp.f32 %v1368_v21  ;;  %v3291_v21 = vpack.c.bf16 %v1869_v18, %v1867_v17 }
 0x49f   : > { %3094 = vmatprep.mubr.msk.f32.mxu1 %vm1305_vm0, %v1388_v8  ;;  %v1866_v8 = vld [vmem:[%s4246_s4 + $0x40] sm:$0xff] }
 0x4a0   : > { %v1377_v20 = vpop.xlane.xlu1 %1376  ;;  %3095 = vmatmul.mubr.msk.f32.gmra.mrb[18].mxu1 %vm1305_vm0, %v1389_v22  ;;  %v1868_v22 = vld [vmem:[%s4246_s4 + $0x50] sm:$0xff] }
 0x4a1   : > { %3496 = vrcp.f32 %v1377_v20  ;;  %3250 = vmatpush3.bf16.msra.mxu1 %v4424_v46  ;;  %v1374_v26 = vpop.xlane.xlu0 %1373 }
 0x4a2   : > { %3498 = vrcp.f32 %v1374_v26  ;;  %v3293_v26 = vpack.c.bf16 %v1868_v22, %v1866_v8 }
 0x4a7   : > { %v3493_v9 = vpop.eup %3492 }
 0x4a8   : > { %v3495_v36 = vpop.eup %3494  ;;  %v1391_v30 = vmul.f32 %v3493_v9, %v4451_v43  ;;  %v3585_v9 = vld [vmem:[#allocation2 + $0x28] sm:$0xff] }
 0x4a9   : > { %v1390_v29 = vmul.f32 %v3495_v36, %v4453_v45  ;;  %v1859_v45 = vld [vmem:[%s4246_s4 + $0x8] sm:$0xff] }
 0x4ab   : > { %v3497_v31 = vpop.eup %3496  ;;  %3105 = vmatprep.mubr.msk.f32.mxu1 %vm1305_vm0, %v1390_v29 }
 0x4ac   : > { %v3499_v27 = vpop.eup %3498  ;;  %3106 = vmatmul.mubr.msk.f32.vlgmr.msra.gmra.mrb[20].mxu1 %vm1305_vm0, %v1391_v30  ;;  %v1393_v33 = vmul.f32 %v3497_v31, %v4459_v49  ;;  %v3283_v49 = vpack.c.bf16 %v1861_v47, %v1859_v45  ;;  %v1871_v31 = vld [vmem:[%s4246_s4 + $0x68] sm:$0xff]  ;;  %v1874_v47 = vld [vmem:[%s4246_s4 + $0x80] sm:$0xff] }
 0x4ad   : > { %v1392_v32 = vmul.f32 %v3499_v27, %v4461_v50  ;;  %v1860_v50 = vld [vmem:[%s4246_s4 + $0x10] sm:$0xff]  ;;  %v1873_v27 = vld [vmem:[%s4246_s4 + $0x78] sm:$0xff] }
 0x4ae   : > { %v3285_v52 = vpack.c.bf16 %v1860_v50, %v1858_v48  ;;  %3284 = vmatprep.subr.bf16.mxu1 %v3283_v49  ;;  %v1876_v48 = vld [vmem:[%s4246_s4 + $0x90] sm:$0xff] }
 0x4af   : > { %3108 = vmatprep.mubr.msk.f32.mxu1 %vm1305_vm0, %v1392_v32  ;;  %v3295_v32 = vpack.c.bf16 %v1873_v27, %v1871_v31  ;;  %v3301_v49 = vpack.c.bf16 %v1876_v48, %v1874_v47  ;;  %v3587_v50 = vld [vmem:[#allocation2 + $0x38] sm:$0xff] }
 0x4b0   : > { %3109 = vmatmul.mubr.msk.f32.gmra.mrb[22].mxu1 %vm1305_vm0, %v1393_v33  ;;  %v1870_v33 = vld [vmem:[%s4246_s4 + $0x60] sm:$0xff] }
 0x4b1   : > { %1966 = vmatprep.mubr.f32.mxu1 %v3872_v38  ;;  %3286 = vmatpush1.bf16.msra.mxu1 %v3285_v52  ;;  %v1879_v52 = vld [vmem:[%s4246_s4 + $0xa8] sm:$0xff] }
 0x4b2   : > { %3288 = vmatprep.subr.bf16.mxu1 %v3287_v53  ;;  %v1881_v53 = vld [vmem:[%s4246_s4 + $0xb8] sm:$0xff] }
 0x4b3   : > { %v3303_v54 = vpack.c.bf16 %v1881_v53, %v1879_v52 }
 0x4b5   : > { %3290 = vmatpush1.bf16.msra.mxu1 %v3289_v57  ;;  %v1880_v57 = vld [vmem:[%s4246_s4 + $0xb0] sm:$0xff] }
 0x4b6   : > { %3292 = vmatprep.subr.bf16.mxu1 %v3291_v21 }
 0x4b9   : > { %3294 = vmatpush1.bf16.msra.mxu1 %v3293_v26 }
 0x4ba   : > { %3296 = vmatprep.subr.bf16.mxu1 %v3295_v32 }
 0x56f   : > { %v3093_v46 = vpop.f32.mrb[16].mxu1 }
 0x570   : > { %v1472_v34 = vpop.f32.mrb[17].mxu1 }
 0x571   : > { %3143 = vmatprep.mubr.f32.mxu0 %v1472_v34 }
 0x572   : > { %3144 = vmatmul.mubr.f32.vlgmr.msra.gmra.mrb[16].mxu0 %v3093_v46  ;;  %v1872_v46 = vld [vmem:[%s4246_s4 + $0x70] sm:$0xff] }
 0x573   : > { %v3096_v37 = vpop.f32.mrb[18].mxu1  ;;  %v3297_v34 = vpack.c.bf16 %v1872_v46, %v1870_v33 }
 0x574   : > { %v1482_v39 = vpop.f32.mrb[19].mxu1 }
 0x575   : > { %3146 = vmatprep.mubr.f32.mxu0 %v1482_v39  ;;  %v3586_v39 = vld [vmem:[#allocation2 + $0x30] sm:$0xff]  ;;  %3298 = vmatpush1.bf16.msra.mxu1 %v3297_v34 }
 0x576   : > { %3147 = vmatmul.mubr.f32.gmra.mrb[18].mxu0 %v3096_v37 }
 0x57f   : > { %v3107_v40 = vpop.f32.mrb[20].mxu1 }
 0x580   : > { %v1569_v41 = vpop.f32.mrb[21].mxu1 }
 0x581   : > { %3149 = vmatprep.mubr.f32.mxu0 %v1569_v41 }
 0x582   : > { %3150 = vmatmul.mubr.f32.gmra.mrb[20].mxu0 %v3107_v40 }
 0x583   : > { %v3110_v42 = vpop.f32.mrb[22].mxu1 }
 0x584   : > { %v1579_v43 = vpop.f32.mrb[23].mxu1 }
 0x585   : > { %3152 = vmatprep.mubr.f32.mxu0 %v1579_v43  ;;  %v1877_v43 = vld [vmem:[%s4246_s4 + $0x98] sm:$0xff] }
 0x586   : > { %3153 = vmatmul.mubr.f32.gmra.mrb[22].mxu0 %v3110_v42  ;;  %v1875_v42 = vld [vmem:[%s4246_s4 + $0x88] sm:$0xff] }
 0x587   : > { %v3299_v45 = vpack.c.bf16 %v1877_v43, %v1875_v42 }
 0x589   : > { %3300 = vmatprep.subr.bf16.mxu1 %v3299_v45 }
 0x58a   : > { %3302 = vmatpush1.bf16.msra.mxu1 %v3301_v49 }
 0x58b   : > { %3304 = vmatprep.subr.bf16.mxu1 %v3303_v54 }
 0x645   : > { %v3145_v25 = vpop.f32.mrb[16].mxu0 }
 0x646   : > { %v1677_v59 = vpop.f32.mrb[17].mxu0  ;;  %v1683_v60 = vadd.f32 %v3145_v25, %v2863_v58 }
 0x647   : > { %v1678_v61 = vadd.f32 %v2863_v58, %v1677_v59  ;;  %v1883_v59 = vld [vmem:[%s4246_s4 + $0xc8] sm:$0xff] }
 0x648   : > { %v4518_v2 = vadd.f32 %v3581_v28, %v1683_v60  ;;  %v1885_v60 = vld [vmem:[%s4246_s4 + $0xd8] sm:$0xff]  ;;  %v1887_v28 = vld [vmem:[%s4246_s4 + $0xe8] sm:$0xff] }
 0x649   : > { %v4516_v63 = vadd.f32 %v3580_v62, %v1678_v61  ;;  %v3148_v0 = vpop.f32.mrb[18].mxu0  ;;  %v3307_v61 = vpack.c.bf16 %v1885_v60, %v1883_v59  ;;  %v1882_v62 = vld [vmem:[%s4246_s4 + $0xc0] sm:$0xff] }
 0x64a   : > { %v1687_v1 = vpop.f32.mrb[19].mxu0  ;;  %5165 = vst [vmem:[#allocation26_spill] sm:$0xff] %v4518_v2  ;;  %v1693_v5 = vadd.f32 %v3148_v0, %v2863_v58  ;;  %v1751_v7 = vmul.f32 %v4518_v2, %v4518_v2  ;;  %v1884_v0 = vld [vmem:[%s4246_s4 + $0xd0] sm:$0xff] }
 0x64b   : > { %5164 = vst [vmem:[#allocation25_spill] sm:$0xff] %v4516_v63  ;;  %v1688_v3 = vadd.f32 %v2863_v58, %v1687_v1  ;;  %1726 = vadd.xlane.f32.xlu0 %v4516_v63  ;;  %v1750_v4 = vmul.f32 %v4516_v63, %v4516_v63  ;;  %v3309_v1 = vpack.c.bf16 %v1884_v0, %v1882_v62 }
 0x64c   : > { %v4528_v11 = vadd.f32 %v3583_v10, %v1693_v5  ;;  %v1886_v5 = vld [vmem:[%s4246_s4 + $0xe0] sm:$0xff] }
 0x64d   : > { %1758 = vadd.xlane.f32.xlu1 %v1750_v4  ;;  %v4523_v6 = vadd.f32 %v3582_v35, %v1688_v3  ;;  %v1889_v3 = vld [vmem:[%s4246_s4 + $0xf8] sm:$0xff]  ;;  %v1888_v35 = vld [vmem:[%s4246_s4 + $0xf0] sm:$0xff] }
 0x64e   : > { %5167 = vst [vmem:[#allocation28_spill] sm:$0xff] %v4528_v11  ;;  %v1753_v16 = vmul.f32 %v4528_v11, %v4528_v11  ;;  %v3311_v4 = vpack.c.bf16 %v1889_v3, %v1887_v28 }
 0x64f   : > { %5166 = vst [vmem:[#allocation27_spill] sm:$0xff] %v4523_v6  ;;  %1728 = vadd.xlane.f32.xlu0 %v4518_v2  ;;  %v1752_v44 = vmul.f32 %v4523_v6, %v4523_v6 }
 0x651   : > { %1760 = vadd.xlane.f32.xlu1 %v1751_v7  ;;  %v3313_v7 = vpack.c.bf16 %v1888_v35, %v1886_v5 }
 0x653   : > { %1730 = vadd.xlane.f32.xlu0 %v4523_v6 }
 0x655   : > { %1762 = vadd.xlane.f32.xlu1 %v1752_v44  ;;  %v3151_v13 = vpop.f32.mrb[20].mxu0 }
 0x656   : > { %v1697_v14 = vpop.f32.mrb[21].mxu0  ;;  %v1703_v15 = vadd.f32 %v3151_v13, %v2863_v58 }
 0x657   : > { %v1698_v55 = vadd.f32 %v2863_v58, %v1697_v14  ;;  %1732 = vadd.xlane.f32.xlu0 %v4528_v11 }
 0x658   : > { %v4542_v36 = vadd.f32 %v3585_v9, %v1703_v15 }
 0x659   : > { %v4538_v23 = vadd.f32 %v3584_v19, %v1698_v55  ;;  %1764 = vadd.xlane.f32.xlu1 %v1753_v16  ;;  %v3154_v24 = vpop.f32.mrb[22].mxu0 }
 0x65a   : > { %v1707_v20 = vpop.f32.mrb[23].mxu0  ;;  %5169 = vst [vmem:[#allocation30_spill] sm:$0xff] %v4542_v36  ;;  %v1713_v37 = vadd.f32 %v3154_v24, %v2863_v58  ;;  %v1755_v41 = vmul.f32 %v4542_v36, %v4542_v36 }
 0x65b   : > { %5168 = vst [vmem:[#allocation29_spill] sm:$0xff] %v4538_v23  ;;  %v1708_v29 = vadd.f32 %v2863_v58, %v1707_v20  ;;  %1734 = vadd.xlane.f32.xlu0 %v4538_v23  ;;  %v1754_v30 = vmul.f32 %v4538_v23, %v4538_v23  ;;  %v3305_v58 = vpack.c.bf16 %v1880_v57, %v1878_v56  ;;  %v4597_v57 = vld [vmem:[%s689_s12] ss:$0 sm:$0xff] }
 0x65c   : > { %v4560_v12 = vadd.f32 %v3587_v50, %v1713_v37 }
 0x65d   : > { %1766 = vadd.xlane.f32.xlu1 %v1754_v30  ;;  %v4551_v40 = vadd.f32 %v3586_v39, %v1708_v29  ;;  %3306 = vmatpush1.bf16.msra.mxu1 %v3305_v58 }
 0x65e   : > { %5171 = vst [vmem:[#allocation32_spill] sm:$0xff] %v4560_v12  ;;  %v1757_v25 = vmul.f32 %v4560_v12, %v4560_v12  ;;  %3308 = vmatprep.subr.bf16.mxu1 %v3307_v61 }
 0x65f   : > { %5170 = vst [vmem:[#allocation31_spill] sm:$0xff] %v4551_v40  ;;  %1736 = vadd.xlane.f32.xlu0 %v4542_v36  ;;  %v1756_v51 = vmul.f32 %v4551_v40, %v4551_v40 }
 0x661   : > { %1768 = vadd.xlane.f32.xlu1 %v1755_v41  ;;  %3310 = vmatpush1.bf16.msra.mxu1 %v3309_v1 }
 0x662   : > { %3312 = vmatprep.subr.bf16.mxu1 %v3311_v4 }
 0x663   : > { %1738 = vadd.xlane.f32.xlu0 %v4551_v40 }
 0x665   : > { %1770 = vadd.xlane.f32.xlu1 %v1756_v51  ;;  %3314 = vmatpush1.bf16.msra.mxu1 %v3313_v7  ;;  %v4590_v51 = vld [vmem:[%s686_s16] ss:$0 sm:$0xff] }
 0x667   : > { %1740 = vadd.xlane.f32.xlu0 %v4560_v12 }
 0x669   : > { %1772 = vadd.xlane.f32.xlu1 %v1757_v25 }
 0x6d8   : > { %v1727_v10 = vpop.xlane.xlu0 %1726 }
 0x6d9   : > { %v1742_v44 = vmul.f32 0.0078125, %v1727_v10 }
 0x6da   : > { %v1759_v13 = vpop.xlane.xlu1 %1758 }
 0x6db   : > { %v1782_v14 = vmul.f32 %v1742_v44, %v1742_v44  ;;  %v1774_v15 = vmul.f32 0.0078125, %v1759_v13  ;;  %v1798_v43 = vsub.f32 %v4516_v63, %v1742_v44 }
 0x6dc   : > { %v1729_v55 = vpop.xlane.xlu0 %1728 }
 0x6dd   : > { %v1790_v16 = vsub.f32 %v1774_v15, %v1782_v14  ;;  %v1743_v17 = vmul.f32 0.0078125, %v1729_v55 }
 0x6de   : > { %v1761_v18 = vpop.xlane.xlu1 %1760 }
 0x6df   : > { %v1806_v19 = vadd.f32 1e-05, %v1790_v16  ;;  %v1783_v24 = vmul.f32 %v1743_v17, %v1743_v17  ;;  %v1775_v21 = vmul.f32 0.0078125, %v1761_v18  ;;  %v1799_v58 = vsub.f32 %v4518_v2, %v1743_v17 }
 0x6e0   : > { %v1731_v8 = vpop.xlane.xlu0 %1730 }
 0x6e1   : > { %3500 = vrsqrt.f32 %v1806_v19  ;;  %v1791_v22 = vsub.f32 %v1775_v21, %v1783_v24  ;;  %v1744_v20 = vmul.f32 0.0078125, %v1731_v8 }
 0x6e2   : > { %v1763_v26 = vpop.xlane.xlu1 %1762 }
 0x6e3   : > { %v1807_v9 = vadd.f32 1e-05, %v1791_v22  ;;  %v1784_v29 = vmul.f32 %v1744_v20, %v1744_v20  ;;  %v1776_v30 = vmul.f32 0.0078125, %v1763_v26  ;;  %v1800_v35 = vsub.f32 %v4523_v6, %v1744_v20 }
 0x6e4   : > { %v1733_v31 = vpop.xlane.xlu0 %1732 }
 0x6e5   : > { %3502 = vrsqrt.f32 %v1807_v9  ;;  %v1792_v27 = vsub.f32 %v1776_v30, %v1784_v29  ;;  %v1745_v32 = vmul.f32 0.0078125, %v1733_v31 }
 0x6e6   : > { %v1765_v33 = vpop.xlane.xlu1 %1764 }
 0x6e7   : > { %v1808_v46 = vadd.f32 1e-05, %v1792_v27  ;;  %v1785_v34 = vmul.f32 %v1745_v32, %v1745_v32  ;;  %v1777_v37 = vmul.f32 0.0078125, %v1765_v33  ;;  %v1801_v24 = vsub.f32 %v4528_v11, %v1745_v32 }
 0x6e8   : > { %v1735_v39 = vpop.xlane.xlu0 %1734 }
 0x6e9   : > { %3504 = vrsqrt.f32 %v1808_v46  ;;  %v1793_v41 = vsub.f32 %v1777_v37, %v1785_v34  ;;  %v4580_v42 = vmul.f32 0.0078125, %v1735_v39 }
 0x6ea   : > { %v1767_v45 = vpop.xlane.xlu1 %1766 }
 0x6eb   : > { %v3501_v47 = vpop.eup %3500  ;;  %v1809_v48 = vadd.f32 1e-05, %v1793_v41  ;;  %v1786_v49 = vmul.f32 %v4580_v42, %v4580_v42  ;;  %v1778_v50 = vmul.f32 0.0078125, %v1767_v45  ;;  %v1802_v27 = vsub.f32 %v4538_v23, %v4580_v42 }
 0x6ec   : > { %v1822_v52 = vmul.f32 %v3501_v47, %v1798_v43  ;;  %v1737_v53 = vpop.xlane.xlu0 %1736 }
 0x6ed   : > { %3506 = vrsqrt.f32 %v1809_v48  ;;  %v1794_v54 = vsub.f32 %v1778_v50, %v1786_v49  ;;  %v1747_v56 = vmul.f32 0.0078125, %v1737_v53 }
 0x6ee   : > { %v1769_v25 = vpop.xlane.xlu1 %1768  ;;  %v1836_v59 = vmul.f32 %v4590_v51, %v1822_v52 }
 0x6ef   : > { %v3503_v60 = vpop.eup %3502  ;;  %v1810_v61 = vadd.f32 1e-05, %v1794_v54  ;;  %v1787_v62 = vmul.f32 %v1747_v56, %v1747_v56  ;;  %v1779_v0 = vmul.f32 0.0078125, %v1769_v25  ;;  %v1803_v39 = vsub.f32 %v4542_v36, %v1747_v56 }
 0x6f0   : > { %v1739_v1 = vpop.xlane.xlu0 %1738  ;;  %v1850_v28 = vadd.f32 %v4597_v57, %v1836_v59  ;;  %v1823_v3 = vmul.f32 %v3503_v60, %v1799_v58 }
 0x6f1   : > { %3508 = vrsqrt.f32 %v1810_v61  ;;  %v1795_v4 = vsub.f32 %v1779_v0, %v1787_v62  ;;  %v1748_v5 = vmul.f32 0.0078125, %v1739_v1  ;;  %v2447_v61 = vld [vmem:[%s4249_s23 + $0x80] sm:$0xff]  ;;  %v2448_v62 = vld [vmem:[%s4249_s23 + $0x88] sm:$0xff] }
 0x6f2   : > { %v1771_v7 = vpop.xlane.xlu1 %1770  ;;  %1967 = vmatmul.mubr.f32.vlgmr.msra.gmra.mrb[24].mxu1 %v1850_v28  ;;  %v1837_v10 = vmul.f32 %v4590_v51, %v1823_v3  ;;  %v3315_v0 = vpack.c.bf16 %v2448_v62, %v2447_v61  ;;  %v2431_v1 = vld [vmem:[%s4249_s23] sm:$0xff]  ;;  %v2432_v28 = vld [vmem:[%s4249_s23 + $0x8] sm:$0xff] }
 0x6f3   : > { %v3505_v44 = vpop.eup %3504  ;;  %v1811_v13 = vadd.f32 1e-05, %v1795_v4  ;;  %v1788_v14 = vmul.f32 %v1748_v5, %v1748_v5  ;;  %v1780_v15 = vmul.f32 0.0078125, %v1771_v7  ;;  %1972 = vmatprep.mubr.f32.mxu1 %v3872_v38  ;;  %v1804_v47 = vsub.f32 %v4551_v40, %v1748_v5  ;;  %v2449_v4 = vld [vmem:[%s4249_s23 + $0x90] sm:$0xff]  ;;  %v2451_v7 = vld [vmem:[%s4249_s23 + $0xa0] sm:$0xff] }
 0x6f4   : > { %v1741_v55 = vpop.xlane.xlu0 %1740  ;;  %v1851_v16 = vadd.f32 %v4597_v57, %v1837_v10  ;;  %v1824_v17 = vmul.f32 %v3505_v44, %v1800_v35  ;;  %v3317_v3 = vpack.c.bf16 %v2432_v28, %v2431_v1  ;;  %3316 = vmatprep.subr.bf16.mxu0 %v3315_v0  ;;  %v2433_v5 = vld [vmem:[%s4249_s23 + $0x10] sm:$0xff]  ;;  %v2452_v10 = vld [vmem:[%s4249_s23 + $0xa8] sm:$0xff] }
 0x6f5   : > { %3510 = vrsqrt.f32 %v1811_v13  ;;  %v1796_v18 = vsub.f32 %v1780_v15, %v1788_v14  ;;  %v1749_v19 = vmul.f32 0.0078125, %v1741_v55  ;;  %v3323_v44 = vpack.c.bf16 %v2452_v10, %v2451_v7  ;;  %v2435_v13 = vld [vmem:[%s4249_s23 + $0x20] sm:$0xff]  ;;  %v2436_v14 = vld [vmem:[%s4249_s23 + $0x28] sm:$0xff]  ;;  %v2453_v55 = vld [vmem:[%s4249_s23 + $0xb0] sm:$0xff] }
 0x6f6   : > { %v1773_v21 = vpop.xlane.xlu1 %1772  ;;  %1973 = vmatmul.mubr.f32.gmra.mrb[26].mxu1 %v1851_v16  ;;  %v1838_v8 = vmul.f32 %v4590_v51, %v1824_v17  ;;  %3318 = vmatpush3.bf16.msra.mxu0 %v3317_v3  ;;  %v3325_v15 = vpack.c.bf16 %v2436_v14, %v2435_v13  ;;  %v2454_v16 = vld [vmem:[%s4249_s23 + $0xb8] sm:$0xff] }
 0x6f7   : > { %v3507_v22 = vpop.eup %3506  ;;  %v1812_v20 = vadd.f32 1e-05, %v1796_v18  ;;  %v1789_v26 = vmul.f32 %v1749_v19, %v1749_v19  ;;  %v1781_v9 = vmul.f32 0.0078125, %v1773_v21  ;;  %1978 = vmatprep.mubr.f32.mxu1 %v3872_v38  ;;  %v1805_v53 = vsub.f32 %v4560_v12, %v1749_v19  ;;  %v2437_v18 = vld [vmem:[%s4249_s23 + $0x30] sm:$0xff]  ;;  %v2438_v19 = vld [vmem:[%s4249_s23 + $0x38] sm:$0xff]  ;;  %v2455_v21 = vld [vmem:[%s4249_s23 + $0xc0] sm:$0xff] }
 0x6f8   : > { %v1852_v29 = vadd.f32 %v4597_v57, %v1838_v8  ;;  %v1825_v30 = vmul.f32 %v3507_v22, %v1801_v24  ;;  %v3327_v17 = vpack.c.bf16 %v2454_v16, %v2453_v55  ;;  %v3329_v24 = vpack.c.bf16 %v2438_v19, %v2437_v18  ;;  %v2456_v8 = vld [vmem:[%s4249_s23 + $0xc8] sm:$0xff] }
 0x6f9   : > { %3512 = vrsqrt.f32 %v1812_v20  ;;  %v1797_v31 = vsub.f32 %v1781_v9, %v1789_v26  ;;  %v3331_v22 = vpack.c.bf16 %v2456_v8, %v2455_v21  ;;  %v2439_v20 = vld [vmem:[%s4249_s23 + $0x40] sm:$0xff]  ;;  %v2440_v26 = vld [vmem:[%s4249_s23 + $0x48] sm:$0xff] }
 0x6fa   : > { %1979 = vmatmul.mubr.f32.gmra.mrb[28].mxu1 %v1852_v29  ;;  %v1839_v32 = vmul.f32 %v4590_v51, %v1825_v30  ;;  %v3333_v9 = vpack.c.bf16 %v2440_v26, %v2439_v20  ;;  %v2457_v29 = vld [vmem:[%s4249_s23 + $0xd0] sm:$0xff]  ;;  %v2458_v30 = vld [vmem:[%s4249_s23 + $0xd8] sm:$0xff] }
 0x6fb   : > { %v3509_v33 = vpop.eup %3508  ;;  %v1813_v46 = vadd.f32 1e-05, %v1797_v31  ;;  %1984 = vmatprep.mubr.f32.mxu1 %v3872_v38  ;;  %v3335_v31 = vpack.c.bf16 %v2458_v30, %v2457_v29 }
 0x6fc   : > { %v1853_v34 = vadd.f32 %v4597_v57, %v1839_v32  ;;  %v1826_v37 = vmul.f32 %v3509_v33, %v1802_v27  ;;  %v2441_v27 = vld [vmem:[%s4249_s23 + $0x50] sm:$0xff]  ;;  %v2442_v32 = vld [vmem:[%s4249_s23 + $0x58] sm:$0xff] }
 0x6fd   : > { %3514 = vrsqrt.f32 %v1813_v46  ;;  %v3337_v33 = vpack.c.bf16 %v2442_v32, %v2441_v27  ;;  %v2459_v46 = vld [vmem:[%s4249_s23 + $0xe0] sm:$0xff] }
 0x6fe   : > { %1985 = vmatmul.mubr.f32.gmra.mrb[30].mxu1 %v1853_v34  ;;  %v1840_v41 = vmul.f32 %v4590_v51, %v1826_v37  ;;  %v2460_v34 = vld [vmem:[%s4249_s23 + $0xe8] sm:$0xff]  ;;  %v2443_v37 = vld [vmem:[%s4249_s23 + $0x60] sm:$0xff] }
 0x6ff   : > { %v3511_v43 = vpop.eup %3510  ;;  %1990 = vmatprep.mubr.f32.mxu1 %v3872_v38 }
 0x700   : > { %v1854_v42 = vadd.f32 %v4597_v57, %v1840_v41  ;;  %v1827_v45 = vmul.f32 %v3511_v43, %v1803_v39  ;;  %v3339_v39 = vpack.c.bf16 %v2460_v34, %v2459_v46  ;;  %v2444_v41 = vld [vmem:[%s4249_s23 + $0x68] sm:$0xff]  ;;  %v2461_v43 = vld [vmem:[%s4249_s23 + $0xf0] sm:$0xff] }
 0x702   : > { %1991 = vmatmul.mubr.f32.gmra.mrb[32].mxu1 %v1854_v42  ;;  %v1841_v48 = vmul.f32 %v4590_v51, %v1827_v45  ;;  %v2462_v42 = vld [vmem:[%s4249_s23 + $0xf8] sm:$0xff]  ;;  %v3341_v45 = vpack.c.bf16 %v2444_v41, %v2443_v37 }
 0x703   : > { %v3513_v49 = vpop.eup %3512  ;;  %1996 = vmatprep.mubr.f32.mxu1 %v3872_v38 }
 0x704   : > { %v1855_v50 = vadd.f32 %v4597_v57, %v1841_v48  ;;  %v1828_v52 = vmul.f32 %v3513_v49, %v1804_v47  ;;  %v3343_v47 = vpack.c.bf16 %v2462_v42, %v2461_v43  ;;  %v2445_v48 = vld [vmem:[%s4249_s23 + $0x70] sm:$0xff]  ;;  %v2446_v49 = vld [vmem:[%s4249_s23 + $0x78] sm:$0xff] }
 0x706   : > { %1997 = vmatmul.mubr.f32.gmra.mrb[34].mxu1 %v1855_v50  ;;  %v1842_v54 = vmul.f32 %v4590_v51, %v1828_v52  ;;  %v3345_v50 = vpack.c.bf16 %v2446_v49, %v2445_v48  ;;  %v1892_v52 = vlaneseq }
 0x707   : > { %v3515_v56 = vpop.eup %3514  ;;  %2002 = vmatprep.mubr.f32.mxu1 %v3872_v38 }
 0x708   : > { %v1856_v58 = vadd.f32 %v4597_v57, %v1842_v54  ;;  %v1829_v25 = vmul.f32 %v3515_v56, %v1805_v53  ;;  %v1893_v53 = vshrl.u32 %v1892_v52, 7  ;;  %v1890_v56 = vld [vmem:[%s4283_s25] sm:$0x3] }
 0x70a   : > { %2003 = vmatmul.mubr.f32.gmra.mrb[36].mxu1 %v1856_v58  ;;  %v1843_v59 = vmul.f32 %v4590_v51, %v1829_v25  ;;  %v2450_v51 = vld [vmem:[%s4249_s23 + $0x98] sm:$0xff]  ;;  %v1894_v54 = vsub.s32 0, %v1893_v53  ;;  %v1898_v58 = vsub.s32 1, %v1893_v53 }
 0x70b   : > { %2008 = vmatprep.mubr.f32.mxu1 %v3872_v38  ;;  %v3319_v38 = vpack.c.bf16 %v2450_v51, %v2449_v4 }
 0x70c   : > { %v1857_v60 = vadd.f32 %v4597_v57, %v1843_v59  ;;  %v2434_v57 = vld [vmem:[%s4249_s23 + $0x18] sm:$0xff]  ;;  %v4663_v25 = vrot.slane %v1890_v56, %v1894_v54  ;;  %v4665_v59 = vrot.slane %v1890_v56, %v1898_v58 }
 0x70d   : > { %v3321_v35 = vpack.c.bf16 %v2434_v57, %v2433_v5  ;;  %3320 = vmatprep.subr.bf16.mxu0 %v3319_v38 }
 0x70e   : > { %2009 = vmatmul.mubr.f32.gmra.mrb[38].mxu1 %v1857_v60 }
 0x70f   : > { %3322 = vmatpush3.bf16.msra.mxu0 %v3321_v35 }
 0x710   : > { %3324 = vmatprep.subr.bf16.mxu0 %v3323_v44 }
 0x713   : > { %3326 = vmatpush3.bf16.msra.mxu0 %v3325_v15 }
 0x714   : > { %3328 = vmatprep.subr.bf16.mxu0 %v3327_v17 }
 0x717   : > { %3330 = vmatpush3.bf16.msra.mxu0 %v3329_v24 }
 0x718   : > { %3332 = vmatprep.subr.bf16.mxu0 %v3331_v22 }
 0x71b   : > { %3334 = vmatpush3.bf16.msra.mxu0 %v3333_v9 }
 0x71c   : > { %3336 = vmatprep.subr.bf16.mxu0 %v3335_v31 }
 0x71f   : > { %3338 = vmatpush3.bf16.msra.mxu0 %v3337_v33 }
 0x720   : > { %3340 = vmatprep.subr.bf16.mxu0 %v3339_v39 }
 0x723   : > { %3342 = vmatpush3.bf16.msra.mxu0 %v3341_v45 }
 0x724   : > { %3344 = vmatprep.subr.bf16.mxu0 %v3343_v47 }
 0x727   : > { %3346 = vmatpush3.bf16.msra.mxu0 %v3345_v50 }
 0x7c5   : > { %v1968_v60 = vpop.f32.mrb[24].mxu1 }
 0x7c6   : > { %v1969_v61 = vadd.f32 %v1968_v60, %v4663_v25  ;;  %v1970_v62 = vpop.f32.mrb[25].mxu1 }
 0x7c7   : > { %v1971_v0 = vadd.f32 %v1970_v62, %v4665_v59 }
 0x7c8   : > { %v4669_v1 = vmul.f32 0.70710677, %v1969_v61  ;;  %v4703_v49 = vmul.f32 0.5, %v1969_v61 }
 0x7c9   : > { %v4671_v28 = vmul.f32 0.70710677, %v1971_v0  ;;  %v1974_v3 = vpop.f32.mrb[26].mxu1  ;;  %v4705_v50 = vmul.f32 0.5, %v1971_v0 }
 0x7ca   : > { %v2047_v4 = vand.u32 2147483647, %v4669_v1  ;;  %v1975_v51 = vadd.f32 %v1974_v3, %v4663_v25  ;;  %v1976_v38 = vpop.f32.mrb[27].mxu1  ;;  %vm2351_vm1 = vcmp.ge.f32.partialorder %v4669_v1, 0.0 }
 0x7cb   : > { %v1977_v5 = vadd.f32 %v1976_v38, %v4665_v59  ;;  %v2048_v35 = vand.u32 2147483647, %v4671_v28  ;;  %vm2352_vm2 = vcmp.ge.f32.partialorder %v4671_v28, 0.0 }
 0x7cc   : > { %v2063_v57 = vmul.f32 0.3275911, %v2047_v4  ;;  %v4677_v7 = vmul.f32 0.70710677, %v1975_v51  ;;  %v2255_v15 = vsub.f32 0.0, %v2047_v4 }
 0x7cd   : > { %v4679_v10 = vmul.f32 0.70710677, %v1977_v5  ;;  %v1980_v14 = vpop.f32.mrb[28].mxu1  ;;  %v2256_v16 = vsub.f32 0.0, %v2048_v35  ;;  %v2064_v24 = vmul.f32 0.3275911, %v2048_v35 }
 0x7ce   : > { %v2079_v44 = vadd.f32 1.0, %v2063_v57  ;;  %v2049_v13 = vand.u32 2147483647, %v4677_v7  ;;  %v1982_v55 = vpop.f32.mrb[29].mxu1  ;;  %v1981_v21 = vadd.f32 %v1980_v14, %v4663_v25  ;;  %v2271_v22 = vmul.f32 %v2255_v15, %v2047_v4 }
 0x7cf   : > { %v2050_v17 = vand.u32 2147483647, %v4679_v10  ;;  %v4685_v20 = vadd.f32 %v1982_v55, %v4665_v59  ;;  %v2272_v26 = vmul.f32 %v2256_v16, %v2048_v35  ;;  %v2080_v33 = vadd.f32 1.0, %v2064_v24 }
 0x7d0   : > { %3516 = vrcp.f32 %v2079_v44  ;;  %v2257_v18 = vsub.f32 0.0, %v2049_v13  ;;  %v4687_v29 = vmul.f32 0.70710677, %v1981_v21  ;;  %v2065_v30 = vmul.f32 0.3275911, %v2049_v13 }
 0x7d1   : > { %v1986_v19 = vpop.f32.mrb[30].mxu1  ;;  %v2258_v9 = vsub.f32 0.0, %v2050_v17  ;;  %v4690_v27 = vmul.f32 0.70710677, %v4685_v20  ;;  %v2066_v46 = vmul.f32 0.3275911, %v2050_v17  ;;  %3518 = vrcp.f32 %v2080_v33 }
 0x7d2   : > { %v1988_v8 = vpop.f32.mrb[31].mxu1  ;;  %v2273_v31 = vmul.f32 %v2257_v18, %v2049_v13  ;;  %v2051_v34 = vand.u32 2147483647, %v4687_v29  ;;  %v4694_v37 = vadd.f32 %v1986_v19, %v4663_v25  ;;  %v2287_v41 = vmul.f32 1.442695, %v2271_v22 }
 0x7d3   : > { %v2052_v43 = vand.u32 2147483647, %v4690_v27  ;;  %v4698_v42 = vadd.f32 %v1988_v8, %v4665_v59  ;;  %v2289_v45 = vmul.f32 1.442695, %v2272_v26  ;;  %v2274_v47 = vmul.f32 %v2258_v9, %v2050_v17 }
 0x7d4   : > { %v4701_v48 = vmul.f32 0.70710677, %v4694_v37  ;;  %v2081_v52 = vadd.f32 1.0, %v2065_v30  ;;  %v2291_v53 = vmul.f32 1.442695, %v2273_v31  ;;  %v2082_v56 = vadd.f32 1.0, %v2066_v46 }
 0x7d5   : > { %v1992_v32 = vpop.f32.mrb[32].mxu1  ;;  %v2067_v58 = vmul.f32 0.3275911, %v2051_v34  ;;  %v4710_v60 = vmul.f32 0.70710677, %v4698_v42  ;;  %3520 = vpow2.f32 %v2287_v41  ;;  %v2259_v4 = vsub.f32 0.0, %v2051_v34 }
 0x7d6   : > { %v1994_v39 = vpop.f32.mrb[33].mxu1  ;;  %v2068_v38 = vmul.f32 0.3275911, %v2052_v43  ;;  %3522 = vpow2.f32 %v2289_v45  ;;  %v2293_v0 = vmul.f32 1.442695, %v2274_v47  ;;  %v2260_v57 = vsub.f32 0.0, %v2052_v43 }
 0x7d7   : > { %v2053_v35 = vand.u32 2147483647, %v4701_v48  ;;  %v4714_v13 = vmul.f32 0.5, %v1975_v51  ;;  %3524 = vrcp.f32 %v2081_v52  ;;  %v4716_v14 = vmul.f32 0.5, %v1977_v5 }
 0x7d8   : > { %3526 = vrcp.f32 %v2082_v56  ;;  %v4718_v15 = vmul.f32 0.5, %v1981_v21  ;;  %v2083_v55 = vadd.f32 1.0, %v2067_v58  ;;  %v2054_v16 = vand.u32 2147483647, %v4710_v60 }
 0x7d9   : > { %v1998_v62 = vpop.f32.mrb[34].mxu1  ;;  %3528 = vpow2.f32 %v2291_v53  ;;  %v2275_v19 = vmul.f32 %v2259_v4, %v2051_v34  ;;  %v2084_v24 = vadd.f32 1.0, %v2068_v38  ;;  %v2276_v51 = vmul.f32 %v2260_v57, %v2052_v43 }
 0x7da   : > { %v4707_v54 = vpop.eup %3516  ;;  %v2000_v61 = vpop.f32.mrb[35].mxu1  ;;  %3530 = vpow2.f32 %v2293_v0  ;;  %v2261_v22 = vsub.f32 0.0, %v2053_v35  ;;  %v4727_v5 = vadd.f32 %v1992_v32, %v4663_v25  ;;  %v2069_v26 = vmul.f32 0.3275911, %v2053_v35 }
 0x7db   : > { %v2111_v3 = vmul.f32 1.0614054, %v4707_v54  ;;  %v4730_v9 = vadd.f32 %v1994_v39, %v4665_v59  ;;  %v4733_v30 = vadd.f32 %v1998_v62, %v4663_v25  ;;  %3532 = vrcp.f32 %v2083_v55  ;;  %v4746_v45 = vpop.eup %3518 }
 0x7dc   : > { %v2070_v33 = vmul.f32 0.3275911, %v2054_v16  ;;  %v2262_v46 = vsub.f32 0.0, %v2054_v16  ;;  %v4738_v34 = vmul.f32 0.70710677, %v4727_v5  ;;  %3534 = vrcp.f32 %v2084_v24 }
 0x7dd   : > { %v2127_v44 = vadd.f32 -1.4531521, %v2111_v3  ;;  %v4721_v17 = vpop.f32.mrb[36].mxu1  ;;  %5174 = vst [vmem:[#allocation33_spill] sm:$0xff] %v4733_v30  ;;  %v2295_v43 = vmul.f32 1.442695, %v2275_v19  ;;  %v2277_v52 = vmul.f32 %v2261_v22, %v2053_v35  ;;  %v4754_v38 = vadd.f32 %v2000_v61, %v4665_v59 }
 0x7de   : > { %v4724_v8 = vpop.f32.mrb[37].mxu1  ;;  %v4744_v39 = vmul.f32 0.70710677, %v4730_v9  ;;  %v2297_v47 = vmul.f32 1.442695, %v2276_v51  ;;  %v2085_v3 = vadd.f32 1.0, %v2069_v26 }
 0x7df   : > { %v2143_v18 = vmul.f32 %v4707_v54, %v2127_v44  ;;  %v2055_v53 = vand.u32 2147483647, %v4738_v34  ;;  %v4750_v56 = vmul.f32 0.70710677, %v4733_v30  ;;  %v3521_v58 = vpop.eup %3520  ;;  %5175 = vst [vmem:[#allocation34_spill] sm:$0xff] %v4754_v38  ;;  %v2086_v57 = vadd.f32 1.0, %v2070_v33 }
 0x7e0   : > { %v2056_v4 = vand.u32 2147483647, %v4744_v39  ;;  %v4756_v0 = vpop.eup %3522  ;;  %v2278_v44 = vmul.f32 %v2262_v46, %v2054_v16  ;;  %3536 = vpow2.f32 %v2295_v43  ;;  %v2299_v61 = vmul.f32 1.442695, %v2277_v52 }
 0x7e1   : > { %v2159_v21 = vadd.f32 1.4214138, %v2143_v18  ;;  %v4735_v31 = vpop.f32.mrb[38].mxu1  ;;  %v2263_v55 = vsub.f32 0.0, %v2055_v53  ;;  %v2057_v35 = vand.u32 2147483647, %v4750_v56  ;;  %v4759_v18 = vpop.eup %3524  ;;  %3538 = vpow2.f32 %v2297_v47 }
 0x7e2   : > { %v4740_v41 = vpop.f32.mrb[39].mxu1  ;;  %v2071_v24 = vmul.f32 0.3275911, %v2055_v53  ;;  %v2264_v51 = vsub.f32 0.0, %v2056_v4  ;;  %v4762_v22 = vpop.eup %3526  ;;  %v2072_v26 = vmul.f32 0.3275911, %v2056_v4  ;;  %3540 = vrcp.f32 %v2085_v3 }
 0x7e3   : > { %v2175_v32 = vmul.f32 %v4707_v54, %v2159_v21  ;;  %v4765_v21 = vmul.f32 0.5, %v4685_v20  ;;  %v4767_v33 = vpop.eup %3528  ;;  %v2265_v46 = vsub.f32 0.0, %v2057_v35  ;;  %v4776_v43 = vmul.f32 0.5, %v4694_v37 }
 0x7e4   : > { %3542 = vrcp.f32 %v2086_v57  ;;  %v2301_v20 = vmul.f32 1.442695, %v2278_v44  ;;  %v2279_v47 = vmul.f32 %v2263_v55, %v2055_v53  ;;  %v2087_v12 = vadd.f32 1.0, %v2071_v24 }
 0x7e5   : > { %v2191_v62 = vadd.f32 -0.28449672, %v2175_v32  ;;  %v4770_v32 = vmul.f32 0.70710677, %v4754_v38  ;;  %v2280_v40 = vmul.f32 %v2264_v51, %v2056_v4  ;;  %3544 = vpow2.f32 %v2299_v61 }
 0x7e6   : > { %v4783_v36 = vmul.f32 0.5, %v4698_v42  ;;  %v2073_v23 = vmul.f32 0.3275911, %v2057_v35  ;;  %v4787_v37 = vadd.f32 %v4721_v17, %v4663_v25  ;;  %v2088_v44 = vadd.f32 1.0, %v2072_v26 }
 0x7e7   : > { %v2207_v19 = vmul.f32 %v4707_v54, %v2191_v62  ;;  %5176 = vst [vmem:[#allocation35_spill] sm:$0xff] %v4770_v32  ;;  %v4772_v62 = vpop.eup %3530  ;;  %v2058_v3 = vand.u32 2147483647, %v4770_v32  ;;  %3546 = vpow2.f32 %v2301_v20  ;;  %v2303_v4 = vmul.f32 1.442695, %v2279_v47 }
 0x7e8   : > { %5177 = vst [vmem:[#allocation36_spill] sm:$0xff] %v4787_v37  ;;  %v4792_v24 = vmul.f32 0.70710677, %v4787_v37  ;;  %v4796_v42 = vadd.f32 %v4724_v8, %v4665_v59  ;;  %3548 = vrcp.f32 %v2087_v12  ;;  %v2305_v61 = vmul.f32 1.442695, %v2280_v40 }
 0x7e9   : > { %v2223_v16 = vadd.f32 0.2548296, %v2207_v19  ;;  %v4780_v19 = vpop.eup %3532  ;;  %v2266_v55 = vsub.f32 0.0, %v2058_v3  ;;  %v2074_v17 = vmul.f32 0.3275911, %v2058_v3  ;;  %3550 = vrcp.f32 %v2088_v44 }
 0x7ea   : > { %v4789_v57 = vpop.eup %3534  ;;  %5178 = vst [vmem:[#allocation37_spill] sm:$0xff] %v4792_v24  ;;  %5179 = vst [vmem:[#allocation38_spill] sm:$0xff] %v4796_v42  ;;  %v4806_v8 = vadd.f32 %v4735_v31, %v4663_v25  ;;  %3552 = vpow2.f32 %v2303_v4  ;;  %v4823_v63 = vadd.f32 %v4740_v41, %v4665_v59  ;;  %v2112_v59 = vmul.f32 1.0614054, %v4746_v45 }
 0x7eb   : > { %v2239_v52 = vmul.f32 %v4707_v54, %v2223_v16  ;;  %v2281_v54 = vmul.f32 %v2265_v46, %v2057_v35  ;;  %v2089_v16 = vadd.f32 1.0, %v2073_v23  ;;  %v2282_v11 = vmul.f32 %v2266_v55, %v2058_v3  ;;  %v4802_v26 = vpop.eup %3536 }
 0x7ec   : > { %v4800_v35 = vmul.f32 0.70710677, %v4796_v42  ;;  %5181 = vst [vmem:[#allocation40_spill] sm:$0xff] %v4806_v8  ;;  %v4808_v47 = vpop.eup %3538  ;;  %3554 = vpow2.f32 %v2305_v61  ;;  %v4816_v44 = vmul.f32 0.70710677, %v4806_v8  ;;  %5183 = vst [vmem:[#allocation42_spill] sm:$0xff] %v4823_v63 }
 0x7ed   : > { %v2319_v53 = vmul.f32 %v3521_v58, %v2239_v52  ;;  %v2059_v58 = vand.u32 2147483647, %v4792_v24  ;;  %v2307_v20 = vmul.f32 1.442695, %v2281_v54  ;;  %v4811_v52 = vpop.eup %3540  ;;  %3556 = vrcp.f32 %v2089_v16 }
 0x7ee   : > { %5180 = vst [vmem:[#allocation39_spill] sm:$0xff] %v4800_v35  ;;  %v2060_v12 = vand.u32 2147483647, %v4800_v35  ;;  %5182 = vst [vmem:[#allocation41_spill] sm:$0xff] %v4816_v44  ;;  %v4818_v54 = vpop.eup %3542  ;;  %v2309_v25 = vmul.f32 1.442695, %v2282_v11 }
 0x7ef   : > { %v2335_v51 = vsub.f32 1.0, %v2319_v53  ;;  %v2075_v40 = vmul.f32 0.3275911, %v2059_v58  ;;  %v2267_v23 = vsub.f32 0.0, %v2059_v58  ;;  %v2090_v53 = vadd.f32 1.0, %v2074_v17  ;;  %v4825_v1 = vpop.eup %3544 }
 0x7f0   : > { %v2076_v55 = vmul.f32 0.3275911, %v2060_v12  ;;  %v2268_v6 = vsub.f32 0.0, %v2060_v12  ;;  %v2061_v2 = vand.u32 2147483647, %v4816_v44  ;;  %v4828_v61 = vmul.f32 0.5, %v4727_v5 }
 0x7f1   : > { %v2367_v46 = vsub.f32 0.0, %v2335_v51  ;;  %v2283_v31 = vmul.f32 %v2267_v23, %v2059_v58  ;;  %v2091_v4 = vadd.f32 1.0, %v2075_v40  ;;  %3558 = vpow2.f32 %v2307_v20 }
 0x7f2   : > { %5184 = vst [vmem:[#allocation43_spill] sm:$0xff] %v4828_v61  ;;  %3560 = vrcp.f32 %v2090_v53  ;;  %v2092_v11 = vadd.f32 1.0, %v2076_v55  ;;  %v2284_v16 = vmul.f32 %v2268_v6, %v2060_v12  ;;  %v2077_v58 = vmul.f32 0.3275911, %v2061_v2 }
 0x7f3   : > { %v2383_v3 = vsel %vm2351_vm1, %v2335_v51, %v2367_v46  ;;  %v2311_v17 = vmul.f32 1.442695, %v2283_v31  ;;  %v4830_v46 = vpop.eup %3546  ;;  %3562 = vpow2.f32 %v2309_v25  ;;  %v4833_v40 = vmul.f32 0.70710677, %v4823_v63 }
 0x7f4   : > { %v2399_v51 = vadd.f32 1.0, %v2383_v3  ;;  %v2114_v41 = vmul.f32 1.0614054, %v4762_v22  ;;  %v4837_v23 = vpop.eup %3548  ;;  %v4840_v5 = vmul.f32 0.5, %v4730_v9  ;;  %3564 = vrcp.f32 %v2091_v4 }
 0x7f5   : > { %5185 = vst [vmem:[#allocation44_spill] sm:$0xff] %v4833_v40  ;;  %v2313_v20 = vmul.f32 1.442695, %v2284_v16  ;;  %v2093_v3 = vadd.f32 1.0, %v2077_v58  ;;  %3566 = vpow2.f32 %v2311_v17  ;;  %v2062_v12 = vand.u32 2147483647, %v4833_v40  ;;  %v4846_v25 = vpop.eup %3550 }
 0x7f6   : > { %v4843_v6 = vmul.f32 %v2399_v51, %v4703_v49  ;;  %v2128_v53 = vadd.f32 -1.4531521, %v2112_v59  ;;  %3568 = vrcp.f32 %v2092_v11  ;;  %v2269_v31 = vsub.f32 0.0, %v2061_v2  ;;  %v4849_v44 = vpop.eup %3552 }
 0x7f7   : > { %v2130_v55 = vadd.f32 -1.4531521, %v2114_v41  ;;  %v2113_v8 = vmul.f32 1.0614054, %v4759_v18  ;;  %3570 = vpow2.f32 %v2313_v20  ;;  %v2078_v9 = vmul.f32 0.3275911, %v2062_v12  ;;  %v4852_v49 = vpop.eup %3554 }
 0x7f8   : > { %v2270_v4 = vsub.f32 0.0, %v2062_v12  ;;  %v2144_v16 = vmul.f32 %v4746_v45, %v2128_v53  ;;  %3572 = vrcp.f32 %v2093_v3  ;;  %v2116_v58 = vmul.f32 1.0614054, %v4789_v57  ;;  %v4856_v11 = vpop.eup %3556 }
 0x7f9   : > { %v2146_v51 = vmul.f32 %v4762_v22, %v2130_v55  ;;  %v2129_v17 = vadd.f32 -1.4531521, %v2113_v8  ;;  %v2094_v59 = vadd.f32 1.0, %v2078_v9  ;;  %v2115_v37 = vmul.f32 1.0614054, %v4780_v19 }
 0x7fa   : > { %v2286_v41 = vmul.f32 %v2270_v4, %v2062_v12  ;;  %v2160_v63 = vadd.f32 1.4214138, %v2144_v16  ;;  %v2132_v42 = vadd.f32 -1.4531521, %v2116_v58  ;;  %v2118_v53 = vmul.f32 1.0614054, %v4818_v54 }
 0x7fb   : > { %v2162_v20 = vadd.f32 1.4214138, %v2146_v51  ;;  %v2145_v40 = vmul.f32 %v4759_v18, %v2129_v17  ;;  %v4861_v24 = vpop.eup %3558  ;;  %v4863_v3 = vmul.f32 %v2269_v31, %v2061_v2  ;;  %3574 = vrcp.f32 %v2094_v59 }
 0x7fc   : > { %5186 = vst [vmem:[#allocation45_spill] sm:$0xff] %v4861_v24  ;;  %v2176_v8 = vmul.f32 %v4746_v45, %v2160_v63  ;;  %v2131_v55 = vadd.f32 -1.4531521, %v2115_v37  ;;  %v4866_v30 = vpop.eup %3560  ;;  %v2148_v4 = vmul.f32 %v4789_v57, %v2132_v42  ;;  %v2134_v16 = vadd.f32 -1.4531521, %v2118_v53 }
 0x7fd   : > { %v2178_v12 = vmul.f32 %v4762_v22, %v2162_v20  ;;  %v2161_v9 = vadd.f32 1.4214138, %v2145_v40  ;;  %v4870_v51 = vpop.eup %3562  ;;  %v4872_v17 = vmul.f32 1.442695, %v2286_v41  ;;  %v2117_v31 = vmul.f32 1.0614054, %v4811_v52 }
 0x7fe   : > { %5187 = vst [vmem:[#allocation46_spill] sm:$0xff] %v4870_v51  ;;  %v2192_v58 = vadd.f32 -0.28449672, %v2176_v8  ;;  %v2147_v2 = vmul.f32 %v4780_v19, %v2131_v55  ;;  %v4876_v59 = vpop.eup %3564  ;;  %v2164_v61 = vadd.f32 1.4214138, %v2148_v4  ;;  %v2150_v40 = vmul.f32 %v4818_v54, %v2134_v16 }
 0x7ff   : > { %v2194_v63 = vadd.f32 -0.28449672, %v2178_v12  ;;  %v2177_v37 = vmul.f32 %v4759_v18, %v2161_v9  ;;  %v4880_v20 = vpop.eup %3566  ;;  %v2133_v41 = vadd.f32 -1.4531521, %v2117_v31  ;;  %v2120_v8 = vmul.f32 1.0614054, %v4846_v25 }
 0x800   : > { %5188 = vst [vmem:[#allocation47_spill] sm:$0xff] %v4880_v20  ;;  %v2208_v42 = vmul.f32 %v4746_v45, %v2192_v58  ;;  %v2163_v53 = vadd.f32 1.4214138, %v2147_v2  ;;  %v4884_v35 = vpop.eup %3568  ;;  %v2180_v12 = vmul.f32 %v4789_v57, %v2164_v61  ;;  %v2166_v38 = vadd.f32 1.4214138, %v2150_v40 }
 0x801   : > { %v2210_v55 = vmul.f32 %v4762_v22, %v2194_v63  ;;  %v2193_v32 = vadd.f32 -0.28449672, %v2177_v37  ;;  %v4888_v9 = vpop.eup %3570  ;;  %v2149_v20 = vmul.f32 %v4811_v52, %v2133_v41  ;;  %v2136_v58 = vadd.f32 -1.4531521, %v2120_v8 }
 0x802   : > { %5189 = vst [vmem:[#allocation48_spill] sm:$0xff] %v4888_v9  ;;  %v2224_v4 = vadd.f32 0.2548296, %v2208_v42  ;;  %v2179_v16 = vmul.f32 %v4780_v19, %v2163_v53  ;;  %v4892_v2 = vpop.eup %3572  ;;  %v2196_v63 = vadd.f32 -0.28449672, %v2180_v12  ;;  %v2182_v37 = vmul.f32 %v4818_v54, %v2166_v38 }
 0x803   : > { %v2226_v31 = vadd.f32 0.2548296, %v2210_v55  ;;  %v2209_v24 = vmul.f32 %v4759_v18, %v2193_v32  ;;  %vm2354_vm3 = vcmp.ge.f32.partialorder %v4679_v10, 0.0  ;;  %v2165_v42 = vadd.f32 1.4214138, %v2149_v20 }
 0x804   : > { %v2240_v61 = vmul.f32 %v4746_v45, %v2224_v4  ;;  %v2195_v40 = vadd.f32 -0.28449672, %v2179_v16  ;;  %v2152_v53 = vmul.f32 %v4846_v25, %v2136_v58  ;;  %v2212_v9 = vmul.f32 %v4789_v57, %v2196_v63 }
 0x805   : > { %v2242_v41 = vmul.f32 %v4762_v22, %v2226_v31  ;;  %v2225_v8 = vadd.f32 0.2548296, %v2209_v24  ;;  %v2198_v51 = vadd.f32 -0.28449672, %v2182_v37  ;;  %v4902_v55 = vpop.eup %3574  ;;  %vm2353_vm4 = vcmp.ge.f32.partialorder %v4677_v7, 0.0 }
 0x806   : > { %v2320_v38 = vmul.f32 %v4756_v0, %v2240_v61  ;;  %v2211_v32 = vmul.f32 %v4780_v19, %v2195_v40  ;;  %v2181_v45 = vmul.f32 %v4811_v52, %v2165_v42  ;;  %v2168_v12 = vadd.f32 1.4214138, %v2152_v53 }
 0x807   : > { %v2322_v20 = vmul.f32 %v4772_v62, %v2242_v41  ;;  %v2241_v4 = vmul.f32 %v4759_v18, %v2225_v8  ;;  %v2228_v22 = vadd.f32 0.2548296, %v2212_v9  ;;  %v2214_v24 = vmul.f32 %v4818_v54, %v2198_v51 }
 0x808   : > { %vm2356_vm5 = vcmp.ge.f32.partialorder %v4690_v27, 0.0  ;;  %v2336_v16 = vsub.f32 1.0, %v2320_v38  ;;  %v2227_v58 = vadd.f32 0.2548296, %v2211_v32  ;;  %v2197_v31 = vadd.f32 -0.28449672, %v2181_v45 }
 0x809   : > { %v2184_v63 = vmul.f32 %v4846_v25, %v2168_v12  ;;  %vm2355_vm6 = vcmp.ge.f32.partialorder %v4687_v29, 0.0  ;;  %v2338_v0 = vsub.f32 1.0, %v2322_v20  ;;  %v2321_v37 = vmul.f32 %v4767_v33, %v2241_v4 }
 0x80a   : > { %v2244_v61 = vmul.f32 %v4789_v57, %v2228_v22  ;;  %v2230_v62 = vadd.f32 0.2548296, %v2214_v24  ;;  %v2368_v40 = vsub.f32 0.0, %v2336_v16  ;;  %v2243_v18 = vmul.f32 %v4780_v19, %v2227_v58 }
 0x80b   : > { %v2213_v51 = vmul.f32 %v4811_v52, %v2197_v31  ;;  %v2200_v9 = vadd.f32 -0.28449672, %v2184_v63  ;;  %vm2358_vm7 = vcmp.ge.f32.partialorder %v4710_v60, 0.0  ;;  %v2370_v42 = vsub.f32 0.0, %v2338_v0 }
 0x80c   : > { %v2337_v53 = vsub.f32 1.0, %v2321_v37  ;;  %v2324_v41 = vmul.f32 %v4808_v47, %v2244_v61  ;;  %v2246_v8 = vmul.f32 %v4818_v54, %v2230_v62  ;;  %v2384_v33 = vsel %vm2352_vm2, %v2336_v16, %v2368_v40 }
 0x80d   : > { %v2323_v57 = vmul.f32 %v4802_v26, %v2243_v18  ;;  %v2229_v38 = vadd.f32 0.2548296, %v2213_v51  ;;  %v2216_v32 = vmul.f32 %v4846_v25, %v2200_v9  ;;  %v2400_v19 = vadd.f32 1.0, %v2384_v33 }
 0x80e   : > { %v2386_v45 = vsel %vm2354_vm3, %v2338_v0, %v2370_v42  ;;  %v2369_v12 = vsub.f32 0.0, %v2337_v53  ;;  %v2340_v20 = vsub.f32 1.0, %v2324_v41  ;;  %vm2357_vm8 = vcmp.ge.f32.partialorder %v4701_v48, 0.0 }
 0x80f   : > { %v2402_v4 = vadd.f32 1.0, %v2386_v45  ;;  %v2339_v47 = vsub.f32 1.0, %v2323_v57  ;;  %v2326_v54 = vmul.f32 %v4830_v46, %v2246_v8  ;;  %v2245_v28 = vmul.f32 %v4811_v52, %v2229_v38 }
 0x810   : > { %v2416_v22 = vmul.f32 %v2400_v19, %v4705_v50  ;;  %v2385_v26 = vsel %vm2353_vm4, %v2337_v53, %v2369_v12  ;;  %v2372_v24 = vsub.f32 0.0, %v2340_v20  ;;  %v2232_v16 = vadd.f32 0.2548296, %v2216_v32 }
 0x811   : > { %vm2360_vm9 = vcmp.ge.f32.partialorder %v4744_v39, 0.0  ;;  %v2418_v10 = vmul.f32 %v2402_v4, %v4716_v14  ;;  %v2401_v58 = vadd.f32 1.0, %v2385_v26  ;;  %v2371_v31 = vsub.f32 0.0, %v2339_v47 }
 0x812   : > { %v2342_v63 = vsub.f32 1.0, %v2326_v54  ;;  %2534 = vmatprep.mubr.f32.mxu0 %v2416_v22  ;;  %v2388_v46 = vsel %vm2356_vm5, %v2340_v20, %v2372_v24  ;;  %v2325_v52 = vmul.f32 %v4825_v1, %v2245_v28  ;;  %v2248_v50 = vmul.f32 %v4846_v25, %v2232_v16 }
 0x813   : > { %v2119_v7 = vmul.f32 1.0614054, %v4837_v23  ;;  %2535 = vmatmul.mubr.f32.vlgmr.msra.gmra.mrb[24].mxu0 %v4843_v6  ;;  %v2417_v0 = vmul.f32 %v2401_v58, %v4714_v13  ;;  %v2404_v37 = vadd.f32 1.0, %v2388_v46  ;;  %v2387_v14 = vsel %vm2355_vm6, %v2339_v47, %v2371_v31 }
 0x814   : > { %v2374_v61 = vsub.f32 0.0, %v2342_v63  ;;  %2539 = vmatprep.mubr.f32.mxu0 %v2418_v10  ;;  %v2403_v62 = vadd.f32 1.0, %v2387_v14  ;;  %v2341_v40 = vsub.f32 1.0, %v2325_v52  ;;  %v2328_v27 = vmul.f32 %v4852_v49, %v2248_v50 }
 0x815   : > { %v2135_v18 = vadd.f32 -1.4531521, %v2119_v7  ;;  %v2420_v1 = vmul.f32 %v2404_v37, %v4765_v21  ;;  %v2122_v6 = vmul.f32 1.0614054, %v4866_v30  ;;  %v2121_v13 = vmul.f32 1.0614054, %v4856_v11 }
 0x816   : > { %v2390_v25 = vsel %vm2358_vm7, %v2342_v63, %v2374_v61  ;;  %v2419_v51 = vmul.f32 %v2403_v62, %v4718_v15  ;;  %v2373_v9 = vsub.f32 0.0, %v2341_v40  ;;  %v2344_v42 = vsub.f32 1.0, %v2328_v27 }
 0x817   : > { %v2406_v29 = vadd.f32 1.0, %v2390_v25  ;;  %2540 = vmatmul.mubr.f32.gmra.mrb[26].mxu0 %v2417_v0  ;;  %v2151_v53 = vmul.f32 %v4837_v23, %v2135_v18  ;;  %v2138_v41 = vadd.f32 -1.4531521, %v2122_v6  ;;  %v2137_v49 = vadd.f32 -1.4531521, %v2121_v13 }
 0x818   : > { %v2124_v8 = vmul.f32 1.0614054, %v4884_v35  ;;  %2544 = vmatprep.mubr.f32.mxu0 %v2420_v1  ;;  %v2389_v21 = vsel %vm2357_vm8, %v2341_v40, %v2373_v9  ;;  %v2376_v33 = vsub.f32 0.0, %v2344_v42  ;;  %v2123_v57 = vmul.f32 1.0614054, %v4876_v59 }
 0x819   : > { %v2422_v60 = vmul.f32 %v2406_v29, %v4783_v36  ;;  %v2405_v15 = vadd.f32 1.0, %v2389_v21  ;;  %v2167_v38 = vadd.f32 1.4214138, %v2151_v53  ;;  %v2154_v32 = vmul.f32 %v4866_v30, %v2138_v41 }
 0x81a   : > { %v2153_v19 = vmul.f32 %v4856_v11, %v2137_v49  ;;  %v2392_v45 = vsel %vm2360_vm9, %v2344_v42, %v2376_v33  ;;  %v2140_v12 = vadd.f32 -1.4531521, %v2124_v8  ;;  %v2139_v20 = vadd.f32 -1.4531521, %v2123_v57  ;;  %v5190_v57 = vld [vmem:[#allocation46_spill] sm:$0xff] }
 0x81b   : > { %v2126_v4 = vmul.f32 1.0614054, %v4902_v55  ;;  %2545 = vmatmul.mubr.f32.gmra.mrb[28].mxu0 %v2419_v51  ;;  %v2421_v36 = vmul.f32 %v2405_v15, %v4776_v43  ;;  %v2408_v48 = vadd.f32 1.0, %v2392_v45  ;;  %v2183_v47 = vmul.f32 %v4837_v23, %v2167_v38 }
 0x81c   : > { %v2170_v54 = vadd.f32 1.4214138, %v2154_v32  ;;  %2549 = vmatprep.mubr.f32.mxu0 %v2422_v60  ;;  %v2169_v28 = vadd.f32 1.4214138, %v2153_v19  ;;  %v2156_v22 = vmul.f32 %v4884_v35, %v2140_v12  ;;  %v2155_v26 = vmul.f32 %v4876_v59, %v2139_v20  ;;  %v5191_v32 = vld [vmem:[#allocation45_spill] sm:$0xff]  ;;  %v5192_v12 = vld [vmem:[#allocation34_spill] sm:$0xff] }
 0x81d   : > { %v2142_v24 = vadd.f32 -1.4531521, %v2126_v4  ;;  %v2424_v39 = vmul.f32 %v2408_v48, %v4840_v5  ;;  %v2199_v16 = vadd.f32 -0.28449672, %v2183_v47  ;;  %v2125_v58 = vmul.f32 1.0614054, %v4892_v2 }
 0x81e   : > { %v2186_v10 = vmul.f32 %v4866_v30, %v2170_v54  ;;  %v2185_v43 = vmul.f32 %v4856_v11, %v2169_v28  ;;  %v2172_v31 = vadd.f32 1.4214138, %v2156_v22  ;;  %v2171_v63 = vadd.f32 1.4214138, %v2155_v26  ;;  %v5193_v47 = vld [vmem:[#allocation48_spill] sm:$0xff]  ;;  %v5194_v28 = vld [vmem:[#allocation47_spill] sm:$0xff] }
 0x81f   : > { %v2158_v46 = vmul.f32 %v4902_v55, %v2142_v24  ;;  %v2315_v52 = vmul.f32 1.442695, %v4863_v3  ;;  %2550 = vmatmul.mubr.f32.gmra.mrb[30].mxu0 %v2421_v36  ;;  %v2215_v50 = vmul.f32 %v4837_v23, %v2199_v16  ;;  %v2141_v0 = vadd.f32 -1.4531521, %v2125_v58 }
 0x820   : > { %v2202_v7 = vadd.f32 -0.28449672, %v2186_v10  ;;  %2554 = vmatprep.mubr.f32.mxu0 %v2424_v39  ;;  %v2201_v5 = vadd.f32 -0.28449672, %v2185_v43  ;;  %v2188_v37 = vmul.f32 %v4884_v35, %v2172_v31  ;;  %v2187_v14 = vmul.f32 %v4876_v59, %v2171_v63  ;;  %v5195_v39 = vld [vmem:[#allocation35_spill] sm:$0xff] }
 0x821   : > { %v2174_v61 = vadd.f32 1.4214138, %v2158_v46  ;;  %3576 = vpow2.f32 %v4872_v17  ;;  %v2231_v62 = vadd.f32 0.2548296, %v2215_v50  ;;  %v2157_v27 = vmul.f32 %v4892_v2, %v2141_v0  ;;  %v5196_v46 = vld [vmem:[#allocation39_spill] sm:$0xff] }
 0x822   : > { %v2218_v40 = vmul.f32 %v4866_v30, %v2202_v7  ;;  %v2217_v3 = vmul.f32 %v4856_v11, %v2201_v5  ;;  %v2204_v18 = vadd.f32 -0.28449672, %v2188_v37  ;;  %v2203_v1 = vadd.f32 -0.28449672, %v2187_v14 }
 0x823   : > { %v2190_v25 = vmul.f32 %v4902_v55, %v2174_v61  ;;  %3578 = vpow2.f32 %v2315_v52  ;;  %v2247_v6 = vmul.f32 %v4837_v23, %v2231_v62  ;;  %v2173_v51 = vadd.f32 1.4214138, %v2157_v27  ;;  %v5198_v27 = vld [vmem:[#allocation33_spill] sm:$0xff] }
 0x824   : > { %v2234_v13 = vadd.f32 0.2548296, %v2218_v40  ;;  %v2233_v29 = vadd.f32 0.2548296, %v2217_v3  ;;  %v2220_v9 = vmul.f32 %v4884_v35, %v2204_v18  ;;  %v2219_v17 = vmul.f32 %v4876_v59, %v2203_v1  ;;  %v5199_v18 = vld [vmem:[#allocation37_spill] sm:$0xff] }
 0x825   : > { %v2206_v42 = vadd.f32 -0.28449672, %v2190_v25  ;;  %vm2359_vm10 = vcmp.ge.f32.partialorder %v4738_v34, 0.0  ;;  %v2327_v53 = vmul.f32 %v4849_v44, %v2247_v6  ;;  %v2189_v49 = vmul.f32 %v4892_v2, %v2173_v51  ;;  %v5200_v25 = vld [vmem:[#allocation38_spill] sm:$0xff] }
 0x826   : > { %v2250_v41 = vmul.f32 %v4866_v30, %v2234_v13  ;;  %v2249_v8 = vmul.f32 %v4856_v11, %v2233_v29  ;;  %v2236_v60 = vadd.f32 0.2548296, %v2220_v9  ;;  %v2235_v23 = vadd.f32 0.2548296, %v2219_v17  ;;  %v5201_v29 = vld [vmem:[#allocation44_spill] sm:$0xff] }
 0x827   : > { %v2222_v21 = vmul.f32 %v4902_v55, %v2206_v42  ;;  %vm2361_vm11 = vcmp.ge.f32.partialorder %v4750_v56, 0.0  ;;  %v2343_v33 = vsub.f32 1.0, %v2327_v53  ;;  %v2205_v38 = vadd.f32 -0.28449672, %v2189_v49  ;;  %v5202_v49 = vld [vmem:[#allocation36_spill] sm:$0xff] }
 0x828   : > { %v2330_v15 = vmul.f32 %v5190_v57, %v2250_v41  ;;  %v2329_v19 = vmul.f32 %v5191_v32, %v2249_v8  ;;  %v2252_v44 = vmul.f32 %v4884_v35, %v2236_v60  ;;  %v2251_v30 = vmul.f32 %v4876_v59, %v2235_v23  ;;  %v5203_v60 = vld [vmem:[#allocation42_spill] sm:$0xff]  ;;  %v5204_v57 = vld [vmem:[#allocation41_spill] sm:$0xff] }
 0x829   : > { %v2238_v45 = vadd.f32 0.2548296, %v2222_v21  ;;  %v2026_v20 = vmul.f32 0.5, %v5192_v12  ;;  %v2375_v11 = vsub.f32 0.0, %v2343_v33  ;;  %v2221_v36 = vmul.f32 %v4892_v2, %v2205_v38 }
 0x82a   : > { %v2346_v4 = vsub.f32 1.0, %v2330_v15  ;;  %v2345_v48 = vsub.f32 1.0, %v2329_v19  ;;  %v2332_v54 = vmul.f32 %v5193_v47, %v2252_v44  ;;  %v2331_v22 = vmul.f32 %v5194_v28, %v2251_v30  ;;  %v5205_v44 = vld [vmem:[#allocation40_spill] sm:$0xff] }
 0x82b   : > { %v2254_v26 = vmul.f32 %v4902_v55, %v2238_v45  ;;  %v3577_v24 = vpop.eup %3576  ;;  %vm2362_vm12 = vcmp.ge.f32.partialorder %v5195_v39, 0.0  ;;  %v2391_v35 = vsel %vm2359_vm10, %v2343_v33, %v2375_v11  ;;  %v2237_v16 = vadd.f32 0.2548296, %v2221_v36  ;;  %v5197_v55 = vld [vmem:[#allocation43_spill] sm:$0xff] }
 0x82c   : > { %v2378_v59 = vsub.f32 0.0, %v2346_v4  ;;  %v2407_v10 = vadd.f32 1.0, %v2391_v35  ;;  %v2377_v58 = vsub.f32 0.0, %v2345_v48  ;;  %v2348_v43 = vsub.f32 1.0, %v2332_v54  ;;  %v5207_v54 = vld [vmem:[#allocation25_spill] sm:$0xff]  ;;  %v5208_v35 = vld [vmem:[#allocation26_spill] sm:$0xff] }
 0x82d   : > { %v2347_v31 = vsub.f32 1.0, %v2331_v22  ;;  %v3579_v63 = vpop.eup %3578  ;;  %vm2364_vm13 = vcmp.ge.f32.partialorder %v5196_v46, 0.0  ;;  %v2334_v50 = vmul.f32 %v3577_v24, %v2254_v26  ;;  %v2253_v7 = vmul.f32 %v4892_v2, %v2237_v16 }
 0x82e   : > { %v2394_v52 = vsel %vm2362_vm12, %v2346_v4, %v2378_v59  ;;  %v2423_v0 = vmul.f32 %v2407_v10, %v5197_v55  ;;  %v2393_v34 = vsel %vm2361_vm11, %v2345_v48, %v2377_v58  ;;  %v2380_v37 = vsub.f32 0.0, %v2348_v43 }
 0x82f   : > { %v2410_v5 = vadd.f32 1.0, %v2394_v52  ;;  %v2409_v14 = vadd.f32 1.0, %v2393_v34  ;;  %v2379_v61 = vsub.f32 0.0, %v2347_v31  ;;  %v2350_v62 = vsub.f32 1.0, %v2334_v50  ;;  %v5210_v50 = vld [vmem:[#allocation28_spill] sm:$0xff] }
 0x830   : > { %v2333_v40 = vmul.f32 %v3579_v63, %v2253_v7  ;;  %v2025_v3 = vmul.f32 0.5, %v5198_v27  ;;  %vm2363_vm14 = vcmp.ge.f32.partialorder %v5199_v18, 0.0  ;;  %2555 = vmatmul.mubr.f32.gmra.mrb[32].mxu0 %v2423_v0  ;;  %v2396_v2 = vsel %vm2364_vm13, %v2348_v43, %v2380_v37 }
 0x831   : > { %v2426_v1 = vmul.f32 %v2410_v5, %v2026_v20  ;;  %v2028_v6 = vmul.f32 0.5, %v5200_v25  ;;  %v2412_v13 = vadd.f32 1.0, %v2396_v2  ;;  %v2395_v51 = vsel %vm2363_vm14, %v2347_v31, %v2379_v61  ;;  %v2866_v20 = vld [vmem:[%s696_s3] ss:$0 sm:$0xff]  ;;  %v5209_v31 = vld [vmem:[#allocation27_spill] sm:$0xff]  ;;  %v5211_v61 = vld [vmem:[#allocation29_spill] sm:$0xff] }
 0x832   : > { %v2382_v56 = vsub.f32 0.0, %v2350_v62  ;;  %vm2366_vm15 = vcmp.ge.f32.partialorder %v5201_v29, 0.0  ;;  %v2425_v9 = vmul.f32 %v2409_v14, %v2025_v3  ;;  %v2411_v17 = vadd.f32 1.0, %v2395_v51 }
 0x833   : > { %2559 = vmatprep.mubr.f32.mxu0 %v2426_v1  ;;  %v2349_v42 = vsub.f32 1.0, %v2333_v40  ;;  %v2428_v53 = vmul.f32 %v2412_v13, %v2028_v6  ;;  %v2027_v8 = vmul.f32 0.5, %v5202_v49  ;;  %v2030_v23 = vmul.f32 0.5, %v5203_v60  ;;  %v5212_v1 = vld [vmem:[#allocation30_spill] sm:$0xff] }
 0x834   : > { %v2398_v41 = vsel %vm2366_vm15, %v2350_v62, %v2382_v56  ;;  %2560 = vmatmul.mubr.f32.gmra.mrb[34].mxu0 %v2425_v9  ;;  %vm2365_vm0 = vcmp.ge.f32.partialorder %v5204_v57, 0.0  ;;  %v2029_v30 = vmul.f32 0.5, %v5205_v44  ;;  %v5213_v56 = vld [vmem:[#allocation31_spill] sm:$0xff] }
 0x835   : > { %v2414_v21 = vadd.f32 1.0, %v2398_v41  ;;  %v2381_v33 = vsub.f32 0.0, %v2349_v42  ;;  %2564 = vmatprep.mubr.f32.mxu0 %v2428_v53  ;;  %v2427_v15 = vmul.f32 %v2411_v17, %v2027_v8 }
 0x837   : > { %v2430_v38 = vmul.f32 %v2414_v21, %v2030_v23  ;;  %v2397_v32 = vsel %vm2365_vm0, %v2349_v42, %v2381_v33  ;;  %v5214_v42 = vld [vmem:[#allocation32_spill] sm:$0xff] }
 0x838   : > { %v2413_v19 = vadd.f32 1.0, %v2397_v32  ;;  %2565 = vmatmul.mubr.f32.gmra.mrb[36].mxu0 %v2427_v15 }
 0x839   : > { %2569 = vmatprep.mubr.f32.mxu0 %v2430_v38 }
 0x83a   : > { %v2429_v45 = vmul.f32 %v2413_v19, %v2029_v30 }
 0x83c   : > { %2570 = vmatmul.mubr.f32.gmra.mrb[38].mxu0 %v2429_v45 }
 0x8e6   : > { %v2987_v12 = vpop.f32.mrb[24].mxu0 }
 0x8e7   : > { %v2988_v11 = vpop.f32.mrb[25].mxu0 }
 0x8e8   : > { %v2989_v4 = vadd.f32 %v2988_v11, %v2987_v12 }
 0x8ea   : > { %v2537_v36 = vadd.f32 %v2989_v4, %v2866_v20  ;;  %v2990_v48 = vpop.f32.mrb[26].mxu0 }
 0x8eb   : > { %v2991_v47 = vpop.f32.mrb[27].mxu0 }
 0x8ec   : > { %v2575_v28 = vadd.f32 %v2537_v36, %v5207_v54  ;;  %v2992_v22 = vadd.f32 %v2991_v47, %v2990_v48 }
 0x8ee   : > { %2583 = vst [vmem:[#allocation2] sm:$0xff] %v2575_v28  ;;  %v2542_v26 = vadd.f32 %v2992_v22, %v2866_v20  ;;  %v2993_v24 = vpop.f32.mrb[28].mxu0  ;;  %2595 = vst [vmem:[#allocation14] sm:$0xff] (!%p2867_p10), %v2575_v28 }
 0x8ef   : > { %v2994_v39 = vpop.f32.mrb[29].mxu0 }
 0x8f0   : > { %v2576_v59 = vadd.f32 %v2542_v26, %v5208_v35  ;;  %v2995_v16 = vadd.f32 %v2994_v39, %v2993_v24 }
 0x8f2   : > { %2584 = vst [vmem:[#allocation2 + $0x8] sm:$0xff] %v2576_v59  ;;  %v2547_v10 = vadd.f32 %v2995_v16, %v2866_v20  ;;  %v2996_v58 = vpop.f32.mrb[30].mxu0  ;;  %2596 = vst [vmem:[#allocation14 + $0x8] sm:$0xff] (!%p2867_p10), %v2576_v59 }
 0x8f3   : > { %v2997_v43 = vpop.f32.mrb[31].mxu0 }
 0x8f4   : > { %v2577_v63 = vadd.f32 %v2547_v10, %v5209_v31  ;;  %v2998_v46 = vadd.f32 %v2997_v43, %v2996_v58 }
 0x8f6   : > { %2585 = vst [vmem:[#allocation2 + $0x10] sm:$0xff] %v2577_v63  ;;  %v2552_v52 = vadd.f32 %v2998_v46, %v2866_v20  ;;  %2597 = vst [vmem:[#allocation14 + $0x10] sm:$0xff] (!%p2867_p10), %v2577_v63 }
 0x8f8   : > { %v2578_v7 = vadd.f32 %v2552_v52, %v5210_v50 }
 0x8fa   : > { %2586 = vst [vmem:[#allocation2 + $0x18] sm:$0xff] %v2578_v7  ;;  %2598 = vst [vmem:[#allocation14 + $0x18] sm:$0xff] (!%p2867_p10), %v2578_v7 }
 0x903   : > { %v2999_v55 = vpop.f32.mrb[32].mxu0 }
 0x904   : > { %v3000_v0 = vpop.f32.mrb[33].mxu0 }
 0x905   : > { %v3001_v5 = vadd.f32 %v3000_v0, %v2999_v55 }
 0x907   : > { %v2557_v34 = vadd.f32 %v3001_v5, %v2866_v20  ;;  %v3002_v37 = vpop.f32.mrb[34].mxu0 }
 0x908   : > { %v3003_v14 = vpop.f32.mrb[35].mxu0 }
 0x909   : > { %v2579_v62 = vadd.f32 %v2557_v34, %v5211_v61  ;;  %v3004_v40 = vadd.f32 %v3003_v14, %v3002_v37 }
 0x90b   : > { %2587 = vst [vmem:[#allocation2 + $0x20] sm:$0xff] %v2579_v62  ;;  %v2562_v27 = vadd.f32 %v3004_v40, %v2866_v20  ;;  %v3005_v3 = vpop.f32.mrb[36].mxu0  ;;  %2599 = vst [vmem:[#allocation14 + $0x20] sm:$0xff] (!%p2867_p10), %v2579_v62 }
 0x90c   : > { %v3006_v18 = vpop.f32.mrb[37].mxu0 }
 0x90d   : > { %v2580_v2 = vadd.f32 %v2562_v27, %v5212_v1  ;;  %v3007_v25 = vadd.f32 %v3006_v18, %v3005_v3 }
 0x90f   : > { %2588 = vst [vmem:[#allocation2 + $0x28] sm:$0xff] %v2580_v2  ;;  %v2567_v6 = vadd.f32 %v3007_v25, %v2866_v20  ;;  %v3008_v13 = vpop.f32.mrb[38].mxu0  ;;  %2600 = vst [vmem:[#allocation14 + $0x28] sm:$0xff] (!%p2867_p10), %v2580_v2 }
 0x910   : > { %v3009_v51 = vpop.f32.mrb[39].mxu0 }
 0x911   : > { %v2581_v29 = vadd.f32 %v2567_v6, %v5213_v56  ;;  %v3010_v9 = vadd.f32 %v3009_v51, %v3008_v13  ;;  %2594 = sbr.rel (%p2867_p10) target bundleno = 2328 (0x918), region = 100 }
 0x913   : > { %2589 = vst [vmem:[#allocation2 + $0x30] sm:$0xff] %v2581_v29  ;;  %v2572_v17 = vadd.f32 %v3010_v9, %v2866_v20  ;;  %2601 = vst [vmem:[#allocation14 + $0x30] sm:$0xff] (!%p2867_p10), %v2581_v29 }
 0x915   : > { %v2582_v53 = vadd.f32 %v2572_v17, %v5214_v42 }
 0x917   : > { %2590 = vst [vmem:[#allocation2 + $0x38] sm:$0xff] %v2582_v53  ;;  %2602 = vst [vmem:[#allocation14 + $0x38] sm:$0xff] (!%p2867_p10), %v2582_v53 }
 0x918 PF: > { %p3391_p13 = scmp.eq.s32.totalorder %s4072_s15, 1  ;;  %s3873_s3 = smov [#allocation14]  }
 0x919   : > { %s2613_s2 = sshll.u32 %s3873_s3, 4  ;;  %s2614_s2 = int_to_ptr.vmem [resolvable:$true] %s2613_s2 }
 0x91a   : > { %s3766_s30 = scalar_lea.vmem %s2614_s2, 1024  ;;  %p3773_p12 = scmp.lt.s32.totalorder %s2614_s2, %s2614_s2 }
 0x91b   : > { %p3767_p2 = scmp.ne.s32.totalorder %s2614_s2, %s3766_s30  ;;  %p3774_p5 = scmp.lt.s32.totalorder %s3766_s30, %s3766_s30 }
 0x91d   : > { %p3768_p0 = pnand %p3767_p2, %p3391_p13  ;;  %p3775_p11 = por %p3774_p5, %p3773_p12 }
 0x91f   : > { %p3769_p1 = pneg %p3768_p0 }
 0x921   : > { %p3776_p6 = pnand %p3775_p11, %p3769_p1 }
 0x923   : > { %3779 = shalt.err (!%p3776_p6)
}
 0x924   : > { %s5215_s16 = sld [smem:[#allocation59_spill]] }
 0x92a   : > { %s3780_s6 = scalar_lea.hbm %s5215_s16, 1024 }
 0x92b   : > { %p3781_p4 = scmp.ne.s32.totalorder %s5215_s16, %s3780_s6  ;;  %p3786_p3 = scmp.lt.u32.totalorder %s3780_s6, %s5215_s16 }
 0x92d   : > { %p3782_p7 = pnand %p3781_p4, %p3391_p13 }
 0x92f   : > { %p3783_p8 = pneg %p3782_p7 }
 0x931   : > { %p3788_p9 = pnand %p3786_p3, %p3783_p8 }
 0x933   : > { %3791 = shalt.err (!%p3788_p9)
}
 0x934   : > { %s3874_s27 = smov 128   ;;  %s3875_s0 = smov 8  }
 0x935   : > { %3365 = dma.vmem_to_hbm [thread:$0]  (%p3391_p13), %s2614_s2, 1024, %s5215_s16, [#allocation5], %s3874_s27, %s3874_s27, %s3875_s0  }
 0x936   : > { %3833 = dma.done.wait (%p3391_p13), [#allocation5], 1024  }
 0x937   : > { %3835 = vsyncadd (%p3391_p13), [#allocation5], 4294966272 }
 0x938 PF: > { %s5216_s28 = sld [smem:[#allocation22_spill]]  ;;  %s5217_s14 = sld [smem:[#allocation20_spill]] }
 0x939   : > { %s5218_s23 = sld [smem:[#allocation24_spill]]  ;;  %s5219_s24 = sld [smem:[#allocation21_spill]] }
 0x93a   : > { %s5220_s25 = sld [smem:[#allocation23_spill]]  ;;  %s5221_s21 = smov %s3842_s22 }
 0x93e   : > { %s33_s26 = sadd.s32 1, %s5216_s28   ;;  %s5222_s22 = smov %s5217_s14 }
 0x93f   : > { %p30_p10 = scmp.ge.s32.totalorder %s33_s26, 4  }
 0x941   :  { %32 = sbr.rel (!%p30_p10) target bundleno = 22 (0x16), region = 186 }
 0x948   :  { %2629 = vsyncpa [#allocation4], 1 }
 0x949   :  { %2631 = vsyncpa [#allocation4 + $0x1], 1 }
 0x94a   :  { %2632 = vsyncpa [#allocation7], 1 }
 0x94b   :  { %2634 = vsyncpa [#allocation7 + $0x1], 1 }
 0x94c   :  { %2635 = vsyncpa [#allocation10], 1 }
 0x94d   :  { %2637 = vsyncpa [#allocation10 + $0x1], 1 }
 0x94e   :  { %2638 = vsyncpa [#allocation13], 1 }
 0x94f   :  { %2640 = vsyncpa [#allocation13 + $0x1], 1 }
 0x950   :  { %2641 = vsyncpa [#allocation5], 1 }
 0x951   :  { %2643 = vsyncpa [#allocation5 + $0x1], 1 }

</bundles_post_ra>
